<compile_context>
chip_gen: v7x
topology: tpu7x:2x2x1
jax: 0.10.0
libtpu: 0.0.40
codegen_flags: <defaults>
</compile_context>

<pallas_src>
import jax
import jax.numpy as jnp
from jax.experimental import pallas as pl
from jax.experimental.pallas import tpu as pltpu

LATENT_DIMS = 32            # params['latent_dims'] — chosen small/deterministic
IN_FEATURES = 8673          # 1 * 177 * 49  (graph layout)
OUT_FEATURES = 8673
UNFLAT = (1, 177, 49)

KPAD = 8704                 # 8673 -> multiple of 256 (34 * 256)
NPAD = 128                  # latent 32 -> one full lane width
OUTPAD = 8704               # decoder output dim, same padding as K

SUBLANE = 16                # bf16 packs 16 sublane rows per vreg; keep batch tiles
                            # 16-aligned so bf16 x/recon blocks are always full tiles.


def _round_up(v, m):
    return (v + m - 1) // m * m


def _tm_max():
    """128 by default (safe on v7x's 64 MiB VMEM); 256 only on big-VMEM parts."""
    try:
        vmem = getattr(pltpu.get_tpu_info(), "vmem_capacity_bytes", 64 << 20)
    except Exception:
        return 128
    return 256 if vmem >= (96 << 20) else 128


def _pick_tm(batch, tm_max):
    """Largest-useful batch tile that does NOT add a near-empty trailing tile:
    first fix the minimal number of grid steps achievable with tm_max, then use
    the smallest SUBLANE-aligned tile that still achieves that step count."""
    b_al = _round_up(max(batch, 1), SUBLANE)
    tm_cap = min(tm_max, b_al)
    steps = -(-b_al // tm_cap)
    return _round_up(-(-b_al // steps), SUBLANE)


def _vmem_limit_bytes(tm):
    """Scoped-VMEM request from the real buffers: double-buffered x/recon/latent
    tiles, single-buffered resident weights/biases, plus f32 epilogue temps."""
    f32, bf16 = 4, 2
    io = 2 * (tm * KPAD * bf16          # x tile (bf16, double-buffered)
              + tm * OUTPAD * bf16      # recon tile (bf16, double-buffered)
              + tm * NPAD * f32)        # latent tile (f32, double-buffered)
    resident = (KPAD * NPAD * bf16      # W1 (single-buffered, VMEM-resident)
                + NPAD * OUTPAD * bf16  # W2 (single-buffered, VMEM-resident)
                + NPAD * f32 + OUTPAD * f32)          # b1, b2
    temps = tm * NPAD * (f32 + bf16) + tm * OUTPAD * f32   # z, z_bf16, y
    return min(max(int((io + resident + temps) * 1.3) + (2 << 20), 16 << 20),
               100 << 20)


def _graph_ae_kernel(x_ref, w1_ref, b1_ref, w2_ref, b2_ref, recon_ref, latent_ref):
    # Encoder: bf16 x bf16 on the MXU, f32 accumulation; f32 bias+ReLU epilogue.
    z = jnp.dot(x_ref[...], w1_ref[...], preferred_element_type=jnp.float32)
    z = jnp.maximum(z + b1_ref[...], 0.0)
    latent_ref[...] = z.astype(latent_ref.dtype)

    # Decoder: the (tm, 128) latent never leaves VMEM; cast it to bf16 for the
    # MXU, accumulate in f32, then f32 bias+ReLU and a bf16 lane-dense store.
    y = jnp.dot(z.astype(jnp.bfloat16), w2_ref[...],
                preferred_element_type=jnp.float32)
    recon_ref[...] = jnp.maximum(y + b2_ref[...], 0.0).astype(recon_ref.dtype)


def autoencoder_x_graph2graph(x, params):
    """x: (B, 1, 177, 49) (anything flattening to 8673 features).
    params holds PRE-PADDED, pre-cast weights (see init_params).
    Returns (x_recon (B,1,177,49) f32, latent (B, LATENT_DIMS) f32), matching
    Autoencoder_X.forward(batch, io='graph2graph')."""
    w1_p, b1_p = params["w1_p"], params["b1_p"]   # (KPAD, NPAD) bf16, (1, NPAD) f32
    w2_p, b2_p = params["w2_p"], params["b2_p"]   # (NPAD, OUTPAD) bf16, (1, OUTPAD) f32

    B = x.shape[0]
    x_flat = x.reshape(B, -1)                     # torch.flatten(x, 1)
    assert x_flat.shape[1] == IN_FEATURES

    tm = _pick_tm(B, _tm_max())
    b_pad = _round_up(B, tm)
    grid = (b_pad // tm,)

    # Single pad+cast pass over x.  Zero-padding is exact: padded K columns of x
    # meet zero rows of W1; padded latent lanes are relu(0 + 0) = 0 meeting zero
    # rows of W2, so the valid region is bit-identical to the unpadded math.
    x_p = jnp.pad(x_flat.astype(jnp.bfloat16),
                  ((0, b_pad - B), (0, KPAD - IN_FEATURES)))

    cost = pl.CostEstimate(
        flops=2 * b_pad * KPAD * NPAD + 2 * b_pad * NPAD * OUTPAD,
        transcendentals=0,
        bytes_accessed=(b_pad * KPAD * 2 + KPAD * NPAD * 2 + NPAD * OUTPAD * 2
                        + NPAD * 4 + OUTPAD * 4
                        + b_pad * OUTPAD * 2 + b_pad * NPAD * 4),
    )

    resident = dict(pipeline_mode=pl.Buffered(1))   # constant blocks: single-buffer

    recon_p, latent_p = pl.pallas_call(
        _graph_ae_kernel,
        out_shape=(
            jax.ShapeDtypeStruct((b_pad, OUTPAD), jnp.bfloat16),   # recon (bf16)
            jax.ShapeDtypeStruct((b_pad, NPAD), jnp.float32),      # latent
        ),
        grid=grid,
        in_specs=[
            pl.BlockSpec((tm, KPAD), lambda i: (i, 0)),                 # x tile
            pl.BlockSpec((KPAD, NPAD), lambda i: (0, 0), **resident),   # W1
            pl.BlockSpec((1, NPAD), lambda i: (0, 0), **resident),      # b1
            pl.BlockSpec((NPAD, OUTPAD), lambda i: (0, 0), **resident), # W2
            pl.BlockSpec((1, OUTPAD), lambda i: (0, 0), **resident),    # b2
        ],
        out_specs=(
            pl.BlockSpec((tm, OUTPAD), lambda i: (i, 0)),   # recon (lane-dense)
            pl.BlockSpec((tm, NPAD), lambda i: (i, 0)),     # latent (lane-dense)
        ),
        compiler_params=pltpu.CompilerParams(
            dimension_semantics=("parallel",),
            vmem_limit_bytes=_vmem_limit_bytes(tm),
        ),
        cost_estimate=cost,
    )(x_p, w1_p, b1_p, w2_p, b2_p)

    latent = latent_p[:B, :LATENT_DIMS]
    x_recon = recon_p[:B, :OUT_FEATURES].astype(jnp.float32).reshape((B,) + UNFLAT)
    return x_recon, latent


def init_params(key):
    """Deterministic init mimicking nn.Linear defaults: U(-1/sqrt(fan_in), +).
    Weights are stored pre-transposed (in, out), PRE-PADDED to MXU-friendly
    shapes and pre-cast to bf16, so the forward pays no per-call padding."""
    k1w, k1b, k2w, k2b = jax.random.split(key, 4)
    bound1 = 1.0 / (IN_FEATURES ** 0.5)
    bound2 = 1.0 / (LATENT_DIMS ** 0.5)
    w1 = jax.random.uniform(k1w, (IN_FEATURES, LATENT_DIMS), jnp.float32,
                            -bound1, bound1)
    b1 = jax.random.uniform(k1b, (LATENT_DIMS,), jnp.float32, -bound1, bound1)
    w2 = jax.random.uniform(k2w, (LATENT_DIMS, OUT_FEATURES), jnp.float32,
                            -bound2, bound2)
    b2 = jax.random.uniform(k2b, (OUT_FEATURES,), jnp.float32, -bound2, bound2)
    return {
        "w1_p": jnp.pad(w1.astype(jnp.bfloat16),
                        ((0, KPAD - IN_FEATURES), (0, NPAD - LATENT_DIMS))),
        "b1_p": jnp.pad(b1, (0, NPAD - LATENT_DIMS)).reshape(1, NPAD),
        "w2_p": jnp.pad(w2.astype(jnp.bfloat16),
                        ((0, NPAD - LATENT_DIMS), (0, OUTPAD - OUT_FEATURES))),
        "b2_p": jnp.pad(b2, (0, OUTPAD - OUT_FEATURES)).reshape(1, OUTPAD),
    }


if __name__ == "__main__":
    key = jax.random.PRNGKey(0)
    k_x, k_p = jax.random.split(key)

    B = 2
    # Graph-shaped input: flatten(., 1) -> 1 * 177 * 49 = 8673 features.
    x = jax.random.normal(k_x, (B,) + UNFLAT, jnp.float32)
    params = init_params(k_p)

    fwd = jax.jit(autoencoder_x_graph2graph)
    x_recon, latent = fwd(x, params)
    x_recon = jax.block_until_ready(x_recon)
    latent = jax.block_until_ready(latent)

    # Plain-JAX reference following the same dtype path (bf16-rounded inputs and
    # weights, f32 accumulation, bf16 recon writeback).
    w1f = params["w1_p"][:IN_FEATURES, :LATENT_DIMS].astype(jnp.float32)
    w2f = params["w2_p"][:LATENT_DIMS, :OUT_FEATURES].astype(jnp.float32)
    b1f = params["b1_p"][0, :LATENT_DIMS]
    b2f = params["b2_p"][0, :OUT_FEATURES]
    xb = x.reshape(B, -1).astype(jnp.bfloat16).astype(jnp.float32)
    hi = jax.lax.Precision.HIGHEST
    lat_ref = jnp.maximum(jnp.dot(xb, w1f, precision=hi) + b1f, 0.0)
    rec_ref = jnp.maximum(
        jnp.dot(lat_ref.astype(jnp.bfloat16).astype(jnp.float32), w2f,
                precision=hi) + b2f, 0.0)
    rec_ref = rec_ref.astype(jnp.bfloat16).astype(jnp.float32).reshape((B,) + UNFLAT)

    assert x_recon.shape == (B,) + UNFLAT
    assert latent.shape == (B, LATENT_DIMS)
    assert jnp.allclose(latent, lat_ref, atol=5e-3, rtol=5e-3)
    assert jnp.allclose(x_recon, rec_ref, atol=5e-3, rtol=5e-3)

    print("KERNEL_OK")
</pallas_src>

<mosaic_0001>
module attributes {stable_mosaic.version = 11 : i64} {
  func.func @_graph_ae_kernel(%arg0: i32, %arg1: memref<16x8704xbf16, #tpu.memory_space<vmem>>, %arg2: memref<8704x128xbf16, #tpu.memory_space<vmem>>, %arg3: memref<1x128xf32, #tpu.memory_space<vmem>>, %arg4: memref<128x8704xbf16, #tpu.memory_space<vmem>>, %arg5: memref<1x8704xf32, #tpu.memory_space<vmem>>, %arg6: memref<16x8704xbf16, #tpu.memory_space<vmem>>, %arg7: memref<16x128xf32, #tpu.memory_space<vmem>>) attributes {dimension_semantics = [#tpu.dimension_semantics<parallel>], iteration_bounds = array<i64: 1>, scalar_prefetch = 0 : i64, scratch_operands = 0 : i64, tpu.core_type = #tpu.core_type<tc>, window_params = [{transform_indices = @transform_0, window_bounds = array<i64: 16, 8704>}, {pipeline_mode = #tpu.pipeline_mode<synchronous>, transform_indices = @transform_1, window_bounds = array<i64: 8704, 128>}, {pipeline_mode = #tpu.pipeline_mode<synchronous>, transform_indices = @transform_2, window_bounds = array<i64: 1, 128>}, {pipeline_mode = #tpu.pipeline_mode<synchronous>, transform_indices = @transform_3, window_bounds = array<i64: 128, 8704>}, {pipeline_mode = #tpu.pipeline_mode<synchronous>, transform_indices = @transform_4, window_bounds = array<i64: 1, 8704>}, {transform_indices = @transform_5, window_bounds = array<i64: 16, 8704>}, {transform_indices = @transform_6, window_bounds = array<i64: 16, 128>}]} {
    %c0 = arith.constant 0 : index
    %c0_0 = arith.constant 0 : index
    %0 = vector.load %arg1[%c0, %c0_0] : memref<16x8704xbf16, #tpu.memory_space<vmem>>, vector<16x8704xbf16>
    %c0_1 = arith.constant 0 : index
    %c0_2 = arith.constant 0 : index
    %1 = vector.load %arg2[%c0_1, %c0_2] : memref<8704x128xbf16, #tpu.memory_space<vmem>>, vector<8704x128xbf16>
    %cst = arith.constant dense<0.000000e+00> : vector<16x128xf32>
    %2 = tpu.matmul %0, %1, %cst {dimension_numbers = #tpu.dot_dimension_numbers<[1], [0], [0], [1], [0, 0, 1, 1], [], []>} : vector<16x8704xbf16>, vector<8704x128xbf16>, vector<16x128xf32> -> vector<16x128xf32>
    %c0_3 = arith.constant 0 : index
    %c0_4 = arith.constant 0 : index
    %3 = vector.load %arg3[%c0_3, %c0_4] : memref<1x128xf32, #tpu.memory_space<vmem>>, vector<1x128xf32>
    %4 = vector.broadcast %3 : vector<1x128xf32> to vector<16x128xf32>
    %5 = arith.addf %2, %4 : vector<16x128xf32>
    %cst_5 = arith.constant 0.000000e+00 : f32
    %6 = vector.broadcast %cst_5 : f32 to vector<16x128xf32>
    %7 = arith.maximumf %5, %6 : vector<16x128xf32>
    %c0_6 = arith.constant 0 : index
    %c0_7 = arith.constant 0 : index
    %8 = vector.load %arg7[%c0_6, %c0_7] : memref<16x128xf32, #tpu.memory_space<vmem>>, vector<16x128xf32>
    tpu.vector_store %arg7[%c0_6, %c0_7], %7 {strides = array<i32>} : memref<16x128xf32, #tpu.memory_space<vmem>>, vector<16x128xf32>,
    %9 = arith.truncf %7 : vector<16x128xf32> to vector<16x128xbf16>
    %c0_8 = arith.constant 0 : index
    %c0_9 = arith.constant 0 : index
    %10 = vector.load %arg4[%c0_8, %c0_9] : memref<128x8704xbf16, #tpu.memory_space<vmem>>, vector<128x8704xbf16>
    %cst_10 = arith.constant dense<0.000000e+00> : vector<16x8704xf32>
    %11 = tpu.matmul %9, %10, %cst_10 {dimension_numbers = #tpu.dot_dimension_numbers<[1], [0], [0], [1], [0, 0, 1, 1], [], []>} : vector<16x128xbf16>, vector<128x8704xbf16>, vector<16x8704xf32> -> vector<16x8704xf32>
    %c0_11 = arith.constant 0 : index
    %c0_12 = arith.constant 0 : index
    %12 = vector.load %arg5[%c0_11, %c0_12] : memref<1x8704xf32, #tpu.memory_space<vmem>>, vector<1x8704xf32>
    %13 = vector.broadcast %12 : vector<1x8704xf32> to vector<16x8704xf32>
    %14 = arith.addf %11, %13 : vector<16x8704xf32>
    %cst_13 = arith.constant 0.000000e+00 : f32
    %15 = vector.broadcast %cst_13 : f32 to vector<16x8704xf32>
    %16 = arith.maximumf %14, %15 : vector<16x8704xf32>
    %17 = arith.truncf %16 : vector<16x8704xf32> to vector<16x8704xbf16>
    %c0_14 = arith.constant 0 : index
    %c0_15 = arith.constant 0 : index
    %18 = vector.load %arg6[%c0_14, %c0_15] : memref<16x8704xbf16, #tpu.memory_space<vmem>>, vector<16x8704xbf16>
    tpu.vector_store %arg6[%c0_14, %c0_15], %17 {strides = array<i32>} : memref<16x8704xbf16, #tpu.memory_space<vmem>>, vector<16x8704xbf16>,
    return
  }
  func.func @transform_0(%arg0: i32) -> (i32, i32) {
    %c0_i32 = arith.constant 0 : i32
    %c0_i32_0 = arith.constant 0 : i32
    return %arg0, %c0_i32 : i32, i32
  }
  func.func @transform_1(%arg0: i32) -> (i32, i32) {
    %c0_i32 = arith.constant 0 : i32
    %c0_i32_0 = arith.constant 0 : i32
    %c0_i32_1 = arith.constant 0 : i32
    return %c0_i32, %c0_i32_0 : i32, i32
  }
  func.func @transform_2(%arg0: i32) -> (i32, i32) {
    %c0_i32 = arith.constant 0 : i32
    %c0_i32_0 = arith.constant 0 : i32
    %c0_i32_1 = arith.constant 0 : i32
    return %c0_i32, %c0_i32_0 : i32, i32
  }
  func.func @transform_3(%arg0: i32) -> (i32, i32) {
    %c0_i32 = arith.constant 0 : i32
    %c0_i32_0 = arith.constant 0 : i32
    %c0_i32_1 = arith.constant 0 : i32
    return %c0_i32, %c0_i32_0 : i32, i32
  }
  func.func @transform_4(%arg0: i32) -> (i32, i32) {
    %c0_i32 = arith.constant 0 : i32
    %c0_i32_0 = arith.constant 0 : i32
    %c0_i32_1 = arith.constant 0 : i32
    return %c0_i32, %c0_i32_0 : i32, i32
  }
  func.func @transform_5(%arg0: i32) -> (i32, i32) {
    %c0_i32 = arith.constant 0 : i32
    %c0_i32_0 = arith.constant 0 : i32
    return %arg0, %c0_i32 : i32, i32
  }
  func.func @transform_6(%arg0: i32) -> (i32, i32) {
    %c0_i32 = arith.constant 0 : i32
    %c0_i32_0 = arith.constant 0 : i32
    return %arg0, %c0_i32 : i32, i32
  }
}

</mosaic_0001>

<bundles_post_ra>
// kernel: autoencoder_x_graph2graph.1
= control target key start
LH: loop header
LB: loop body
LE: loop exit
PB: predicated region body
PF: predicated region fallthrough
CT: control target
= control target key end

     0   :  { %12 = vsyncpa [#allocation3], 0  ;;  %s16334_s0 = inlined_call_operand.vmem [shape: bf16[16,8704], index: 0, kind: input, shape index: {}]   ;;  %s16335_s1 = inlined_call_operand.hbm [shape: bf16[8704,128], index: 1, kind: input, shape index: {}]   ;;  %s16336_s2 = inlined_call_operand.hbm [shape: f32[1,128], index: 2, kind: input, shape index: {}]   ;;  %s16337_s3 = inlined_call_operand.hbm [shape: bf16[128,8704], index: 3, kind: input, shape index: {}]   ;;  %s16338_s4 = inlined_call_operand.hbm [shape: f32[1,8704], index: 4, kind: input, shape index: {}]   ;;  %s16339_s5 = inlined_call_operand.vmem [shape: bf16[16,8704], index: 5, kind: output, shape index: {0}]   ;;  %s16340_s6 = inlined_call_operand.vmem [shape: f32[16,128], index: 6, kind: output, shape index: {1}]  }
   0x1   :  { %13 = vsyncpa [#allocation5], 0 }
   0x2   :  { %14 = vsyncpa [#allocation8], 0  ;;  %s15553_s21 = smov [#allocation4]   ;;  %s15554_s23 = smov [#allocation2]  }
   0x3   :  { %s35_s22 = sshll.u32 %s15553_s21, 4  ;;  %s22_s24 = sshll.u32 %s15554_s23, 4  ;;  %s36_s22 = int_to_ptr.vmem [resolvable:$true] %s35_s22  ;;  %s15597_s24 = int_to_ptr.vmem [resolvable:$true] %s22_s24 }
   0x4   :  { %s15459_s27 = scalar_lea.hbm %s16336_s2, 16 }
   0x5   :  { %p15460_p0 = scmp.ne.s32.totalorder %s16336_s2, %s15459_s27  ;;  %p15463_p1 = scmp.lt.u32.totalorder %s15459_s27, %s16336_s2 }
   0x7   :  { %p15465_p2 = pnand %p15463_p1, %p15460_p0 }
   0x9   :  { %15468 = shalt.err (!%p15465_p2)
}
   0xa   :  { %s15469_s8 = scalar_lea.vmem %s36_s22, 16  ;;  %s15473_s9 = scalar_lea.vmem %s36_s22, 32 }
   0xb   :  { %p15470_p3 = scmp.ne.s32.totalorder %s36_s22, %s15469_s8  ;;  %p15474_p4 = scmp.lt.s32.totalorder %s36_s22, %s36_s22 }
   0xc   :  { %p15475_p5 = scmp.lt.s32.totalorder %s15473_s9, %s15469_s8 }
   0xe   :  { %p15476_p6 = por %p15475_p5, %p15474_p4 }
  0x10   :  { %p15477_p7 = pnand %p15476_p6, %p15470_p3 }
  0x12   :  { %15480 = shalt.err (!%p15477_p7)
}
  0x13   :  { %38 = dma.hbm_to_vmem [thread:$0]  %s16336_s2, 16, %s36_s22, [#allocation5]  }
  0x14   :  { %s15481_s14 = scalar_lea.hbm %s16335_s1, 69632 }
  0x15   :  { %p15482_p8 = scmp.ne.s32.totalorder %s16335_s1, %s15481_s14  ;;  %p15485_p9 = scmp.lt.u32.totalorder %s15481_s14, %s16335_s1 }
  0x17   :  { %p15487_p10 = pnand %p15485_p9, %p15482_p8 }
  0x19   :  { %15490 = shalt.err (!%p15487_p10)
}
  0x1a   :  { %s15491_s19 = scalar_lea.vmem %s15597_s24, 69632  ;;  %p15496_p12 = scmp.lt.s32.totalorder %s15597_s24, %s15597_s24 }
  0x1b   :  { %p15492_p11 = scmp.ne.s32.totalorder %s15597_s24, %s15491_s19  ;;  %p15497_p13 = scmp.lt.s32.totalorder %s15491_s19, %s15491_s19 }
  0x1d   :  { %p15498_p0 = por %p15497_p13, %p15496_p12 }
  0x1f   :  { %p15499_p1 = pnand %p15498_p0, %p15492_p11 }
  0x21   :  { %15502 = shalt.err (!%p15499_p1)
}
  0x22   :  { %s15555_s2 = smov 64   ;;  %s15556_s20 = smov 4  }
  0x23   :  { %28 = dma.hbm_to_vmem [thread:$0]  %s16335_s1, 69632, %s15597_s24, [#allocation3], %s15555_s2, %s15555_s2, %s15556_s20  }
  0x24   :  { %s15557_s23 = smov [#allocation6]   ;;  %s15503_s28 = scalar_lea.hbm %s16337_s3, 69632 }
  0x25   :  { %s44_s25 = sshll.u32 %s15557_s23, 4  ;;  %p15504_p2 = scmp.ne.s32.totalorder %s16337_s3, %s15503_s28  ;;  %s45_s25 = int_to_ptr.vmem [resolvable:$true] %s44_s25 }
  0x26   :  { %p15507_p3 = scmp.lt.u32.totalorder %s15503_s28, %s16337_s3 }
  0x28   :  { %p15509_p4 = pnand %p15507_p3, %p15504_p2 }
  0x2a   :  { %15512 = shalt.err (!%p15509_p4)
}
  0x2b   :  { %s15513_s9 = scalar_lea.vmem %s45_s25, 69632  ;;  %p15518_p6 = scmp.lt.s32.totalorder %s45_s25, %s45_s25 }
  0x2c   :  { %p15514_p5 = scmp.ne.s32.totalorder %s45_s25, %s15513_s9  ;;  %p15519_p7 = scmp.lt.s32.totalorder %s15513_s9, %s15513_s9 }
  0x2e   :  { %p15520_p8 = por %p15519_p7, %p15518_p6 }
  0x30   :  { %p15521_p9 = pnand %p15520_p8, %p15514_p5 }
  0x32   :  { %15524 = shalt.err (!%p15521_p9)
}
  0x33   :  { %s15558_s1 = smov 4352   ;;  %s15559_s24 = smov 272  }
  0x34   :  { %50 = dma.hbm_to_vmem [thread:$0]  %s16337_s3, 69632, %s45_s25, [#allocation5], %s15558_s1, %s15558_s1, %s15559_s24  }
  0x35   :  { %s15560_s12 = smov [#allocation7]   ;;  %s15525_s16 = scalar_lea.hbm %s16338_s4, 1088 }
  0x36   :  { %s57_s13 = sshll.u32 %s15560_s12, 4  ;;  %p15526_p10 = scmp.ne.s32.totalorder %s16338_s4, %s15525_s16  ;;  %s58_s13 = int_to_ptr.vmem [resolvable:$true] %s57_s13 }
  0x37   :  { %p15529_p11 = scmp.lt.u32.totalorder %s15525_s16, %s16338_s4 }
  0x39   :  { %p15531_p12 = pnand %p15529_p11, %p15526_p10 }
  0x3b   :  { %15534 = shalt.err (!%p15531_p12)
}
  0x3c   :  { %s15535_s20 = scalar_lea.vmem %s58_s13, 1088  ;;  %p15540_p0 = scmp.lt.s32.totalorder %s58_s13, %s58_s13 }
  0x3d   :  { %p15536_p13 = scmp.ne.s32.totalorder %s58_s13, %s15535_s20  ;;  %p15541_p1 = scmp.lt.s32.totalorder %s15535_s20, %s15535_s20 }
  0x3f   :  { %p15542_p2 = por %p15541_p1, %p15540_p0 }
  0x41   :  { %p15543_p3 = pnand %p15542_p2, %p15536_p13 }
  0x43   :  { %15546 = shalt.err (!%p15543_p3)
}
  0x44   :  { %60 = dma.hbm_to_vmem [thread:$0]  %s16338_s4, 1088, %s58_s13, [#allocation8]  }
  0x45   :  { %15547 = dma.done.wait [#allocation3], 69632  }
  0x46   :  { %15548 = vsyncadd [#allocation3], 4294897664 }
  0x47   :  { %15549 = dma.done.wait [#allocation5], 69648  }
  0x48   :  { %15550 = vsyncadd [#allocation5], 4294897648 }
  0x49   :  { %15551 = dma.done.wait [#allocation8], 1088  }
  0x4a   :  { %15552 = vsyncadd [#allocation8], 4294966208  ;;  %v13997_v0 = vld [vmem:[#allocation2 + $0x40] sm:$0xff]   ;;  %v14001_v4 = vld [vmem:[#allocation2 + $0x48] sm:$0xff]  }
  0x4b   :  { %v13998_v1 = vld [vmem:[#allocation2 + $0xc0] sm:$0xff]   ;;  %13240 = vmatprep.subr.bf16.mxu0 %v13997_v0  ;;  %v14002_v5 = vld [vmem:[#allocation2 + $0xc8] sm:$0xff]   ;;  %v14005_v8 = vld [vmem:[#allocation2 + $0x50] sm:$0xff]  }
  0x4c   :  { %v13999_v2 = vld [vmem:[#allocation2] sm:$0xff]   ;;  %13262 = vmatprep.subr.bf16.mxu1 %v13998_v1  ;;  %v14003_v6 = vld [vmem:[#allocation2 + $0x8] sm:$0xff]   ;;  %v14006_v9 = vld [vmem:[#allocation2 + $0xd0] sm:$0xff]  }
  0x4d   :  { %v14000_v3 = vld [vmem:[#allocation2 + $0x80] sm:$0xff]   ;;  %13241 = vmatpush3.bf16.msra.mxu0 %v13999_v2  ;;  %v14004_v7 = vld [vmem:[#allocation2 + $0x88] sm:$0xff]   ;;  %v14007_v10 = vld [vmem:[#allocation2 + $0x10] sm:$0xff]  }
  0x4e   :  { %13263 = vmatpush3.bf16.msra.mxu1 %v14000_v3  ;;  %13242 = vmatprep.subr.bf16.mxu0 %v14001_v4  ;;  %v14008_v11 = vld [vmem:[#allocation2 + $0x90] sm:$0xff]   ;;  %v14009_v12 = vld [vmem:[#allocation2 + $0x58] sm:$0xff]   ;;  %v14013_v16 = vld [vmem:[#allocation2 + $0x60] sm:$0xff]  }
  0x4f   :  { %13264 = vmatprep.subr.bf16.mxu1 %v14002_v5  ;;  %v14010_v13 = vld [vmem:[#allocation2 + $0xd8] sm:$0xff]   ;;  %v14014_v17 = vld [vmem:[#allocation2 + $0xe0] sm:$0xff]   ;;  %v14017_v20 = vld [vmem:[#allocation2 + $0x68] sm:$0xff]  }
  0x50   :  { %v14011_v14 = vld [vmem:[#allocation2 + $0x18] sm:$0xff]   ;;  %v14015_v18 = vld [vmem:[#allocation2 + $0x20] sm:$0xff]   ;;  %v14018_v21 = vld [vmem:[#allocation2 + $0xe8] sm:$0xff]  }
  0x51   :  { %13243 = vmatpush3.bf16.msra.mxu0 %v14003_v6  ;;  %v14012_v15 = vld [vmem:[#allocation2 + $0x98] sm:$0xff]   ;;  %v14016_v19 = vld [vmem:[#allocation2 + $0xa0] sm:$0xff]   ;;  %v14019_v22 = vld [vmem:[#allocation2 + $0x28] sm:$0xff]  }
  0x52   :  { %13265 = vmatpush3.bf16.msra.mxu1 %v14004_v7  ;;  %13244 = vmatprep.subr.bf16.mxu0 %v14005_v8  ;;  %v14020_v23 = vld [vmem:[#allocation2 + $0xa8] sm:$0xff]   ;;  %v14021_v24 = vld [vmem:[#allocation2 + $0x70] sm:$0xff]   ;;  %v14025_v28 = vld [vmem:[#allocation2 + $0x78] sm:$0xff]  }
  0x53   :  { %13266 = vmatprep.subr.bf16.mxu1 %v14006_v9  ;;  %v14022_v25 = vld [vmem:[#allocation2 + $0xf0] sm:$0xff]   ;;  %v14026_v29 = vld [vmem:[#allocation2 + $0xf8] sm:$0xff]   ;;  %v14035_v36 = vld [vmem:[#allocation2 + $0x140] sm:$0xff]  }
  0x54   :  { %v14023_v26 = vld [vmem:[#allocation2 + $0x30] sm:$0xff]   ;;  %v14027_v30 = vld [vmem:[#allocation2 + $0x38] sm:$0xff]   ;;  %v14036_v37 = vld [vmem:[#allocation2 + $0x1c0] sm:$0xff]  }
  0x55   :  { %13245 = vmatpush3.bf16.msra.mxu0 %v14007_v10  ;;  %v14024_v27 = vld [vmem:[#allocation2 + $0xb0] sm:$0xff]   ;;  %v14028_v31 = vld [vmem:[#allocation2 + $0xb8] sm:$0xff]   ;;  %v14037_v38 = vld [vmem:[#allocation2 + $0x100] sm:$0xff]  }
  0x56   :  { %13267 = vmatpush3.bf16.msra.mxu1 %v14008_v11  ;;  %13246 = vmatprep.subr.bf16.mxu0 %v14009_v12  ;;  %v14029_v32 = vld [vmem:[%s16334_s0] ss:$272 sps:$4 sm:$0xff]   ;;  %v14031_v33 = vld [vmem:[%s16334_s0 + $0x4] ss:$272 sps:$4 sm:$0xff]   ;;  %v14032_v34 = vld [vmem:[%s16334_s0 + $0x8] ss:$272 sps:$4 sm:$0xff]  }
  0x57   :  { %13268 = vmatprep.subr.bf16.mxu1 %v14010_v13  ;;  %v14034_v35 = vld [vmem:[%s16334_s0 + $0xc] ss:$272 sps:$4 sm:$0xff]   ;;  %4873 = vmatprep.mubr.bf16.mxu0 %v14031_v33  ;;  %v14038_v39 = vld [vmem:[#allocation2 + $0x180] sm:$0xff]   ;;  %v14043_v44 = vld [vmem:[#allocation2 + $0x150] sm:$0xff]  }
  0x58   :  { %4914 = vmatprep.mubr.bf16.mxu1 %v14034_v35  ;;  %v14039_v40 = vld [vmem:[#allocation2 + $0x148] sm:$0xff]   ;;  %v14044_v45 = vld [vmem:[#allocation2 + $0x1d0] sm:$0xff]   ;;  %v14047_v48 = vld [vmem:[#allocation2 + $0x158] sm:$0xff]  }
  0x59   :  { %13247 = vmatpush3.bf16.msra.mxu0 %v14011_v14  ;;  %v14040_v41 = vld [vmem:[#allocation2 + $0x1c8] sm:$0xff]   ;;  %v14045_v46 = vld [vmem:[#allocation2 + $0x110] sm:$0xff]   ;;  %v14048_v49 = vld [vmem:[#allocation2 + $0x1d8] sm:$0xff]  }
  0x5a   :  { %13269 = vmatpush3.bf16.msra.mxu1 %v14012_v15  ;;  %13248 = vmatprep.subr.bf16.mxu0 %v14013_v16  ;;  %v14041_v42 = vld [vmem:[#allocation2 + $0x108] sm:$0xff]   ;;  %v14046_v47 = vld [vmem:[#allocation2 + $0x190] sm:$0xff]   ;;  %v14049_v50 = vld [vmem:[#allocation2 + $0x118] sm:$0xff]  }
  0x5b   :  { %13270 = vmatprep.subr.bf16.mxu1 %v14014_v17  ;;  %v14042_v43 = vld [vmem:[#allocation2 + $0x188] sm:$0xff]   ;;  %v14050_v51 = vld [vmem:[#allocation2 + $0x198] sm:$0xff]   ;;  %v14051_v52 = vld [vmem:[#allocation2 + $0x160] sm:$0xff]  }
  0x5c   :  { %v14052_v53 = vld [vmem:[#allocation2 + $0x1e0] sm:$0xff]   ;;  %v14055_v56 = vld [vmem:[#allocation2 + $0x168] sm:$0xff]   ;;  %v14059_v60 = vld [vmem:[#allocation2 + $0x170] sm:$0xff]  }
  0x5d   :  { %13249 = vmatpush3.bf16.msra.mxu0 %v14015_v18  ;;  %v14053_v54 = vld [vmem:[#allocation2 + $0x120] sm:$0xff]   ;;  %v14056_v57 = vld [vmem:[#allocation2 + $0x1e8] sm:$0xff]   ;;  %v14060_v61 = vld [vmem:[#allocation2 + $0x1f0] sm:$0xff]  }
  0x5e   :  { %13271 = vmatpush3.bf16.msra.mxu1 %v14016_v19  ;;  %13250 = vmatprep.subr.bf16.mxu0 %v14017_v20  ;;  %v14054_v55 = vld [vmem:[#allocation2 + $0x1a0] sm:$0xff]   ;;  %v14057_v58 = vld [vmem:[#allocation2 + $0x128] sm:$0xff]   ;;  %v14061_v62 = vld [vmem:[#allocation2 + $0x130] sm:$0xff]  }
  0x5f   :  { %13272 = vmatprep.subr.bf16.mxu1 %v14018_v21  ;;  %v14058_v59 = vld [vmem:[#allocation2 + $0x1a8] sm:$0xff]   ;;  %v14062_v63 = vld [vmem:[#allocation2 + $0x1b0] sm:$0xff]   ;;  %v14063_v0 = vld [vmem:[#allocation2 + $0x178] sm:$0xff]  }
  0x60   :  { %v14064_v1 = vld [vmem:[#allocation2 + $0x1f8] sm:$0xff]   ;;  %v14067_v4 = vld [vmem:[%s16334_s0 + $0x10] ss:$272 sps:$4 sm:$0xff]   ;;  %v14069_v5 = vld [vmem:[%s16334_s0 + $0x14] ss:$272 sps:$4 sm:$0xff]  }
  0x61   :  { %13251 = vmatpush3.bf16.msra.mxu0 %v14019_v22  ;;  %v14065_v2 = vld [vmem:[#allocation2 + $0x138] sm:$0xff]   ;;  %v14073_v8 = vld [vmem:[#allocation2 + $0x240] sm:$0xff]   ;;  %v14077_v12 = vld [vmem:[#allocation2 + $0x248] sm:$0xff]  }
  0x62   :  { %13273 = vmatpush3.bf16.msra.mxu1 %v14020_v23  ;;  %13252 = vmatprep.subr.bf16.mxu0 %v14021_v24  ;;  %v14066_v3 = vld [vmem:[#allocation2 + $0x1b8] sm:$0xff]   ;;  %v14074_v9 = vld [vmem:[#allocation2 + $0x2c0] sm:$0xff]   ;;  %v14078_v13 = vld [vmem:[#allocation2 + $0x2c8] sm:$0xff]  }
  0x63   :  { %13274 = vmatprep.subr.bf16.mxu1 %v14022_v25  ;;  %v14070_v6 = vld [vmem:[%s16334_s0 + $0x18] ss:$272 sps:$4 sm:$0xff]   ;;  %v14072_v7 = vld [vmem:[%s16334_s0 + $0x1c] ss:$272 sps:$4 sm:$0xff]   ;;  %v14075_v10 = vld [vmem:[#allocation2 + $0x200] sm:$0xff]  }
  0x64   :  { %v14076_v11 = vld [vmem:[#allocation2 + $0x280] sm:$0xff]   ;;  %v14079_v14 = vld [vmem:[#allocation2 + $0x208] sm:$0xff]   ;;  %v14081_v16 = vld [vmem:[#allocation2 + $0x250] sm:$0xff]  }
  0x65   :  { %13253 = vmatpush3.bf16.msra.mxu0 %v14023_v26  ;;  %v14080_v15 = vld [vmem:[#allocation2 + $0x288] sm:$0xff]   ;;  %v14082_v17 = vld [vmem:[#allocation2 + $0x2d0] sm:$0xff]   ;;  %v14085_v20 = vld [vmem:[#allocation2 + $0x258] sm:$0xff]  }
  0x66   :  { %13275 = vmatpush3.bf16.msra.mxu1 %v14024_v27  ;;  %13254 = vmatprep.subr.bf16.mxu0 %v14025_v28  ;;  %v14083_v18 = vld [vmem:[#allocation2 + $0x210] sm:$0xff]   ;;  %v14086_v21 = vld [vmem:[#allocation2 + $0x2d8] sm:$0xff]   ;;  %v14089_v24 = vld [vmem:[#allocation2 + $0x260] sm:$0xff]  }
  0x67   :  { %13276 = vmatprep.subr.bf16.mxu1 %v14026_v29  ;;  %v14084_v19 = vld [vmem:[#allocation2 + $0x290] sm:$0xff]   ;;  %v14087_v22 = vld [vmem:[#allocation2 + $0x218] sm:$0xff]   ;;  %v14090_v25 = vld [vmem:[#allocation2 + $0x2e0] sm:$0xff]  }
  0x68   :  { %v14088_v23 = vld [vmem:[#allocation2 + $0x298] sm:$0xff]   ;;  %v14091_v26 = vld [vmem:[#allocation2 + $0x220] sm:$0xff]   ;;  %v14093_v28 = vld [vmem:[#allocation2 + $0x268] sm:$0xff]  }
  0x69   :  { %13255 = vmatpush3.bf16.msra.mxu0 %v14027_v30  ;;  %v14092_v27 = vld [vmem:[#allocation2 + $0x2a0] sm:$0xff]   ;;  %v14094_v29 = vld [vmem:[#allocation2 + $0x2e8] sm:$0xff]   ;;  %v14098_v33 = vld [vmem:[#allocation2 + $0x2f0] sm:$0xff]  }
  0x6a   :  { %13277 = vmatpush3.bf16.msra.mxu1 %v14028_v31  ;;  %13284 = vmatprep.subr.bf16.mxu0 %v14035_v36  ;;  %v14095_v30 = vld [vmem:[#allocation2 + $0x228] sm:$0xff]   ;;  %v14100_v35 = vld [vmem:[#allocation2 + $0x2b0] sm:$0xff]   ;;  %v14101_v36 = vld [vmem:[#allocation2 + $0x278] sm:$0xff]  }
  0x6b   :  { %13306 = vmatprep.subr.bf16.mxu1 %v14036_v37  ;;  %v14096_v31 = vld [vmem:[#allocation2 + $0x2a8] sm:$0xff]   ;;  %v14102_v37 = vld [vmem:[#allocation2 + $0x2f8] sm:$0xff]  }
  0x6c   :  { %4874 = vmatmul.mubr.bf16.vlgmr.msra.gmra.mrb[0].mxu0 %v14029_v32  ;;  %v14097_v32 = vld [vmem:[#allocation2 + $0x270] sm:$0xff]  }
  0x6d   :  { %4915 = vmatmul.mubr.bf16.vlgmr.msra.gmra.mrb[0].mxu1 %v14032_v34  ;;  %13285 = vmatpush3.bf16.msra.mxu0 %v14037_v38  ;;  %v14099_v34 = vld [vmem:[#allocation2 + $0x230] sm:$0xff]   ;;  %v14103_v38 = vld [vmem:[#allocation2 + $0x238] sm:$0xff]  }
  0x6e   :  { %13307 = vmatpush3.bf16.msra.mxu1 %v14038_v39  ;;  %13286 = vmatprep.subr.bf16.mxu0 %v14039_v40  ;;  %v14104_v39 = vld [vmem:[#allocation2 + $0x2b8] sm:$0xff]   ;;  %v14105_v40 = vld [vmem:[%s16334_s0 + $0x20] ss:$272 sps:$4 sm:$0xff]  }
  0x6f   :  { %13308 = vmatprep.subr.bf16.mxu1 %v14040_v41  ;;  %4955 = vmatprep.mubr.bf16.mxu0 %v14069_v5  ;;  %v14107_v41 = vld [vmem:[%s16334_s0 + $0x24] ss:$272 sps:$4 sm:$0xff]  }
  0x70   :  { %4996 = vmatprep.mubr.bf16.mxu1 %v14072_v7  ;;  %v14136_v5 = vld [vmem:[#allocation2 + $0x3f0] sm:$0xff]  }
  0x71   :  { %13287 = vmatpush3.bf16.msra.mxu0 %v14041_v42  ;;  %v14108_v42 = vld [vmem:[%s16334_s0 + $0x28] ss:$272 sps:$4 sm:$0xff]   ;;  %v14138_v7 = vld [vmem:[#allocation2 + $0x3b0] sm:$0xff]  }
  0x72   :  { %13309 = vmatpush3.bf16.msra.mxu1 %v14042_v43  ;;  %13288 = vmatprep.subr.bf16.mxu0 %v14043_v44  ;;  %v14110_v43 = vld [vmem:[%s16334_s0 + $0x2c] ss:$272 sps:$4 sm:$0xff]   ;;  %v14111_v44 = vld [vmem:[#allocation2 + $0x340] sm:$0xff]  }
  0x73   :  { %13310 = vmatprep.subr.bf16.mxu1 %v14044_v45  ;;  %v14112_v45 = vld [vmem:[#allocation2 + $0x3c0] sm:$0xff]  }
  0x75   :  { %13289 = vmatpush3.bf16.msra.mxu0 %v14045_v46  ;;  %v14113_v46 = vld [vmem:[#allocation2 + $0x300] sm:$0xff]  }
  0x76   :  { %13311 = vmatpush3.bf16.msra.mxu1 %v14046_v47  ;;  %13290 = vmatprep.subr.bf16.mxu0 %v14047_v48  ;;  %v14114_v47 = vld [vmem:[#allocation2 + $0x380] sm:$0xff]   ;;  %v14115_v48 = vld [vmem:[#allocation2 + $0x348] sm:$0xff]  }
  0x77   :  { %13312 = vmatprep.subr.bf16.mxu1 %v14048_v49  ;;  %v14116_v49 = vld [vmem:[#allocation2 + $0x3c8] sm:$0xff]  }
  0x79   :  { %13291 = vmatpush3.bf16.msra.mxu0 %v14049_v50  ;;  %v14117_v50 = vld [vmem:[#allocation2 + $0x308] sm:$0xff]  }
  0x7a   :  { %13313 = vmatpush3.bf16.msra.mxu1 %v14050_v51  ;;  %13292 = vmatprep.subr.bf16.mxu0 %v14051_v52  ;;  %v14118_v51 = vld [vmem:[#allocation2 + $0x388] sm:$0xff]   ;;  %v14119_v52 = vld [vmem:[#allocation2 + $0x350] sm:$0xff]  }
  0x7b   :  { %13314 = vmatprep.subr.bf16.mxu1 %v14052_v53  ;;  %v14120_v53 = vld [vmem:[#allocation2 + $0x3d0] sm:$0xff]  }
  0x7d   :  { %13293 = vmatpush3.bf16.msra.mxu0 %v14053_v54  ;;  %v14121_v54 = vld [vmem:[#allocation2 + $0x310] sm:$0xff]  }
  0x7e   :  { %13315 = vmatpush3.bf16.msra.mxu1 %v14054_v55  ;;  %13294 = vmatprep.subr.bf16.mxu0 %v14055_v56  ;;  %v14122_v55 = vld [vmem:[#allocation2 + $0x390] sm:$0xff]   ;;  %v14123_v56 = vld [vmem:[#allocation2 + $0x358] sm:$0xff]  }
  0x7f   :  { %13316 = vmatprep.subr.bf16.mxu1 %v14056_v57  ;;  %v14124_v57 = vld [vmem:[#allocation2 + $0x3d8] sm:$0xff]  }
  0x81   :  { %13295 = vmatpush3.bf16.msra.mxu0 %v14057_v58  ;;  %v14125_v58 = vld [vmem:[#allocation2 + $0x318] sm:$0xff]  }
  0x82   :  { %13317 = vmatpush3.bf16.msra.mxu1 %v14058_v59  ;;  %13296 = vmatprep.subr.bf16.mxu0 %v14059_v60  ;;  %v14126_v59 = vld [vmem:[#allocation2 + $0x398] sm:$0xff]   ;;  %v14127_v60 = vld [vmem:[#allocation2 + $0x360] sm:$0xff]  }
  0x83   :  { %13318 = vmatprep.subr.bf16.mxu1 %v14060_v61  ;;  %v14128_v61 = vld [vmem:[#allocation2 + $0x3e0] sm:$0xff]  }
  0x85   :  { %13297 = vmatpush3.bf16.msra.mxu0 %v14061_v62  ;;  %v14129_v62 = vld [vmem:[#allocation2 + $0x320] sm:$0xff]  }
  0x86   :  { %13319 = vmatpush3.bf16.msra.mxu1 %v14062_v63  ;;  %13298 = vmatprep.subr.bf16.mxu0 %v14063_v0  ;;  %v14130_v63 = vld [vmem:[#allocation2 + $0x3a0] sm:$0xff]   ;;  %v14131_v0 = vld [vmem:[#allocation2 + $0x368] sm:$0xff]  }
  0x87   :  { %13320 = vmatprep.subr.bf16.mxu1 %v14064_v1  ;;  %v14132_v1 = vld [vmem:[#allocation2 + $0x3e8] sm:$0xff]  }
  0x89   :  { %13299 = vmatpush3.bf16.msra.mxu0 %v14065_v2  ;;  %v14133_v2 = vld [vmem:[#allocation2 + $0x328] sm:$0xff]  }
  0x8a   :  { %13321 = vmatpush3.bf16.msra.mxu1 %v14066_v3  ;;  %13328 = vmatprep.subr.bf16.mxu0 %v14073_v8  ;;  %v14134_v3 = vld [vmem:[#allocation2 + $0x3a8] sm:$0xff]   ;;  %v14139_v8 = vld [vmem:[#allocation2 + $0x378] sm:$0xff]  }
  0x8b   :  { %13350 = vmatprep.subr.bf16.mxu1 %v14074_v9  ;;  %v14140_v9 = vld [vmem:[#allocation2 + $0x3f8] sm:$0xff]  }
  0x8c   :  { %4956 = vmatmul.mubr.bf16.vlgmr.msra.gmra.mrb[4].mxu0 %v14067_v4  ;;  %v14135_v4 = vld [vmem:[#allocation2 + $0x370] sm:$0xff]  }
  0x8d   :  { %4997 = vmatmul.mubr.bf16.vlgmr.msra.gmra.mrb[4].mxu1 %v14070_v6  ;;  %13329 = vmatpush3.bf16.msra.mxu0 %v14075_v10  ;;  %v14137_v6 = vld [vmem:[#allocation2 + $0x330] sm:$0xff]   ;;  %v14141_v10 = vld [vmem:[#allocation2 + $0x338] sm:$0xff]  }
  0x8e   :  { %13351 = vmatpush3.bf16.msra.mxu1 %v14076_v11  ;;  %13330 = vmatprep.subr.bf16.mxu0 %v14077_v12  ;;  %v14142_v11 = vld [vmem:[#allocation2 + $0x3b8] sm:$0xff]   ;;  %v14143_v12 = vld [vmem:[%s16334_s0 + $0x30] ss:$272 sps:$4 sm:$0xff]  }
  0x8f   :  { %13352 = vmatprep.subr.bf16.mxu1 %v14078_v13  ;;  %5037 = vmatprep.mubr.bf16.mxu0 %v14107_v41  ;;  %v14145_v13 = vld [vmem:[%s16334_s0 + $0x34] ss:$272 sps:$4 sm:$0xff]  }
  0x90   :  { %5078 = vmatprep.mubr.bf16.mxu1 %v14110_v43  ;;  %v14174_v41 = vld [vmem:[#allocation2 + $0x4f0] sm:$0xff]  }
  0x91   :  { %13331 = vmatpush3.bf16.msra.mxu0 %v14079_v14  ;;  %v14146_v14 = vld [vmem:[%s16334_s0 + $0x38] ss:$272 sps:$4 sm:$0xff]   ;;  %v14176_v43 = vld [vmem:[#allocation2 + $0x4b0] sm:$0xff]  }
  0x92   :  { %13353 = vmatpush3.bf16.msra.mxu1 %v14080_v15  ;;  %13332 = vmatprep.subr.bf16.mxu0 %v14081_v16  ;;  %v14148_v15 = vld [vmem:[%s16334_s0 + $0x3c] ss:$272 sps:$4 sm:$0xff]   ;;  %v14149_v16 = vld [vmem:[#allocation2 + $0x440] sm:$0xff]  }
  0x93   :  { %13354 = vmatprep.subr.bf16.mxu1 %v14082_v17  ;;  %v14150_v17 = vld [vmem:[#allocation2 + $0x4c0] sm:$0xff]  }
  0x95   :  { %13333 = vmatpush3.bf16.msra.mxu0 %v14083_v18  ;;  %v14151_v18 = vld [vmem:[#allocation2 + $0x400] sm:$0xff]  }
  0x96   :  { %13355 = vmatpush3.bf16.msra.mxu1 %v14084_v19  ;;  %13334 = vmatprep.subr.bf16.mxu0 %v14085_v20  ;;  %v14152_v19 = vld [vmem:[#allocation2 + $0x480] sm:$0xff]   ;;  %v14153_v20 = vld [vmem:[#allocation2 + $0x448] sm:$0xff]  }
  0x97   :  { %13356 = vmatprep.subr.bf16.mxu1 %v14086_v21  ;;  %v14154_v21 = vld [vmem:[#allocation2 + $0x4c8] sm:$0xff]  }
  0x99   :  { %13335 = vmatpush3.bf16.msra.mxu0 %v14087_v22  ;;  %v14155_v22 = vld [vmem:[#allocation2 + $0x408] sm:$0xff]  }
  0x9a   :  { %13357 = vmatpush3.bf16.msra.mxu1 %v14088_v23  ;;  %13336 = vmatprep.subr.bf16.mxu0 %v14089_v24  ;;  %v14156_v23 = vld [vmem:[#allocation2 + $0x488] sm:$0xff]   ;;  %v14157_v24 = vld [vmem:[#allocation2 + $0x450] sm:$0xff]  }
  0x9b   :  { %13358 = vmatprep.subr.bf16.mxu1 %v14090_v25  ;;  %v14158_v25 = vld [vmem:[#allocation2 + $0x4d0] sm:$0xff]  }
  0x9d   :  { %13337 = vmatpush3.bf16.msra.mxu0 %v14091_v26  ;;  %v14159_v26 = vld [vmem:[#allocation2 + $0x410] sm:$0xff]  }
  0x9e   :  { %13359 = vmatpush3.bf16.msra.mxu1 %v14092_v27  ;;  %13338 = vmatprep.subr.bf16.mxu0 %v14093_v28  ;;  %v14160_v27 = vld [vmem:[#allocation2 + $0x490] sm:$0xff]   ;;  %v14161_v28 = vld [vmem:[#allocation2 + $0x458] sm:$0xff]  }
  0x9f   :  { %13360 = vmatprep.subr.bf16.mxu1 %v14094_v29  ;;  %v14162_v29 = vld [vmem:[#allocation2 + $0x4d8] sm:$0xff]  }
  0xa1   :  { %13339 = vmatpush3.bf16.msra.mxu0 %v14095_v30  ;;  %v14163_v30 = vld [vmem:[#allocation2 + $0x418] sm:$0xff]  }
  0xa2   :  { %13361 = vmatpush3.bf16.msra.mxu1 %v14096_v31  ;;  %13340 = vmatprep.subr.bf16.mxu0 %v14097_v32  ;;  %v14164_v31 = vld [vmem:[#allocation2 + $0x498] sm:$0xff]   ;;  %v14165_v32 = vld [vmem:[#allocation2 + $0x460] sm:$0xff]  }
  0xa3   :  { %13362 = vmatprep.subr.bf16.mxu1 %v14098_v33  ;;  %v14166_v33 = vld [vmem:[#allocation2 + $0x4e0] sm:$0xff]  }
  0xa5   :  { %13341 = vmatpush3.bf16.msra.mxu0 %v14099_v34  ;;  %v14167_v34 = vld [vmem:[#allocation2 + $0x420] sm:$0xff]  }
  0xa6   :  { %13363 = vmatpush3.bf16.msra.mxu1 %v14100_v35  ;;  %13342 = vmatprep.subr.bf16.mxu0 %v14101_v36  ;;  %v14168_v35 = vld [vmem:[#allocation2 + $0x4a0] sm:$0xff]   ;;  %v14169_v36 = vld [vmem:[#allocation2 + $0x468] sm:$0xff]  }
  0xa7   :  { %13364 = vmatprep.subr.bf16.mxu1 %v14102_v37  ;;  %v14170_v37 = vld [vmem:[#allocation2 + $0x4e8] sm:$0xff]  }
  0xa9   :  { %13343 = vmatpush3.bf16.msra.mxu0 %v14103_v38  ;;  %v14171_v38 = vld [vmem:[#allocation2 + $0x428] sm:$0xff]  }
  0xaa   :  { %13365 = vmatpush3.bf16.msra.mxu1 %v14104_v39  ;;  %13372 = vmatprep.subr.bf16.mxu0 %v14111_v44  ;;  %v14172_v39 = vld [vmem:[#allocation2 + $0x4a8] sm:$0xff]   ;;  %v14177_v44 = vld [vmem:[#allocation2 + $0x478] sm:$0xff]  }
  0xab   :  { %13394 = vmatprep.subr.bf16.mxu1 %v14112_v45  ;;  %v14178_v45 = vld [vmem:[#allocation2 + $0x4f8] sm:$0xff]  }
  0xac   :  { %5038 = vmatmul.mubr.bf16.vlgmr.msra.gmra.mrb[8].mxu0 %v14105_v40  ;;  %v14173_v40 = vld [vmem:[#allocation2 + $0x470] sm:$0xff]  }
  0xad   :  { %5079 = vmatmul.mubr.bf16.vlgmr.msra.gmra.mrb[8].mxu1 %v14108_v42  ;;  %13373 = vmatpush3.bf16.msra.mxu0 %v14113_v46  ;;  %v14175_v42 = vld [vmem:[#allocation2 + $0x430] sm:$0xff]   ;;  %v14179_v46 = vld [vmem:[#allocation2 + $0x438] sm:$0xff]  }
  0xae   :  { %13395 = vmatpush3.bf16.msra.mxu1 %v14114_v47  ;;  %13374 = vmatprep.subr.bf16.mxu0 %v14115_v48  ;;  %v14180_v47 = vld [vmem:[#allocation2 + $0x4b8] sm:$0xff]   ;;  %v14181_v48 = vld [vmem:[%s16334_s0 + $0x40] ss:$272 sps:$4 sm:$0xff]  }
  0xaf   :  { %13396 = vmatprep.subr.bf16.mxu1 %v14116_v49  ;;  %5119 = vmatprep.mubr.bf16.mxu0 %v14145_v13  ;;  %v14183_v49 = vld [vmem:[%s16334_s0 + $0x44] ss:$272 sps:$4 sm:$0xff]  }
  0xb0   :  { %5160 = vmatprep.mubr.bf16.mxu1 %v14148_v15  ;;  %v14212_v13 = vld [vmem:[#allocation2 + $0x5f0] sm:$0xff]  }
  0xb1   :  { %13375 = vmatpush3.bf16.msra.mxu0 %v14117_v50  ;;  %v14184_v50 = vld [vmem:[%s16334_s0 + $0x48] ss:$272 sps:$4 sm:$0xff]   ;;  %v14214_v15 = vld [vmem:[#allocation2 + $0x5b0] sm:$0xff]  }
  0xb2   :  { %13397 = vmatpush3.bf16.msra.mxu1 %v14118_v51  ;;  %13376 = vmatprep.subr.bf16.mxu0 %v14119_v52  ;;  %v14186_v51 = vld [vmem:[%s16334_s0 + $0x4c] ss:$272 sps:$4 sm:$0xff]   ;;  %v14187_v52 = vld [vmem:[#allocation2 + $0x540] sm:$0xff]  }
  0xb3   :  { %13398 = vmatprep.subr.bf16.mxu1 %v14120_v53  ;;  %v14188_v53 = vld [vmem:[#allocation2 + $0x5c0] sm:$0xff]  }
  0xb5   :  { %13377 = vmatpush3.bf16.msra.mxu0 %v14121_v54  ;;  %v14189_v54 = vld [vmem:[#allocation2 + $0x500] sm:$0xff]  }
  0xb6   :  { %13399 = vmatpush3.bf16.msra.mxu1 %v14122_v55  ;;  %13378 = vmatprep.subr.bf16.mxu0 %v14123_v56  ;;  %v14190_v55 = vld [vmem:[#allocation2 + $0x580] sm:$0xff]   ;;  %v14191_v56 = vld [vmem:[#allocation2 + $0x548] sm:$0xff]  }
  0xb7   :  { %13400 = vmatprep.subr.bf16.mxu1 %v14124_v57  ;;  %v14192_v57 = vld [vmem:[#allocation2 + $0x5c8] sm:$0xff]  }
  0xb9   :  { %13379 = vmatpush3.bf16.msra.mxu0 %v14125_v58  ;;  %v14193_v58 = vld [vmem:[#allocation2 + $0x508] sm:$0xff]  }
  0xba   :  { %13401 = vmatpush3.bf16.msra.mxu1 %v14126_v59  ;;  %13380 = vmatprep.subr.bf16.mxu0 %v14127_v60  ;;  %v14194_v59 = vld [vmem:[#allocation2 + $0x588] sm:$0xff]   ;;  %v14195_v60 = vld [vmem:[#allocation2 + $0x550] sm:$0xff]  }
  0xbb   :  { %13402 = vmatprep.subr.bf16.mxu1 %v14128_v61  ;;  %v14196_v61 = vld [vmem:[#allocation2 + $0x5d0] sm:$0xff]  }
  0xbd   :  { %13381 = vmatpush3.bf16.msra.mxu0 %v14129_v62  ;;  %v14197_v62 = vld [vmem:[#allocation2 + $0x510] sm:$0xff]  }
  0xbe   :  { %13403 = vmatpush3.bf16.msra.mxu1 %v14130_v63  ;;  %13382 = vmatprep.subr.bf16.mxu0 %v14131_v0  ;;  %v14198_v63 = vld [vmem:[#allocation2 + $0x590] sm:$0xff]   ;;  %v14199_v0 = vld [vmem:[#allocation2 + $0x558] sm:$0xff]  }
  0xbf   :  { %13404 = vmatprep.subr.bf16.mxu1 %v14132_v1  ;;  %v14200_v1 = vld [vmem:[#allocation2 + $0x5d8] sm:$0xff]  }
  0xc1   :  { %13383 = vmatpush3.bf16.msra.mxu0 %v14133_v2  ;;  %v14201_v2 = vld [vmem:[#allocation2 + $0x518] sm:$0xff]  }
  0xc2   :  { %13405 = vmatpush3.bf16.msra.mxu1 %v14134_v3  ;;  %13384 = vmatprep.subr.bf16.mxu0 %v14135_v4  ;;  %v14202_v3 = vld [vmem:[#allocation2 + $0x598] sm:$0xff]   ;;  %v14203_v4 = vld [vmem:[#allocation2 + $0x560] sm:$0xff]  }
  0xc3   :  { %13406 = vmatprep.subr.bf16.mxu1 %v14136_v5  ;;  %v14204_v5 = vld [vmem:[#allocation2 + $0x5e0] sm:$0xff]  }
  0xc5   :  { %13385 = vmatpush3.bf16.msra.mxu0 %v14137_v6  ;;  %v14205_v6 = vld [vmem:[#allocation2 + $0x520] sm:$0xff]  }
  0xc6   :  { %13407 = vmatpush3.bf16.msra.mxu1 %v14138_v7  ;;  %13386 = vmatprep.subr.bf16.mxu0 %v14139_v8  ;;  %v14206_v7 = vld [vmem:[#allocation2 + $0x5a0] sm:$0xff]   ;;  %v14207_v8 = vld [vmem:[#allocation2 + $0x568] sm:$0xff]  }
  0xc7   :  { %13408 = vmatprep.subr.bf16.mxu1 %v14140_v9  ;;  %v14208_v9 = vld [vmem:[#allocation2 + $0x5e8] sm:$0xff]  }
  0xc9   :  { %13387 = vmatpush3.bf16.msra.mxu0 %v14141_v10  ;;  %v14209_v10 = vld [vmem:[#allocation2 + $0x528] sm:$0xff]  }
  0xca   :  { %13409 = vmatpush3.bf16.msra.mxu1 %v14142_v11  ;;  %13416 = vmatprep.subr.bf16.mxu0 %v14149_v16  ;;  %v14210_v11 = vld [vmem:[#allocation2 + $0x5a8] sm:$0xff]   ;;  %v14215_v16 = vld [vmem:[#allocation2 + $0x578] sm:$0xff]  }
  0xcb   :  { %13438 = vmatprep.subr.bf16.mxu1 %v14150_v17  ;;  %v14216_v17 = vld [vmem:[#allocation2 + $0x5f8] sm:$0xff]  }
  0xcc   :  { %5120 = vmatmul.mubr.bf16.vlgmr.msra.gmra.mrb[12].mxu0 %v14143_v12  ;;  %v14211_v12 = vld [vmem:[#allocation2 + $0x570] sm:$0xff]  }
  0xcd   :  { %5161 = vmatmul.mubr.bf16.vlgmr.msra.gmra.mrb[12].mxu1 %v14146_v14  ;;  %13417 = vmatpush3.bf16.msra.mxu0 %v14151_v18  ;;  %v14213_v14 = vld [vmem:[#allocation2 + $0x530] sm:$0xff]   ;;  %v14217_v18 = vld [vmem:[#allocation2 + $0x538] sm:$0xff]  }
  0xce   :  { %13439 = vmatpush3.bf16.msra.mxu1 %v14152_v19  ;;  %13418 = vmatprep.subr.bf16.mxu0 %v14153_v20  ;;  %v14218_v19 = vld [vmem:[#allocation2 + $0x5b8] sm:$0xff]   ;;  %v14219_v20 = vld [vmem:[%s16334_s0 + $0x50] ss:$272 sps:$4 sm:$0xff]  }
  0xcf   :  { %13440 = vmatprep.subr.bf16.mxu1 %v14154_v21  ;;  %5201 = vmatprep.mubr.bf16.mxu0 %v14183_v49  ;;  %v14221_v21 = vld [vmem:[%s16334_s0 + $0x54] ss:$272 sps:$4 sm:$0xff]  }
  0xd0   :  { %5242 = vmatprep.mubr.bf16.mxu1 %v14186_v51  ;;  %v14250_v49 = vld [vmem:[#allocation2 + $0x6f0] sm:$0xff]  }
  0xd1   :  { %13419 = vmatpush3.bf16.msra.mxu0 %v14155_v22  ;;  %v14222_v22 = vld [vmem:[%s16334_s0 + $0x58] ss:$272 sps:$4 sm:$0xff]   ;;  %v14252_v51 = vld [vmem:[#allocation2 + $0x6b0] sm:$0xff]  }
  0xd2   :  { %13441 = vmatpush3.bf16.msra.mxu1 %v14156_v23  ;;  %13420 = vmatprep.subr.bf16.mxu0 %v14157_v24  ;;  %v14224_v23 = vld [vmem:[%s16334_s0 + $0x5c] ss:$272 sps:$4 sm:$0xff]   ;;  %v14225_v24 = vld [vmem:[#allocation2 + $0x640] sm:$0xff]  }
  0xd3   :  { %13442 = vmatprep.subr.bf16.mxu1 %v14158_v25  ;;  %v14226_v25 = vld [vmem:[#allocation2 + $0x6c0] sm:$0xff]  }
  0xd5   :  { %13421 = vmatpush3.bf16.msra.mxu0 %v14159_v26  ;;  %v14227_v26 = vld [vmem:[#allocation2 + $0x600] sm:$0xff]  }
  0xd6   :  { %13443 = vmatpush3.bf16.msra.mxu1 %v14160_v27  ;;  %13422 = vmatprep.subr.bf16.mxu0 %v14161_v28  ;;  %v14228_v27 = vld [vmem:[#allocation2 + $0x680] sm:$0xff]   ;;  %v14229_v28 = vld [vmem:[#allocation2 + $0x648] sm:$0xff]  }
  0xd7   :  { %13444 = vmatprep.subr.bf16.mxu1 %v14162_v29  ;;  %v14230_v29 = vld [vmem:[#allocation2 + $0x6c8] sm:$0xff]  }
  0xd9   :  { %13423 = vmatpush3.bf16.msra.mxu0 %v14163_v30  ;;  %v14231_v30 = vld [vmem:[#allocation2 + $0x608] sm:$0xff]  }
  0xda   :  { %13445 = vmatpush3.bf16.msra.mxu1 %v14164_v31  ;;  %13424 = vmatprep.subr.bf16.mxu0 %v14165_v32  ;;  %v14232_v31 = vld [vmem:[#allocation2 + $0x688] sm:$0xff]   ;;  %v14233_v32 = vld [vmem:[#allocation2 + $0x650] sm:$0xff]  }
  0xdb   :  { %13446 = vmatprep.subr.bf16.mxu1 %v14166_v33  ;;  %v14234_v33 = vld [vmem:[#allocation2 + $0x6d0] sm:$0xff]  }
  0xdd   :  { %13425 = vmatpush3.bf16.msra.mxu0 %v14167_v34  ;;  %v14235_v34 = vld [vmem:[#allocation2 + $0x610] sm:$0xff]  }
  0xde   :  { %13447 = vmatpush3.bf16.msra.mxu1 %v14168_v35  ;;  %13426 = vmatprep.subr.bf16.mxu0 %v14169_v36  ;;  %v14236_v35 = vld [vmem:[#allocation2 + $0x690] sm:$0xff]   ;;  %v14237_v36 = vld [vmem:[#allocation2 + $0x658] sm:$0xff]  }
  0xdf   :  { %13448 = vmatprep.subr.bf16.mxu1 %v14170_v37  ;;  %v14238_v37 = vld [vmem:[#allocation2 + $0x6d8] sm:$0xff]  }
  0xe1   :  { %13427 = vmatpush3.bf16.msra.mxu0 %v14171_v38  ;;  %v14239_v38 = vld [vmem:[#allocation2 + $0x618] sm:$0xff]  }
  0xe2   :  { %13449 = vmatpush3.bf16.msra.mxu1 %v14172_v39  ;;  %13428 = vmatprep.subr.bf16.mxu0 %v14173_v40  ;;  %v14240_v39 = vld [vmem:[#allocation2 + $0x698] sm:$0xff]   ;;  %v14241_v40 = vld [vmem:[#allocation2 + $0x660] sm:$0xff]  }
  0xe3   :  { %13450 = vmatprep.subr.bf16.mxu1 %v14174_v41  ;;  %v14242_v41 = vld [vmem:[#allocation2 + $0x6e0] sm:$0xff]  }
  0xe5   :  { %13429 = vmatpush3.bf16.msra.mxu0 %v14175_v42  ;;  %v14243_v42 = vld [vmem:[#allocation2 + $0x620] sm:$0xff]  }
  0xe6   :  { %13451 = vmatpush3.bf16.msra.mxu1 %v14176_v43  ;;  %13430 = vmatprep.subr.bf16.mxu0 %v14177_v44  ;;  %v14244_v43 = vld [vmem:[#allocation2 + $0x6a0] sm:$0xff]   ;;  %v14245_v44 = vld [vmem:[#allocation2 + $0x668] sm:$0xff]  }
  0xe7   :  { %13452 = vmatprep.subr.bf16.mxu1 %v14178_v45  ;;  %v14246_v45 = vld [vmem:[#allocation2 + $0x6e8] sm:$0xff]  }
  0xe9   :  { %13431 = vmatpush3.bf16.msra.mxu0 %v14179_v46  ;;  %v14247_v46 = vld [vmem:[#allocation2 + $0x628] sm:$0xff]  }
  0xea   :  { %13453 = vmatpush3.bf16.msra.mxu1 %v14180_v47  ;;  %13460 = vmatprep.subr.bf16.mxu0 %v14187_v52  ;;  %v14248_v47 = vld [vmem:[#allocation2 + $0x6a8] sm:$0xff]   ;;  %v14253_v52 = vld [vmem:[#allocation2 + $0x678] sm:$0xff]  }
  0xeb   :  { %13482 = vmatprep.subr.bf16.mxu1 %v14188_v53  ;;  %v14254_v53 = vld [vmem:[#allocation2 + $0x6f8] sm:$0xff]  }
  0xec   :  { %5202 = vmatmul.mubr.bf16.vlgmr.msra.gmra.mrb[16].mxu0 %v14181_v48  ;;  %v14249_v48 = vld [vmem:[#allocation2 + $0x670] sm:$0xff]  }
  0xed   :  { %5243 = vmatmul.mubr.bf16.vlgmr.msra.gmra.mrb[16].mxu1 %v14184_v50  ;;  %13461 = vmatpush3.bf16.msra.mxu0 %v14189_v54  ;;  %v14251_v50 = vld [vmem:[#allocation2 + $0x630] sm:$0xff]   ;;  %v14255_v54 = vld [vmem:[#allocation2 + $0x638] sm:$0xff]  }
  0xee   :  { %13483 = vmatpush3.bf16.msra.mxu1 %v14190_v55  ;;  %13462 = vmatprep.subr.bf16.mxu0 %v14191_v56  ;;  %v14256_v55 = vld [vmem:[#allocation2 + $0x6b8] sm:$0xff]   ;;  %v14257_v56 = vld [vmem:[%s16334_s0 + $0x60] ss:$272 sps:$4 sm:$0xff]  }
  0xef   :  { %13484 = vmatprep.subr.bf16.mxu1 %v14192_v57  ;;  %5283 = vmatprep.mubr.bf16.mxu0 %v14221_v21  ;;  %v14259_v57 = vld [vmem:[%s16334_s0 + $0x64] ss:$272 sps:$4 sm:$0xff]   ;;  %v14276_v21 = vld [vmem:[#allocation2 + $0x7d8] sm:$0xff]  }
  0xf0   :  { %5324 = vmatprep.mubr.bf16.mxu1 %v14224_v23  ;;  %v14278_v23 = vld [vmem:[#allocation2 + $0x798] sm:$0xff]  }
  0xf1   :  { %13463 = vmatpush3.bf16.msra.mxu0 %v14193_v58  ;;  %v14260_v58 = vld [vmem:[%s16334_s0 + $0x68] ss:$272 sps:$4 sm:$0xff]  }
  0xf2   :  { %13485 = vmatpush3.bf16.msra.mxu1 %v14194_v59  ;;  %13464 = vmatprep.subr.bf16.mxu0 %v14195_v60  ;;  %v14262_v59 = vld [vmem:[%s16334_s0 + $0x6c] ss:$272 sps:$4 sm:$0xff]   ;;  %v14263_v60 = vld [vmem:[#allocation2 + $0x740] sm:$0xff]  }
  0xf3   :  { %13486 = vmatprep.subr.bf16.mxu1 %v14196_v61  ;;  %v14264_v61 = vld [vmem:[#allocation2 + $0x7c0] sm:$0xff]  }
  0xf5   :  { %13465 = vmatpush3.bf16.msra.mxu0 %v14197_v62  ;;  %v14265_v62 = vld [vmem:[#allocation2 + $0x700] sm:$0xff]  }
  0xf6   :  { %13487 = vmatpush3.bf16.msra.mxu1 %v14198_v63  ;;  %13466 = vmatprep.subr.bf16.mxu0 %v14199_v0  ;;  %v14266_v63 = vld [vmem:[#allocation2 + $0x780] sm:$0xff]   ;;  %v14267_v0 = vld [vmem:[#allocation2 + $0x748] sm:$0xff]  }
  0xf7   :  { %13488 = vmatprep.subr.bf16.mxu1 %v14200_v1 }
  0xf9   :  { %13467 = vmatpush3.bf16.msra.mxu0 %v14201_v2  ;;  %v14268_v2 = vld [vmem:[#allocation2 + $0x7c8] sm:$0xff]  }
  0xfa   :  { %13489 = vmatpush3.bf16.msra.mxu1 %v14202_v3  ;;  %13468 = vmatprep.subr.bf16.mxu0 %v14203_v4  ;;  %v14269_v4 = vld [vmem:[#allocation2 + $0x708] sm:$0xff]  }
  0xfb   :  { %13490 = vmatprep.subr.bf16.mxu1 %v14204_v5 }
  0xfd   :  { %13469 = vmatpush3.bf16.msra.mxu0 %v14205_v6  ;;  %v14270_v6 = vld [vmem:[#allocation2 + $0x788] sm:$0xff]  }
  0xfe   :  { %13491 = vmatpush3.bf16.msra.mxu1 %v14206_v7  ;;  %13470 = vmatprep.subr.bf16.mxu0 %v14207_v8 }
  0xff   :  { %13492 = vmatprep.subr.bf16.mxu1 %v14208_v9  ;;  %v14271_v9 = vld [vmem:[#allocation2 + $0x750] sm:$0xff]  }
 0x101   :  { %13471 = vmatpush3.bf16.msra.mxu0 %v14209_v10 }
 0x102   :  { %13493 = vmatpush3.bf16.msra.mxu1 %v14210_v11  ;;  %13472 = vmatprep.subr.bf16.mxu0 %v14211_v12  ;;  %v14272_v12 = vld [vmem:[#allocation2 + $0x7d0] sm:$0xff]  }
 0x103   :  { %13494 = vmatprep.subr.bf16.mxu1 %v14212_v13 }
 0x105   :  { %13473 = vmatpush3.bf16.msra.mxu0 %v14213_v14  ;;  %v14273_v14 = vld [vmem:[#allocation2 + $0x710] sm:$0xff]  }
 0x106   :  { %13495 = vmatpush3.bf16.msra.mxu1 %v14214_v15  ;;  %13474 = vmatprep.subr.bf16.mxu0 %v14215_v16  ;;  %v14274_v16 = vld [vmem:[#allocation2 + $0x790] sm:$0xff]  }
 0x107   :  { %13496 = vmatprep.subr.bf16.mxu1 %v14216_v17 }
 0x109   :  { %13475 = vmatpush3.bf16.msra.mxu0 %v14217_v18 }
 0x10a   :  { %13497 = vmatpush3.bf16.msra.mxu1 %v14218_v19  ;;  %13504 = vmatprep.subr.bf16.mxu0 %v14225_v24  ;;  %v14275_v19 = vld [vmem:[#allocation2 + $0x758] sm:$0xff]   ;;  %v14279_v24 = vld [vmem:[#allocation2 + $0x760] sm:$0xff]  }
 0x10b   :  { %13526 = vmatprep.subr.bf16.mxu1 %v14226_v25  ;;  %v14280_v25 = vld [vmem:[#allocation2 + $0x7e0] sm:$0xff]  }
 0x10c   :  { %5284 = vmatmul.mubr.bf16.vlgmr.msra.gmra.mrb[20].mxu0 %v14219_v20 }
 0x10d   :  { %5325 = vmatmul.mubr.bf16.vlgmr.msra.gmra.mrb[20].mxu1 %v14222_v22  ;;  %13505 = vmatpush3.bf16.msra.mxu0 %v14227_v26  ;;  %v14277_v22 = vld [vmem:[#allocation2 + $0x718] sm:$0xff]   ;;  %v14281_v26 = vld [vmem:[#allocation2 + $0x720] sm:$0xff]  }
 0x10e   :  { %13527 = vmatpush3.bf16.msra.mxu1 %v14228_v27  ;;  %13506 = vmatprep.subr.bf16.mxu0 %v14229_v28  ;;  %v14282_v27 = vld [vmem:[#allocation2 + $0x7a0] sm:$0xff]  }
 0x10f   :  { %13528 = vmatprep.subr.bf16.mxu1 %v14230_v29  ;;  %5365 = vmatprep.mubr.bf16.mxu0 %v14259_v57  ;;  %v11947_v28 = vld [vmem:[#allocation4] ss:$0 sm:$0xff] }
 0x110   :  { %5406 = vmatprep.mubr.bf16.mxu1 %v14262_v59  ;;  %v14307_v59 = vld [vmem:[#allocation2 + $0x808] sm:$0xff]  }
 0x111   :  { %13507 = vmatpush3.bf16.msra.mxu0 %v14231_v30  ;;  %v14283_v30 = vld [vmem:[#allocation2 + $0x768] sm:$0xff]  }
 0x112   :  { %13529 = vmatpush3.bf16.msra.mxu1 %v14232_v31  ;;  %13508 = vmatprep.subr.bf16.mxu0 %v14233_v32  ;;  %v14284_v32 = vld [vmem:[#allocation2 + $0x7e8] sm:$0xff]  }
 0x113   :  { %13530 = vmatprep.subr.bf16.mxu1 %v14234_v33 }
 0x115   :  { %13509 = vmatpush3.bf16.msra.mxu0 %v14235_v34  ;;  %v14285_v34 = vld [vmem:[#allocation2 + $0x728] sm:$0xff]  }
 0x116   :  { %13531 = vmatpush3.bf16.msra.mxu1 %v14236_v35  ;;  %13510 = vmatprep.subr.bf16.mxu0 %v14237_v36  ;;  %v14286_v36 = vld [vmem:[#allocation2 + $0x7a8] sm:$0xff]  }
 0x117   :  { %13532 = vmatprep.subr.bf16.mxu1 %v14238_v37  ;;  %v14287_v37 = vld [vmem:[#allocation2 + $0x770] sm:$0xff]  }
 0x119   :  { %13511 = vmatpush3.bf16.msra.mxu0 %v14239_v38  ;;  %v14288_v38 = vld [vmem:[#allocation2 + $0x7f0] sm:$0xff]  }
 0x11a   :  { %13533 = vmatpush3.bf16.msra.mxu1 %v14240_v39  ;;  %13512 = vmatprep.subr.bf16.mxu0 %v14241_v40  ;;  %v14289_v39 = vld [vmem:[#allocation2 + $0x730] sm:$0xff]  }
 0x11b   :  { %13534 = vmatprep.subr.bf16.mxu1 %v14242_v41  ;;  %v14290_v40 = vld [vmem:[#allocation2 + $0x7b0] sm:$0xff]   ;;  %v14291_v41 = vld [vmem:[#allocation2 + $0x778] sm:$0xff]  }
 0x11d   :  { %13513 = vmatpush3.bf16.msra.mxu0 %v14243_v42  ;;  %v14292_v42 = vld [vmem:[#allocation2 + $0x7f8] sm:$0xff]  }
 0x11e   :  { %13535 = vmatpush3.bf16.msra.mxu1 %v14244_v43  ;;  %13514 = vmatprep.subr.bf16.mxu0 %v14245_v44  ;;  %v14293_v43 = vld [vmem:[#allocation2 + $0x738] sm:$0xff]  }
 0x11f   :  { %13536 = vmatprep.subr.bf16.mxu1 %v14246_v45  ;;  %v14294_v44 = vld [vmem:[#allocation2 + $0x7b8] sm:$0xff]   ;;  %v14295_v45 = vld [vmem:[%s16334_s0 + $0x70] ss:$272 sps:$4 sm:$0xff]  }
 0x121   :  { %13515 = vmatpush3.bf16.msra.mxu0 %v14247_v46  ;;  %v14297_v46 = vld [vmem:[%s16334_s0 + $0x74] ss:$272 sps:$4 sm:$0xff]  }
 0x122   :  { %13537 = vmatpush3.bf16.msra.mxu1 %v14248_v47  ;;  %13516 = vmatprep.subr.bf16.mxu0 %v14249_v48  ;;  %v14298_v47 = vld [vmem:[%s16334_s0 + $0x78] ss:$272 sps:$4 sm:$0xff]   ;;  %v14300_v48 = vld [vmem:[%s16334_s0 + $0x7c] ss:$272 sps:$4 sm:$0xff]  }
 0x123   :  { %13538 = vmatprep.subr.bf16.mxu1 %v14250_v49  ;;  %v14301_v49 = vld [vmem:[#allocation2 + $0x840] sm:$0xff]  }
 0x125   :  { %13517 = vmatpush3.bf16.msra.mxu0 %v14251_v50  ;;  %v14302_v50 = vld [vmem:[#allocation2 + $0x8c0] sm:$0xff]  }
 0x126   :  { %13539 = vmatpush3.bf16.msra.mxu1 %v14252_v51  ;;  %13518 = vmatprep.subr.bf16.mxu0 %v14253_v52  ;;  %v14303_v51 = vld [vmem:[#allocation2 + $0x800] sm:$0xff]  }
 0x127   :  { %13540 = vmatprep.subr.bf16.mxu1 %v14254_v53  ;;  %v14304_v52 = vld [vmem:[#allocation2 + $0x880] sm:$0xff]  }
 0x129   :  { %13519 = vmatpush3.bf16.msra.mxu0 %v14255_v54  ;;  %v14305_v54 = vld [vmem:[#allocation2 + $0x848] sm:$0xff]  }
 0x12a   :  { %13541 = vmatpush3.bf16.msra.mxu1 %v14256_v55  ;;  %13548 = vmatprep.subr.bf16.mxu0 %v14263_v60 }
 0x12b   :  { %13570 = vmatprep.subr.bf16.mxu1 %v14264_v61  ;;  %v14308_v61 = vld [vmem:[#allocation2 + $0x888] sm:$0xff]  }
 0x12c   :  { %5366 = vmatmul.mubr.bf16.vlgmr.msra.gmra.mrb[24].mxu0 %v14257_v56  ;;  %v14306_v56 = vld [vmem:[#allocation2 + $0x8c8] sm:$0xff]  }
 0x12d   :  { %5407 = vmatmul.mubr.bf16.vlgmr.msra.gmra.mrb[24].mxu1 %v14260_v58  ;;  %13549 = vmatpush3.bf16.msra.mxu0 %v14265_v62 }
 0x12e   :  { %13571 = vmatpush3.bf16.msra.mxu1 %v14266_v63  ;;  %13550 = vmatprep.subr.bf16.mxu0 %v14267_v0 }
 0x12f   :  { %13572 = vmatprep.subr.bf16.mxu1 %v14268_v2  ;;  %5447 = vmatprep.mubr.bf16.mxu0 %v14297_v46  ;;  %v14345_v46 = vld [vmem:[#allocation2 + $0x908] sm:$0xff]  }
 0x130   :  { %5488 = vmatprep.mubr.bf16.mxu1 %v14300_v48 }
 0x131   :  { %13551 = vmatpush3.bf16.msra.mxu0 %v14269_v4 }
 0x132   :  { %13573 = vmatpush3.bf16.msra.mxu1 %v14270_v6  ;;  %13552 = vmatprep.subr.bf16.mxu0 %v14271_v9  ;;  %v14311_v6 = vld [vmem:[#allocation2 + $0x810] sm:$0xff]  }
 0x133   :  { %13574 = vmatprep.subr.bf16.mxu1 %v14272_v12  ;;  %v14312_v9 = vld [vmem:[#allocation2 + $0x890] sm:$0xff]  }
 0x135   :  { %13553 = vmatpush3.bf16.msra.mxu0 %v14273_v14  ;;  %v14315_v14 = vld [vmem:[#allocation2 + $0x818] sm:$0xff]  }
 0x136   :  { %13575 = vmatpush3.bf16.msra.mxu1 %v14274_v16  ;;  %13554 = vmatprep.subr.bf16.mxu0 %v14275_v19  ;;  %v14316_v16 = vld [vmem:[#allocation2 + $0x898] sm:$0xff]   ;;  %v14319_v19 = vld [vmem:[#allocation2 + $0x820] sm:$0xff]  }
 0x137   :  { %13576 = vmatprep.subr.bf16.mxu1 %v14276_v21  ;;  %v14321_v21 = vld [vmem:[#allocation2 + $0x868] sm:$0xff]  }
 0x139   :  { %13555 = vmatpush3.bf16.msra.mxu0 %v14277_v22  ;;  %v14322_v22 = vld [vmem:[#allocation2 + $0x8e8] sm:$0xff]  }
 0x13a   :  { %13577 = vmatpush3.bf16.msra.mxu1 %v14278_v23  ;;  %13556 = vmatprep.subr.bf16.mxu0 %v14279_v24  ;;  %v14323_v23 = vld [vmem:[#allocation2 + $0x828] sm:$0xff]  }
 0x13b   :  { %13578 = vmatprep.subr.bf16.mxu1 %v14280_v25  ;;  %v14324_v24 = vld [vmem:[#allocation2 + $0x8a8] sm:$0xff]   ;;  %v14325_v25 = vld [vmem:[#allocation2 + $0x870] sm:$0xff]  }
 0x13d   :  { %13557 = vmatpush3.bf16.msra.mxu0 %v14281_v26  ;;  %v14326_v26 = vld [vmem:[#allocation2 + $0x8f0] sm:$0xff]  }
 0x13e   :  { %13579 = vmatpush3.bf16.msra.mxu1 %v14282_v27  ;;  %13558 = vmatprep.subr.bf16.mxu0 %v14283_v30  ;;  %v14327_v27 = vld [vmem:[#allocation2 + $0x830] sm:$0xff]   ;;  %v14330_v30 = vld [vmem:[#allocation2 + $0x8f8] sm:$0xff]  }
 0x13f   :  { %v13256_v1 = vpop.f32.mrb[0].mxu0  ;;  %13580 = vmatprep.subr.bf16.mxu1 %v14284_v32  ;;  %v14332_v32 = vld [vmem:[#allocation2 + $0x8b8] sm:$0xff]  }
 0x140   :  { %v13278_v3 = vpop.f32.mrb[0].mxu1  ;;  %v13257_v5 = vpop.f32.mrb[1].mxu0 }
 0x141   :  { %v13258_v7 = vadd.f32 %v13257_v5, %v13256_v1  ;;  %v13279_v8 = vpop.f32.mrb[1].mxu1  ;;  %v13259_v11 = vpop.f32.mrb[2].mxu0  ;;  %13559 = vmatpush3.bf16.msra.mxu0 %v14285_v34  ;;  %v14309_v1 = vld [vmem:[#allocation2 + $0x850] sm:$0xff]  }
 0x142   :  { %v13280_v10 = vadd.f32 %v13279_v8, %v13278_v3  ;;  %v13281_v13 = vpop.f32.mrb[2].mxu1  ;;  %v13260_v15 = vpop.f32.mrb[3].mxu0  ;;  %13581 = vmatpush3.bf16.msra.mxu1 %v14286_v36  ;;  %13560 = vmatprep.subr.bf16.mxu0 %v14287_v37  ;;  %v14310_v3 = vld [vmem:[#allocation2 + $0x8d0] sm:$0xff]   ;;  %v14338_v36 = vld [vmem:[%s16334_s0 + $0x8c] ss:$272 sps:$4 sm:$0xff]   ;;  %v14339_v37 = vld [vmem:[#allocation2 + $0x940] sm:$0xff]  }
 0x143   :  { %v13261_v17 = vadd.f32 %v13260_v15, %v13259_v11  ;;  %v13282_v18 = vpop.f32.mrb[3].mxu1  ;;  %v4876_v29 = vadd.f32 %v13258_v7, %v11947_v28  ;;  %13582 = vmatprep.subr.bf16.mxu1 %v14288_v38  ;;  %v14313_v11 = vld [vmem:[#allocation2 + $0x858] sm:$0xff]   ;;  %v14335_v34 = vld [vmem:[%s16334_s0 + $0x84] ss:$272 sps:$4 sm:$0xff]  }
 0x144   :  { %v13283_v20 = vadd.f32 %v13282_v18, %v13281_v13  ;;  %v14314_v13 = vld [vmem:[#allocation2 + $0x8d8] sm:$0xff]   ;;  %v14318_v18 = vld [vmem:[#allocation2 + $0x8e0] sm:$0xff]  }
 0x145   :  { %v4879_v31 = vadd.f32 %v13261_v17, %v11947_v28  ;;  %v4917_v33 = vadd.f32 %v13280_v10, %v4876_v29  ;;  %13561 = vmatpush3.bf16.msra.mxu0 %v14289_v39  ;;  %v14317_v17 = vld [vmem:[#allocation2 + $0x860] sm:$0xff]   ;;  %v14328_v28 = vld [vmem:[#allocation2 + $0x8b0] sm:$0xff]   ;;  %v14329_v29 = vld [vmem:[#allocation2 + $0x878] sm:$0xff]  }
 0x146   :  { %13583 = vmatpush3.bf16.msra.mxu1 %v14290_v40  ;;  %13562 = vmatprep.subr.bf16.mxu0 %v14291_v41  ;;  %v14340_v38 = vld [vmem:[#allocation2 + $0x9c0] sm:$0xff]  }
 0x147   :  { %v15736_v35 = vadd.f32 %v13283_v20, %v4879_v31  ;;  %13584 = vmatprep.subr.bf16.mxu1 %v14292_v42  ;;  %v14320_v20 = vld [vmem:[#allocation2 + $0x8a0] sm:$0xff]   ;;  %v14331_v31 = vld [vmem:[#allocation2 + $0x838] sm:$0xff]   ;;  %v14343_v42 = vld [vmem:[#allocation2 + $0x948] sm:$0xff]  }
 0x148   :  { %v14341_v39 = vld [vmem:[#allocation2 + $0x900] sm:$0xff]  }
 0x149   :  { %13563 = vmatpush3.bf16.msra.mxu0 %v14293_v43  ;;  %v14342_v40 = vld [vmem:[#allocation2 + $0x980] sm:$0xff]  }
 0x14a   :  { %13585 = vmatpush3.bf16.msra.mxu1 %v14294_v44  ;;  %13592 = vmatprep.subr.bf16.mxu0 %v14301_v49  ;;  %v14344_v44 = vld [vmem:[#allocation2 + $0x9c8] sm:$0xff]  }
 0x14b   :  { %13614 = vmatprep.subr.bf16.mxu1 %v14302_v50  ;;  %v14346_v49 = vld [vmem:[#allocation2 + $0x988] sm:$0xff]  }
 0x14c   :  { %5448 = vmatmul.mubr.bf16.vlgmr.msra.gmra.mrb[28].mxu0 %v14295_v45 }
 0x14d   :  { %5489 = vmatmul.mubr.bf16.vlgmr.msra.gmra.mrb[28].mxu1 %v14298_v47  ;;  %13593 = vmatpush3.bf16.msra.mxu0 %v14303_v51 }
 0x14e   :  { %13615 = vmatpush3.bf16.msra.mxu1 %v14304_v52  ;;  %13594 = vmatprep.subr.bf16.mxu0 %v14305_v54  ;;  %v14347_v52 = vld [vmem:[#allocation2 + $0x950] sm:$0xff]  }
 0x14f   :  { %13616 = vmatprep.subr.bf16.mxu1 %v14306_v56  ;;  %5529 = vmatprep.mubr.bf16.mxu0 %v14335_v34 }
 0x150   :  { %5570 = vmatprep.mubr.bf16.mxu1 %v14338_v36 }
 0x151   :  { %13595 = vmatpush3.bf16.msra.mxu0 %v14307_v59 }
 0x152   :  { %13617 = vmatpush3.bf16.msra.mxu1 %v14308_v61  ;;  %13596 = vmatprep.subr.bf16.mxu0 %v14309_v1  ;;  %v14350_v61 = vld [vmem:[#allocation2 + $0x990] sm:$0xff]   ;;  %v14352_v1 = vld [vmem:[#allocation2 + $0x9d8] sm:$0xff]  }
 0x153   :  { %13618 = vmatprep.subr.bf16.mxu1 %v14310_v3 }
 0x155   :  { %13597 = vmatpush3.bf16.msra.mxu0 %v14311_v6  ;;  %v14356_v6 = vld [vmem:[#allocation2 + $0x9e0] sm:$0xff]  }
 0x156   :  { %13619 = vmatpush3.bf16.msra.mxu1 %v14312_v9  ;;  %13598 = vmatprep.subr.bf16.mxu0 %v14313_v11  ;;  %v14359_v9 = vld [vmem:[#allocation2 + $0x968] sm:$0xff]  }
 0x157   :  { %13620 = vmatprep.subr.bf16.mxu1 %v14314_v13  ;;  %v14361_v11 = vld [vmem:[#allocation2 + $0x928] sm:$0xff]   ;;  %v14363_v13 = vld [vmem:[#allocation2 + $0x970] sm:$0xff]  }
 0x159   :  { %13599 = vmatpush3.bf16.msra.mxu0 %v14315_v14  ;;  %v14364_v14 = vld [vmem:[#allocation2 + $0x9f0] sm:$0xff]  }
 0x15a   :  { %13621 = vmatpush3.bf16.msra.mxu1 %v14316_v16  ;;  %13600 = vmatprep.subr.bf16.mxu0 %v14317_v17  ;;  %v14366_v16 = vld [vmem:[#allocation2 + $0x9b0] sm:$0xff]   ;;  %v14367_v17 = vld [vmem:[#allocation2 + $0x978] sm:$0xff]  }
 0x15b   :  { %13622 = vmatprep.subr.bf16.mxu1 %v14318_v18  ;;  %v14368_v18 = vld [vmem:[#allocation2 + $0x9f8] sm:$0xff]  }
 0x15d   :  { %13601 = vmatpush3.bf16.msra.mxu0 %v14319_v19  ;;  %v14369_v19 = vld [vmem:[#allocation2 + $0x938] sm:$0xff]  }
 0x15e   :  { %13623 = vmatpush3.bf16.msra.mxu1 %v14320_v20  ;;  %13602 = vmatprep.subr.bf16.mxu0 %v14321_v21  ;;  %v14370_v20 = vld [vmem:[#allocation2 + $0x9b8] sm:$0xff]   ;;  %v14371_v21 = vld [vmem:[%s16334_s0 + $0x90] ss:$272 sps:$4 sm:$0xff]  }
 0x15f   :  { %v13300_v53 = vpop.f32.mrb[4].mxu0  ;;  %13624 = vmatprep.subr.bf16.mxu1 %v14322_v22  ;;  %v14373_v22 = vld [vmem:[%s16334_s0 + $0x94] ss:$272 sps:$4 sm:$0xff]  }
 0x160   :  { %v13301_v55 = vpop.f32.mrb[5].mxu0  ;;  %v13322_v57 = vpop.f32.mrb[4].mxu1 }
 0x161   :  { %v13302_v58 = vadd.f32 %v13301_v55, %v13300_v53  ;;  %v13323_v60 = vpop.f32.mrb[5].mxu1  ;;  %v13303_v0 = vpop.f32.mrb[6].mxu0  ;;  %13603 = vmatpush3.bf16.msra.mxu0 %v14323_v23  ;;  %v14348_v55 = vld [vmem:[#allocation2 + $0x9d0] sm:$0xff]   ;;  %v14374_v23 = vld [vmem:[%s16334_s0 + $0x98] ss:$272 sps:$4 sm:$0xff]  }
 0x162   :  { %v13324_v63 = vadd.f32 %v13323_v60, %v13322_v57  ;;  %v13325_v2 = vpop.f32.mrb[6].mxu1  ;;  %v13304_v5 = vpop.f32.mrb[7].mxu0  ;;  %13625 = vmatpush3.bf16.msra.mxu1 %v14324_v24  ;;  %13604 = vmatprep.subr.bf16.mxu0 %v14325_v25  ;;  %v14349_v57 = vld [vmem:[#allocation2 + $0x910] sm:$0xff]   ;;  %v14376_v24 = vld [vmem:[%s16334_s0 + $0x9c] ss:$272 sps:$4 sm:$0xff]   ;;  %v14377_v25 = vld [vmem:[#allocation2 + $0xa40] sm:$0xff]  }
 0x163   :  { %v4958_v62 = vadd.f32 %v13302_v58, %v4917_v33  ;;  %v13305_v7 = vadd.f32 %v13304_v5, %v13303_v0  ;;  %v13326_v8 = vpop.f32.mrb[7].mxu1  ;;  %13626 = vmatprep.subr.bf16.mxu1 %v14326_v26  ;;  %v14333_v33 = vld [vmem:[%s16334_s0 + $0x80] ss:$272 sps:$4 sm:$0xff]  }
 0x164   :  { %v13327_v10 = vadd.f32 %v13326_v8, %v13325_v2  ;;  %v14353_v2 = vld [vmem:[#allocation2 + $0x918] sm:$0xff]   ;;  %v14355_v5 = vld [vmem:[#allocation2 + $0x960] sm:$0xff]  }
 0x165   :  { %v15750_v4 = vadd.f32 %v13324_v63, %v4958_v62  ;;  %v4961_v12 = vadd.f32 %v13305_v7, %v15736_v35  ;;  %13605 = vmatpush3.bf16.msra.mxu0 %v14327_v27  ;;  %v14336_v35 = vld [vmem:[%s16334_s0 + $0x88] ss:$272 sps:$4 sm:$0xff]   ;;  %v14357_v7 = vld [vmem:[#allocation2 + $0x920] sm:$0xff]  }
 0x166   :  { %13627 = vmatpush3.bf16.msra.mxu1 %v14328_v28  ;;  %13606 = vmatprep.subr.bf16.mxu0 %v14329_v29  ;;  %v14351_v63 = vld [vmem:[#allocation2 + $0x958] sm:$0xff]   ;;  %v14358_v8 = vld [vmem:[#allocation2 + $0x9a0] sm:$0xff]   ;;  %v14381_v29 = vld [vmem:[#allocation2 + $0xa48] sm:$0xff]  }
 0x167   :  { %v15753_v15 = vadd.f32 %v13327_v10, %v4961_v12  ;;  %13628 = vmatprep.subr.bf16.mxu1 %v14330_v30  ;;  %v14360_v10 = vld [vmem:[#allocation2 + $0x9e8] sm:$0xff]   ;;  %v14378_v26 = vld [vmem:[#allocation2 + $0xac0] sm:$0xff]  }
 0x168   :  { %v14362_v12 = vld [vmem:[#allocation2 + $0x9a8] sm:$0xff]   ;;  %v14379_v27 = vld [vmem:[#allocation2 + $0xa00] sm:$0xff]  }
 0x169   :  { %13607 = vmatpush3.bf16.msra.mxu0 %v14331_v31  ;;  %v14380_v28 = vld [vmem:[#allocation2 + $0xa80] sm:$0xff]   ;;  %v14382_v31 = vld [vmem:[#allocation2 + $0xac8] sm:$0xff]  }
 0x16a   :  { %13629 = vmatpush3.bf16.msra.mxu1 %v14332_v32  ;;  %13636 = vmatprep.subr.bf16.mxu0 %v14339_v37 }
 0x16b   :  { %13658 = vmatprep.subr.bf16.mxu1 %v14340_v38  ;;  %v14385_v38 = vld [vmem:[#allocation2 + $0xa50] sm:$0xff]  }
 0x16c   :  { %5530 = vmatmul.mubr.bf16.vlgmr.msra.gmra.mrb[32].mxu0 %v14333_v33  ;;  %v14383_v33 = vld [vmem:[#allocation2 + $0xa08] sm:$0xff]  }
 0x16d   :  { %5571 = vmatmul.mubr.bf16.vlgmr.msra.gmra.mrb[32].mxu1 %v14336_v35  ;;  %13637 = vmatpush3.bf16.msra.mxu0 %v14341_v39  ;;  %v14384_v35 = vld [vmem:[#allocation2 + $0xa88] sm:$0xff]  }
 0x16e   :  { %13659 = vmatpush3.bf16.msra.mxu1 %v14342_v40  ;;  %13638 = vmatprep.subr.bf16.mxu0 %v14343_v42 }
 0x16f   :  { %13660 = vmatprep.subr.bf16.mxu1 %v14344_v44  ;;  %5611 = vmatprep.mubr.bf16.mxu0 %v14373_v22  ;;  %v14387_v44 = vld [vmem:[#allocation2 + $0xa10] sm:$0xff]  }
 0x170   :  { %5652 = vmatprep.mubr.bf16.mxu1 %v14376_v24 }
 0x171   :  { %13639 = vmatpush3.bf16.msra.mxu0 %v14345_v46  ;;  %v14388_v46 = vld [vmem:[#allocation2 + $0xa90] sm:$0xff]  }
 0x172   :  { %13661 = vmatpush3.bf16.msra.mxu1 %v14346_v49  ;;  %13640 = vmatprep.subr.bf16.mxu0 %v14347_v52  ;;  %v14390_v52 = vld [vmem:[#allocation2 + $0xad8] sm:$0xff]  }
 0x173   :  { %13662 = vmatprep.subr.bf16.mxu1 %v14348_v55  ;;  %v14392_v55 = vld [vmem:[#allocation2 + $0xa98] sm:$0xff]  }
 0x175   :  { %13641 = vmatpush3.bf16.msra.mxu0 %v14349_v57  ;;  %v14393_v57 = vld [vmem:[#allocation2 + $0xa60] sm:$0xff]  }
 0x176   :  { %13663 = vmatpush3.bf16.msra.mxu1 %v14350_v61  ;;  %13642 = vmatprep.subr.bf16.mxu0 %v14351_v63  ;;  %v14397_v61 = vld [vmem:[#allocation2 + $0xa68] sm:$0xff]  }
 0x177   :  { %13664 = vmatprep.subr.bf16.mxu1 %v14352_v1  ;;  %v14399_v63 = vld [vmem:[#allocation2 + $0xa28] sm:$0xff]   ;;  %v14401_v1 = vld [vmem:[#allocation2 + $0xa70] sm:$0xff]  }
 0x179   :  { %13643 = vmatpush3.bf16.msra.mxu0 %v14353_v2  ;;  %v14402_v2 = vld [vmem:[#allocation2 + $0xaf0] sm:$0xff]  }
 0x17a   :  { %13644 = vmatprep.subr.bf16.mxu0 %v14355_v5  ;;  %v14405_v5 = vld [vmem:[#allocation2 + $0xa78] sm:$0xff]  }
 0x17d   :  { %13645 = vmatpush3.bf16.msra.mxu0 %v14357_v7  ;;  %v14407_v7 = vld [vmem:[#allocation2 + $0xa38] sm:$0xff]  }
 0x17e   :  { %13646 = vmatprep.subr.bf16.mxu0 %v14359_v9  ;;  %v14409_v9 = vld [vmem:[%s16334_s0 + $0xa0] ss:$272 sps:$4 sm:$0xff]  }
 0x17f   :  { %v13344_v41 = vpop.f32.mrb[8].mxu0 }
 0x180   :  { %v13366_v43 = vpop.f32.mrb[8].mxu1  ;;  %v13345_v45 = vpop.f32.mrb[9].mxu0 }
 0x181   :  { %v13346_v47 = vadd.f32 %v13345_v45, %v13344_v41  ;;  %v13367_v48 = vpop.f32.mrb[9].mxu1  ;;  %v13347_v51 = vpop.f32.mrb[10].mxu0  ;;  %13647 = vmatpush3.bf16.msra.mxu0 %v14361_v11  ;;  %v14386_v41 = vld [vmem:[#allocation2 + $0xad0] sm:$0xff]   ;;  %v14412_v11 = vld [vmem:[%s16334_s0 + $0xa8] ss:$272 sps:$4 sm:$0xff]  }
 0x182   :  { %v13368_v50 = vadd.f32 %v13367_v48, %v13366_v43  ;;  %v13369_v54 = vpop.f32.mrb[10].mxu1  ;;  %v13348_v56 = vpop.f32.mrb[11].mxu0  ;;  %13648 = vmatprep.subr.bf16.mxu0 %v14363_v13  ;;  %v14415_v13 = vld [vmem:[#allocation2 + $0xb40] sm:$0xff]  }
 0x183   :  { %v5040_v53 = vadd.f32 %v13346_v47, %v15750_v4  ;;  %v13349_v59 = vadd.f32 %v13348_v56, %v13347_v51  ;;  %v13370_v60 = vpop.f32.mrb[11].mxu1  ;;  %v14354_v4 = vld [vmem:[#allocation2 + $0x998] sm:$0xff]  }
 0x184   :  { %v13371_v62 = vadd.f32 %v13370_v60, %v13369_v54  ;;  %13665 = vmatpush3.bf16.msra.mxu1 %v14354_v4  ;;  %v14391_v54 = vld [vmem:[#allocation2 + $0xa18] sm:$0xff]   ;;  %v14396_v60 = vld [vmem:[#allocation2 + $0xaa0] sm:$0xff]   ;;  %v14404_v4 = vld [vmem:[#allocation2 + $0xab0] sm:$0xff]  }
 0x185   :  { %v15768_v58 = vadd.f32 %v13368_v50, %v5040_v53  ;;  %v5043_v0 = vadd.f32 %v13349_v59, %v15753_v15  ;;  %13666 = vmatprep.subr.bf16.mxu1 %v14356_v6  ;;  %v14365_v15 = vld [vmem:[#allocation2 + $0x930] sm:$0xff]   ;;  %v14389_v50 = vld [vmem:[#allocation2 + $0xa58] sm:$0xff]   ;;  %v14395_v59 = vld [vmem:[#allocation2 + $0xa20] sm:$0xff]  }
 0x186   :  { %13649 = vmatpush3.bf16.msra.mxu0 %v14365_v15  ;;  %v14406_v6 = vld [vmem:[#allocation2 + $0xaf8] sm:$0xff]   ;;  %v14417_v15 = vld [vmem:[#allocation2 + $0xb00] sm:$0xff]  }
 0x187   :  { %v15771_v3 = vadd.f32 %v13371_v62, %v5043_v0  ;;  %13650 = vmatprep.subr.bf16.mxu0 %v14367_v17  ;;  %v14398_v62 = vld [vmem:[#allocation2 + $0xae8] sm:$0xff]  }
 0x188   :  { %13667 = vmatpush3.bf16.msra.mxu1 %v14358_v8  ;;  %v14400_v0 = vld [vmem:[#allocation2 + $0xaa8] sm:$0xff]   ;;  %v14408_v8 = vld [vmem:[#allocation2 + $0xab8] sm:$0xff]  }
 0x189   :  { %13668 = vmatprep.subr.bf16.mxu1 %v14360_v10  ;;  %v14411_v10 = vld [vmem:[%s16334_s0 + $0xa4] ss:$272 sps:$4 sm:$0xff]  }
 0x18a   :  { %13651 = vmatpush3.bf16.msra.mxu0 %v14369_v19 }
 0x18b   :  { %13680 = vmatprep.subr.bf16.mxu0 %v14377_v25  ;;  %v14422_v25 = vld [vmem:[#allocation2 + $0xb88] sm:$0xff]  }
 0x18c   :  { %13669 = vmatpush3.bf16.msra.mxu1 %v14362_v12  ;;  %v14414_v12 = vld [vmem:[%s16334_s0 + $0xac] ss:$272 sps:$4 sm:$0xff]  }
 0x18d   :  { %13670 = vmatprep.subr.bf16.mxu1 %v14364_v14  ;;  %5612 = vmatmul.mubr.bf16.vlgmr.msra.gmra.mrb[36].mxu0 %v14371_v21  ;;  %v14416_v14 = vld [vmem:[#allocation2 + $0xbc0] sm:$0xff]  }
 0x18e   :  { %13681 = vmatpush3.bf16.msra.mxu0 %v14379_v27  ;;  %5693 = vmatprep.mubr.bf16.mxu0 %v14411_v10  ;;  %v14459_v10 = vld [vmem:[#allocation2 + $0xc08] sm:$0xff]  }
 0x18f   :  { %13682 = vmatprep.subr.bf16.mxu0 %v14381_v29  ;;  %v14423_v29 = vld [vmem:[#allocation2 + $0xb50] sm:$0xff]  }
 0x190   :  { %13671 = vmatpush3.bf16.msra.mxu1 %v14366_v16  ;;  %v14418_v16 = vld [vmem:[#allocation2 + $0xb80] sm:$0xff]  }
 0x191   :  { %13672 = vmatprep.subr.bf16.mxu1 %v14368_v18  ;;  %v14419_v18 = vld [vmem:[#allocation2 + $0xb48] sm:$0xff]  }
 0x192   :  { %13683 = vmatpush3.bf16.msra.mxu0 %v14383_v33 }
 0x193   :  { %13684 = vmatprep.subr.bf16.mxu0 %v14385_v38 }
 0x194   :  { %13673 = vmatpush3.bf16.msra.mxu1 %v14370_v20  ;;  %v14420_v20 = vld [vmem:[#allocation2 + $0xbc8] sm:$0xff]  }
 0x195   :  { %13702 = vmatprep.subr.bf16.mxu1 %v14378_v26 }
 0x196   :  { %13685 = vmatpush3.bf16.msra.mxu0 %v14387_v44  ;;  %v14430_v44 = vld [vmem:[#allocation2 + $0xb98] sm:$0xff]  }
 0x197   :  { %5653 = vmatmul.mubr.bf16.vlgmr.msra.gmra.mrb[36].mxu1 %v14374_v23  ;;  %13686 = vmatprep.subr.bf16.mxu0 %v14389_v50  ;;  %v14421_v23 = vld [vmem:[#allocation2 + $0xb08] sm:$0xff]  }
 0x198   :  { %13703 = vmatpush3.bf16.msra.mxu1 %v14380_v28  ;;  %5734 = vmatprep.mubr.bf16.mxu1 %v14414_v12  ;;  %v14436_v50 = vld [vmem:[#allocation2 + $0xbe8] sm:$0xff]  }
 0x199   :  { %13704 = vmatprep.subr.bf16.mxu1 %v14382_v31  ;;  %v14424_v31 = vld [vmem:[#allocation2 + $0xbd0] sm:$0xff]  }
 0x19a   :  { %13687 = vmatpush3.bf16.msra.mxu0 %v14391_v54  ;;  %v14440_v54 = vld [vmem:[#allocation2 + $0xbf0] sm:$0xff]  }
 0x19b   :  { %13688 = vmatprep.subr.bf16.mxu0 %v14393_v57  ;;  %v14443_v57 = vld [vmem:[#allocation2 + $0xb78] sm:$0xff]  }
 0x19c   :  { %13705 = vmatpush3.bf16.msra.mxu1 %v14384_v35 }
 0x19d   :  { %13706 = vmatprep.subr.bf16.mxu1 %v14386_v41  ;;  %v14428_v41 = vld [vmem:[#allocation2 + $0xbd8] sm:$0xff]  }
 0x19e   :  { %13689 = vmatpush3.bf16.msra.mxu0 %v14395_v59  ;;  %v14445_v59 = vld [vmem:[#allocation2 + $0xb38] sm:$0xff]  }
 0x19f   :  { %v13388_v30 = vpop.f32.mrb[12].mxu0  ;;  %13690 = vmatprep.subr.bf16.mxu0 %v14397_v61  ;;  %v14447_v61 = vld [vmem:[%s16334_s0 + $0xb0] ss:$272 sps:$4 sm:$0xff]  }
 0x1a0   :  { %v13410_v32 = vpop.f32.mrb[12].mxu1  ;;  %v13389_v34 = vpop.f32.mrb[13].mxu0  ;;  %13707 = vmatpush3.bf16.msra.mxu1 %v14388_v46  ;;  %v14432_v46 = vld [vmem:[#allocation2 + $0xbe0] sm:$0xff]  }
 0x1a1   :  { %v13390_v36 = vadd.f32 %v13389_v34, %v13388_v30  ;;  %v13411_v37 = vpop.f32.mrb[13].mxu1  ;;  %v13391_v40 = vpop.f32.mrb[14].mxu0  ;;  %13708 = vmatprep.subr.bf16.mxu1 %v14390_v52  ;;  %v14425_v34 = vld [vmem:[#allocation2 + $0xb10] sm:$0xff]   ;;  %v14438_v52 = vld [vmem:[#allocation2 + $0xba8] sm:$0xff]  }
 0x1a2   :  { %v13412_v39 = vadd.f32 %v13411_v37, %v13410_v32  ;;  %v13413_v43 = vpop.f32.mrb[14].mxu1  ;;  %v13392_v45 = vpop.f32.mrb[15].mxu0  ;;  %13691 = vmatpush3.bf16.msra.mxu0 %v14399_v63  ;;  %v14426_v37 = vld [vmem:[#allocation2 + $0xb90] sm:$0xff]   ;;  %v14450_v63 = vld [vmem:[%s16334_s0 + $0xb8] ss:$272 sps:$4 sm:$0xff]  }
 0x1a3   :  { %v5122_v42 = vadd.f32 %v13390_v36, %v15768_v58  ;;  %v13393_v48 = vadd.f32 %v13392_v45, %v13391_v40  ;;  %v13414_v49 = vpop.f32.mrb[15].mxu1  ;;  %v14394_v58 = vld [vmem:[#allocation2 + $0xae0] sm:$0xff]   ;;  %13692 = vmatprep.subr.bf16.mxu0 %v14401_v1 }
 0x1a4   :  { %v13415_v51 = vadd.f32 %v13414_v49, %v13413_v43  ;;  %13709 = vmatpush3.bf16.msra.mxu1 %v14392_v55  ;;  %v14431_v45 = vld [vmem:[#allocation2 + $0xb60] sm:$0xff]   ;;  %v14435_v49 = vld [vmem:[#allocation2 + $0xb68] sm:$0xff]   ;;  %v14441_v55 = vld [vmem:[#allocation2 + $0xb30] sm:$0xff]  }
 0x1a5   :  { %v15786_v47 = vadd.f32 %v13412_v39, %v5122_v42  ;;  %v5125_v53 = vadd.f32 %v13393_v48, %v15771_v3  ;;  %13710 = vmatprep.subr.bf16.mxu1 %v14394_v58  ;;  %v14403_v3 = vld [vmem:[#allocation2 + $0xa30] sm:$0xff]   ;;  %v14427_v39 = vld [vmem:[#allocation2 + $0xb58] sm:$0xff]   ;;  %v14434_v48 = vld [vmem:[#allocation2 + $0xba0] sm:$0xff]  }
 0x1a6   :  { %13693 = vmatpush3.bf16.msra.mxu0 %v14403_v3  ;;  %v14429_v42 = vld [vmem:[#allocation2 + $0xb18] sm:$0xff]   ;;  %v14453_v1 = vld [vmem:[#allocation2 + $0xc40] sm:$0xff]  }
 0x1a7   :  { %v15789_v56 = vadd.f32 %v13415_v51, %v5125_v53  ;;  %13694 = vmatprep.subr.bf16.mxu0 %v14405_v5  ;;  %v14437_v51 = vld [vmem:[#allocation2 + $0xb28] sm:$0xff]   ;;  %v14439_v53 = vld [vmem:[#allocation2 + $0xb70] sm:$0xff]   ;;  %v14444_v58 = vld [vmem:[#allocation2 + $0xbf8] sm:$0xff]  }
 0x1a8   :  { %13711 = vmatpush3.bf16.msra.mxu1 %v14396_v60  ;;  %v14446_v60 = vld [vmem:[#allocation2 + $0xbb8] sm:$0xff]   ;;  %v14455_v3 = vld [vmem:[#allocation2 + $0xc00] sm:$0xff]  }
 0x1a9   :  { %13712 = vmatprep.subr.bf16.mxu1 %v14398_v62  ;;  %v14449_v62 = vld [vmem:[%s16334_s0 + $0xb4] ss:$272 sps:$4 sm:$0xff]  }
 0x1aa   :  { %13695 = vmatpush3.bf16.msra.mxu0 %v14407_v7 }
 0x1ab   :  { %13724 = vmatprep.subr.bf16.mxu0 %v14415_v13  ;;  %v14460_v13 = vld [vmem:[#allocation2 + $0xc88] sm:$0xff]  }
 0x1ac   :  { %13713 = vmatpush3.bf16.msra.mxu1 %v14400_v0  ;;  %v14452_v0 = vld [vmem:[%s16334_s0 + $0xbc] ss:$272 sps:$4 sm:$0xff]  }
 0x1ad   :  { %13714 = vmatprep.subr.bf16.mxu1 %v14402_v2  ;;  %5694 = vmatmul.mubr.bf16.vlgmr.msra.gmra.mrb[40].mxu0 %v14409_v9  ;;  %v14454_v2 = vld [vmem:[#allocation2 + $0xcc0] sm:$0xff]  }
 0x1ae   :  { %13725 = vmatpush3.bf16.msra.mxu0 %v14417_v15  ;;  %5775 = vmatprep.mubr.bf16.mxu0 %v14449_v62 }
 0x1af   :  { %13726 = vmatprep.subr.bf16.mxu0 %v14419_v18 }
 0x1b0   :  { %13715 = vmatpush3.bf16.msra.mxu1 %v14404_v4  ;;  %v14456_v4 = vld [vmem:[#allocation2 + $0xc80] sm:$0xff]  }
 0x1b1   :  { %13716 = vmatprep.subr.bf16.mxu1 %v14406_v6  ;;  %v14457_v6 = vld [vmem:[#allocation2 + $0xc48] sm:$0xff]  }
 0x1b2   :  { %13727 = vmatpush3.bf16.msra.mxu0 %v14421_v23 }
 0x1b3   :  { %13728 = vmatprep.subr.bf16.mxu0 %v14423_v29  ;;  %v14466_v29 = vld [vmem:[#allocation2 + $0xcd8] sm:$0xff]  }
 0x1b4   :  { %13717 = vmatpush3.bf16.msra.mxu1 %v14408_v8  ;;  %v14458_v8 = vld [vmem:[#allocation2 + $0xcc8] sm:$0xff]  }
 0x1b5   :  { %13746 = vmatprep.subr.bf16.mxu1 %v14416_v14 }
 0x1b6   :  { %13729 = vmatpush3.bf16.msra.mxu0 %v14425_v34  ;;  %v14470_v34 = vld [vmem:[#allocation2 + $0xce0] sm:$0xff]  }
 0x1b7   :  { %5735 = vmatmul.mubr.bf16.vlgmr.msra.gmra.mrb[40].mxu1 %v14412_v11  ;;  %13730 = vmatprep.subr.bf16.mxu0 %v14427_v39  ;;  %v14475_v39 = vld [vmem:[#allocation2 + $0xc28] sm:$0xff]  }
 0x1b8   :  { %13747 = vmatpush3.bf16.msra.mxu1 %v14418_v16  ;;  %5816 = vmatprep.mubr.bf16.mxu1 %v14452_v0  ;;  %v14461_v16 = vld [vmem:[#allocation2 + $0xc50] sm:$0xff]  }
 0x1b9   :  { %13748 = vmatprep.subr.bf16.mxu1 %v14420_v20 }
 0x1ba   :  { %13731 = vmatpush3.bf16.msra.mxu0 %v14429_v42  ;;  %v14478_v42 = vld [vmem:[#allocation2 + $0xcf0] sm:$0xff]  }
 0x1bb   :  { %13732 = vmatprep.subr.bf16.mxu0 %v14431_v45  ;;  %v14481_v45 = vld [vmem:[#allocation2 + $0xc78] sm:$0xff]  }
 0x1bc   :  { %13749 = vmatpush3.bf16.msra.mxu1 %v14422_v25  ;;  %v14464_v25 = vld [vmem:[#allocation2 + $0xc90] sm:$0xff]  }
 0x1bd   :  { %13750 = vmatprep.subr.bf16.mxu1 %v14424_v31 }
 0x1bf   :  { %v13432_v17 = vpop.f32.mrb[16].mxu0 }
 0x1c0   :  { %v13433_v19 = vpop.f32.mrb[17].mxu0  ;;  %v13454_v21 = vpop.f32.mrb[16].mxu1  ;;  %13751 = vmatpush3.bf16.msra.mxu1 %v14426_v37  ;;  %v14473_v37 = vld [vmem:[#allocation2 + $0xc68] sm:$0xff]  }
 0x1c1   :  { %v13434_v22 = vadd.f32 %v13433_v19, %v13432_v17  ;;  %v13455_v24 = vpop.f32.mrb[17].mxu1  ;;  %v13435_v28 = vpop.f32.mrb[18].mxu0  ;;  %13752 = vmatprep.subr.bf16.mxu1 %v14428_v41  ;;  %v14462_v19 = vld [vmem:[#allocation2 + $0xcd0] sm:$0xff]  }
 0x1c2   :  { %v13456_v27 = vadd.f32 %v13455_v24, %v13454_v21  ;;  %v13457_v30 = vpop.f32.mrb[18].mxu1  ;;  %v13436_v33 = vpop.f32.mrb[19].mxu0  ;;  %v14463_v21 = vld [vmem:[#allocation2 + $0xc10] sm:$0xff]  }
 0x1c3   :  { %v5204_v26 = vadd.f32 %v13434_v22, %v15786_v47  ;;  %v13437_v35 = vadd.f32 %v13436_v33, %v13435_v28  ;;  %v13458_v36 = vpop.f32.mrb[19].mxu1  ;;  %v14433_v47 = vld [vmem:[#allocation2 + $0xb20] sm:$0xff]   ;;  %v14477_v41 = vld [vmem:[#allocation2 + $0xc70] sm:$0xff]  }
 0x1c4   :  { %v13459_v38 = vadd.f32 %v13458_v36, %v13457_v30  ;;  %13753 = vmatpush3.bf16.msra.mxu1 %v14430_v44  ;;  %13733 = vmatpush3.bf16.msra.mxu0 %v14433_v47  ;;  %v14467_v30 = vld [vmem:[#allocation2 + $0xc18] sm:$0xff]   ;;  %v14469_v33 = vld [vmem:[#allocation2 + $0xc60] sm:$0xff]   ;;  %v14480_v44 = vld [vmem:[#allocation2 + $0xcb0] sm:$0xff]  }
 0x1c5   :  { %v15804_v32 = vadd.f32 %v13456_v27, %v5204_v26  ;;  %v5207_v40 = vadd.f32 %v13437_v35, %v15789_v56  ;;  %13754 = vmatprep.subr.bf16.mxu1 %v14432_v46  ;;  %13734 = vmatprep.subr.bf16.mxu0 %v14435_v49  ;;  %v14442_v56 = vld [vmem:[#allocation2 + $0xbb0] sm:$0xff]   ;;  %v14465_v27 = vld [vmem:[#allocation2 + $0xc58] sm:$0xff]   ;;  %v14471_v35 = vld [vmem:[#allocation2 + $0xc20] sm:$0xff]  }
 0x1c6   :  { %v14472_v36 = vld [vmem:[#allocation2 + $0xca0] sm:$0xff]   ;;  %v14482_v46 = vld [vmem:[#allocation2 + $0xcf8] sm:$0xff]  }
 0x1c7   :  { %v15807_v43 = vadd.f32 %v13459_v38, %v5207_v40  ;;  %v14474_v38 = vld [vmem:[#allocation2 + $0xce8] sm:$0xff]   ;;  %v14483_v47 = vld [vmem:[#allocation2 + $0xc38] sm:$0xff]   ;;  %v14485_v49 = vld [vmem:[%s16334_s0 + $0xc0] ss:$272 sps:$4 sm:$0xff]  }
 0x1c8   :  { %13755 = vmatpush3.bf16.msra.mxu1 %v14434_v48  ;;  %13735 = vmatpush3.bf16.msra.mxu0 %v14437_v51  ;;  %v14476_v40 = vld [vmem:[#allocation2 + $0xca8] sm:$0xff]   ;;  %v14484_v48 = vld [vmem:[#allocation2 + $0xcb8] sm:$0xff]  }
 0x1c9   :  { %13756 = vmatprep.subr.bf16.mxu1 %v14436_v50  ;;  %13736 = vmatprep.subr.bf16.mxu0 %v14439_v53  ;;  %v14487_v50 = vld [vmem:[%s16334_s0 + $0xc4] ss:$272 sps:$4 sm:$0xff]   ;;  %v14488_v51 = vld [vmem:[%s16334_s0 + $0xc8] ss:$272 sps:$4 sm:$0xff]  }
 0x1ca   :  { %v14491_v53 = vld [vmem:[#allocation2 + $0xd40] sm:$0xff]  }
 0x1cc   :  { %13757 = vmatpush3.bf16.msra.mxu1 %v14438_v52  ;;  %13737 = vmatpush3.bf16.msra.mxu0 %v14441_v55  ;;  %v14490_v52 = vld [vmem:[%s16334_s0 + $0xcc] ss:$272 sps:$4 sm:$0xff]   ;;  %v14493_v55 = vld [vmem:[#allocation2 + $0xd00] sm:$0xff]  }
 0x1cd   :  { %13758 = vmatprep.subr.bf16.mxu1 %v14440_v54  ;;  %13738 = vmatprep.subr.bf16.mxu0 %v14443_v57  ;;  %v14492_v54 = vld [vmem:[#allocation2 + $0xdc0] sm:$0xff]   ;;  %v14495_v57 = vld [vmem:[#allocation2 + $0xd48] sm:$0xff]  }
 0x1d0   :  { %13759 = vmatpush3.bf16.msra.mxu1 %v14442_v56  ;;  %13739 = vmatpush3.bf16.msra.mxu0 %v14445_v59  ;;  %v14494_v56 = vld [vmem:[#allocation2 + $0xd80] sm:$0xff]   ;;  %v14496_v59 = vld [vmem:[#allocation2 + $0xdc8] sm:$0xff]  }
 0x1d1   :  { %13760 = vmatprep.subr.bf16.mxu1 %v14444_v58  ;;  %13768 = vmatprep.subr.bf16.mxu0 %v14453_v1 }
 0x1d3   :  { %5776 = vmatmul.mubr.bf16.vlgmr.msra.gmra.mrb[44].mxu0 %v14447_v61  ;;  %v14497_v61 = vld [vmem:[#allocation2 + $0xd08] sm:$0xff]  }
 0x1d4   :  { %13761 = vmatpush3.bf16.msra.mxu1 %v14446_v60  ;;  %13769 = vmatpush3.bf16.msra.mxu0 %v14455_v3 }
 0x1d5   :  { %13790 = vmatprep.subr.bf16.mxu1 %v14454_v2  ;;  %13770 = vmatprep.subr.bf16.mxu0 %v14457_v6  ;;  %v14499_v2 = vld [vmem:[#allocation2 + $0xd50] sm:$0xff]  }
 0x1d6   :  { %5857 = vmatprep.mubr.bf16.mxu0 %v14487_v50 }
 0x1d7   :  { %5817 = vmatmul.mubr.bf16.vlgmr.msra.gmra.mrb[44].mxu1 %v14450_v63  ;;  %v14498_v63 = vld [vmem:[#allocation2 + $0xd88] sm:$0xff]  }
 0x1d8   :  { %13791 = vmatpush3.bf16.msra.mxu1 %v14456_v4  ;;  %13771 = vmatpush3.bf16.msra.mxu0 %v14459_v10  ;;  %v14502_v10 = vld [vmem:[#allocation2 + $0xd90] sm:$0xff]  }
 0x1d9   :  { %13792 = vmatprep.subr.bf16.mxu1 %v14458_v8  ;;  %13772 = vmatprep.subr.bf16.mxu0 %v14461_v16  ;;  %v14501_v8 = vld [vmem:[#allocation2 + $0xd10] sm:$0xff]   ;;  %v14504_v16 = vld [vmem:[#allocation2 + $0xdd8] sm:$0xff]  }
 0x1da   :  { %5898 = vmatprep.mubr.bf16.mxu1 %v14490_v52 }
 0x1dc   :  { %13793 = vmatpush3.bf16.msra.mxu1 %v14460_v13  ;;  %13773 = vmatpush3.bf16.msra.mxu0 %v14463_v21  ;;  %v14507_v21 = vld [vmem:[#allocation2 + $0xd60] sm:$0xff]  }
 0x1dd   :  { %13794 = vmatprep.subr.bf16.mxu1 %v14462_v19  ;;  %13774 = vmatprep.subr.bf16.mxu0 %v14465_v27  ;;  %v14506_v19 = vld [vmem:[#allocation2 + $0xd98] sm:$0xff]   ;;  %v14513_v27 = vld [vmem:[#allocation2 + $0xd28] sm:$0xff]  }
 0x1df   :  { %v13476_v5 = vpop.f32.mrb[20].mxu0 }
 0x1e0   :  { %v13498_v7 = vpop.f32.mrb[20].mxu1  ;;  %v13477_v9 = vpop.f32.mrb[21].mxu0  ;;  %13795 = vmatpush3.bf16.msra.mxu1 %v14464_v25  ;;  %13775 = vmatpush3.bf16.msra.mxu0 %v14467_v30  ;;  %v14511_v25 = vld [vmem:[#allocation2 + $0xd68] sm:$0xff]   ;;  %v14516_v30 = vld [vmem:[#allocation2 + $0xdf0] sm:$0xff]  }
 0x1e1   :  { %v13478_v11 = vadd.f32 %v13477_v9, %v13476_v5  ;;  %v13499_v12 = vpop.f32.mrb[21].mxu1  ;;  %v13479_v15 = vpop.f32.mrb[22].mxu0  ;;  %13796 = vmatprep.subr.bf16.mxu1 %v14466_v29  ;;  %13776 = vmatprep.subr.bf16.mxu0 %v14469_v33  ;;  %v14500_v5 = vld [vmem:[#allocation2 + $0xdd0] sm:$0xff]   ;;  %v14519_v33 = vld [vmem:[#allocation2 + $0xd78] sm:$0xff]  }
 0x1e2   :  { %v13500_v14 = vadd.f32 %v13499_v12, %v13498_v7  ;;  %v13501_v18 = vpop.f32.mrb[22].mxu1  ;;  %v13480_v20 = vpop.f32.mrb[23].mxu0  ;;  %v14515_v29 = vld [vmem:[#allocation2 + $0xd70] sm:$0xff]  }
 0x1e3   :  { %v5286_v17 = vadd.f32 %v13478_v11, %v15804_v32  ;;  %v13481_v23 = vadd.f32 %v13480_v20, %v13479_v15  ;;  %v13502_v24 = vpop.f32.mrb[23].mxu1  ;;  %v14468_v32 = vld [vmem:[#allocation2 + $0xc98] sm:$0xff]  }
 0x1e4   :  { %v13503_v26 = vadd.f32 %v13502_v24, %v13501_v18  ;;  %13797 = vmatpush3.bf16.msra.mxu1 %v14468_v32  ;;  %13777 = vmatpush3.bf16.msra.mxu0 %v14471_v35  ;;  %v14505_v18 = vld [vmem:[#allocation2 + $0xd18] sm:$0xff]   ;;  %v14510_v24 = vld [vmem:[#allocation2 + $0xda0] sm:$0xff]   ;;  %v14518_v32 = vld [vmem:[#allocation2 + $0xdb0] sm:$0xff]  }
 0x1e5   :  { %v15822_v22 = vadd.f32 %v13500_v14, %v5286_v17  ;;  %v5289_v28 = vadd.f32 %v13481_v23, %v15807_v43  ;;  %13798 = vmatprep.subr.bf16.mxu1 %v14470_v34  ;;  %13778 = vmatprep.subr.bf16.mxu0 %v14473_v37  ;;  %v14479_v43 = vld [vmem:[#allocation2 + $0xc30] sm:$0xff]   ;;  %v14503_v14 = vld [vmem:[#allocation2 + $0xd58] sm:$0xff]   ;;  %v14509_v23 = vld [vmem:[#allocation2 + $0xd20] sm:$0xff]  }
 0x1e6   :  { %v14520_v34 = vld [vmem:[#allocation2 + $0xdf8] sm:$0xff]   ;;  %v14523_v37 = vld [vmem:[%s16334_s0 + $0xd0] ss:$272 sps:$4 sm:$0xff]  }
 0x1e7   :  { %v15825_v31 = vadd.f32 %v13503_v26, %v5289_v28  ;;  %v14512_v26 = vld [vmem:[#allocation2 + $0xde8] sm:$0xff]   ;;  %v14521_v35 = vld [vmem:[#allocation2 + $0xd38] sm:$0xff]  }
 0x1e8   :  { %13799 = vmatpush3.bf16.msra.mxu1 %v14472_v36  ;;  %13779 = vmatpush3.bf16.msra.mxu0 %v14475_v39  ;;  %v14514_v28 = vld [vmem:[#allocation2 + $0xda8] sm:$0xff]   ;;  %v14522_v36 = vld [vmem:[#allocation2 + $0xdb8] sm:$0xff]  }
 0x1e9   :  { %13800 = vmatprep.subr.bf16.mxu1 %v14474_v38  ;;  %13780 = vmatprep.subr.bf16.mxu0 %v14477_v41  ;;  %v14525_v38 = vld [vmem:[%s16334_s0 + $0xd4] ss:$272 sps:$4 sm:$0xff]   ;;  %v14526_v39 = vld [vmem:[%s16334_s0 + $0xd8] ss:$272 sps:$4 sm:$0xff]  }
 0x1ea   :  { %v14529_v41 = vld [vmem:[#allocation2 + $0xe40] sm:$0xff]  }
 0x1ec   :  { %13801 = vmatpush3.bf16.msra.mxu1 %v14476_v40  ;;  %13781 = vmatpush3.bf16.msra.mxu0 %v14479_v43  ;;  %v14528_v40 = vld [vmem:[%s16334_s0 + $0xdc] ss:$272 sps:$4 sm:$0xff]   ;;  %v14531_v43 = vld [vmem:[#allocation2 + $0xe00] sm:$0xff]  }
 0x1ed   :  { %13802 = vmatprep.subr.bf16.mxu1 %v14478_v42  ;;  %13782 = vmatprep.subr.bf16.mxu0 %v14481_v45  ;;  %v14530_v42 = vld [vmem:[#allocation2 + $0xec0] sm:$0xff]   ;;  %v14533_v45 = vld [vmem:[#allocation2 + $0xe48] sm:$0xff]  }
 0x1f0   :  { %13803 = vmatpush3.bf16.msra.mxu1 %v14480_v44  ;;  %13783 = vmatpush3.bf16.msra.mxu0 %v14483_v47  ;;  %v14532_v44 = vld [vmem:[#allocation2 + $0xe80] sm:$0xff]   ;;  %v14534_v47 = vld [vmem:[#allocation2 + $0xec8] sm:$0xff]  }
 0x1f1   :  { %13804 = vmatprep.subr.bf16.mxu1 %v14482_v46  ;;  %13812 = vmatprep.subr.bf16.mxu0 %v14491_v53 }
 0x1f3   :  { %5858 = vmatmul.mubr.bf16.vlgmr.msra.gmra.mrb[48].mxu0 %v14485_v49  ;;  %v14535_v49 = vld [vmem:[#allocation2 + $0xe08] sm:$0xff]  }
 0x1f4   :  { %13805 = vmatpush3.bf16.msra.mxu1 %v14484_v48  ;;  %13813 = vmatpush3.bf16.msra.mxu0 %v14493_v55 }
 0x1f5   :  { %13834 = vmatprep.subr.bf16.mxu1 %v14492_v54  ;;  %13814 = vmatprep.subr.bf16.mxu0 %v14495_v57  ;;  %v14537_v54 = vld [vmem:[#allocation2 + $0xe50] sm:$0xff]  }
 0x1f6   :  { %5939 = vmatprep.mubr.bf16.mxu0 %v14525_v38  ;;  %v14538_v57 = vld [vmem:[#allocation2 + $0xed0] sm:$0xff]  }
 0x1f7   :  { %5899 = vmatmul.mubr.bf16.vlgmr.msra.gmra.mrb[48].mxu1 %v14488_v51  ;;  %v14536_v51 = vld [vmem:[#allocation2 + $0xe88] sm:$0xff]  }
 0x1f8   :  { %13835 = vmatpush3.bf16.msra.mxu1 %v14494_v56  ;;  %13815 = vmatpush3.bf16.msra.mxu0 %v14497_v61 }
 0x1f9   :  { %13836 = vmatprep.subr.bf16.mxu1 %v14496_v59  ;;  %13816 = vmatprep.subr.bf16.mxu0 %v14499_v2  ;;  %v14541_v2 = vld [vmem:[#allocation2 + $0xe58] sm:$0xff]  }
 0x1fa   :  { %5980 = vmatprep.mubr.bf16.mxu1 %v14528_v40 }
 0x1fc   :  { %13837 = vmatpush3.bf16.msra.mxu1 %v14498_v63  ;;  %13817 = vmatpush3.bf16.msra.mxu0 %v14501_v8 }
 0x1fd   :  { %13838 = vmatprep.subr.bf16.mxu1 %v14500_v5  ;;  %13818 = vmatprep.subr.bf16.mxu0 %v14503_v14  ;;  %v14550_v14 = vld [vmem:[#allocation2 + $0xee8] sm:$0xff]  }
 0x1ff   :  { %v13520_v58 = vpop.f32.mrb[24].mxu0 }
 0x200   :  { %v13542_v60 = vpop.f32.mrb[24].mxu1  ;;  %v13521_v62 = vpop.f32.mrb[25].mxu0  ;;  %13839 = vmatpush3.bf16.msra.mxu1 %v14502_v10  ;;  %13819 = vmatpush3.bf16.msra.mxu0 %v14505_v18  ;;  %v14546_v10 = vld [vmem:[#allocation2 + $0xee0] sm:$0xff]   ;;  %v14554_v18 = vld [vmem:[#allocation2 + $0xef0] sm:$0xff]  }
 0x201   :  { %v13522_v0 = vadd.f32 %v13521_v62, %v13520_v58  ;;  %v13543_v1 = vpop.f32.mrb[25].mxu1  ;;  %v13523_v4 = vpop.f32.mrb[26].mxu0  ;;  %13840 = vmatprep.subr.bf16.mxu1 %v14504_v16  ;;  %13820 = vmatprep.subr.bf16.mxu0 %v14507_v21  ;;  %v14540_v62 = vld [vmem:[#allocation2 + $0xe90] sm:$0xff]   ;;  %v14552_v16 = vld [vmem:[#allocation2 + $0xea8] sm:$0xff]   ;;  %v14557_v21 = vld [vmem:[#allocation2 + $0xe78] sm:$0xff]  }
 0x202   :  { %v13544_v3 = vadd.f32 %v13543_v1, %v13542_v60  ;;  %v13545_v7 = vpop.f32.mrb[26].mxu1  ;;  %v13524_v9 = vpop.f32.mrb[27].mxu0  ;;  %v14539_v60 = vld [vmem:[#allocation2 + $0xe10] sm:$0xff]  }
 0x203   :  { %v5368_v6 = vadd.f32 %v13522_v0, %v15822_v22  ;;  %v13525_v12 = vadd.f32 %v13524_v9, %v13523_v4  ;;  %v13546_v13 = vpop.f32.mrb[27].mxu1  ;;  %v14508_v22 = vld [vmem:[#allocation2 + $0xde0] sm:$0xff]   ;;  %v14542_v4 = vld [vmem:[#allocation2 + $0xed8] sm:$0xff]  }
 0x204   :  { %v13547_v15 = vadd.f32 %v13546_v13, %v13545_v7  ;;  %13841 = vmatpush3.bf16.msra.mxu1 %v14506_v19  ;;  %13821 = vmatpush3.bf16.msra.mxu0 %v14509_v23  ;;  %v14544_v7 = vld [vmem:[#allocation2 + $0xe98] sm:$0xff]   ;;  %v14545_v9 = vld [vmem:[#allocation2 + $0xe60] sm:$0xff]   ;;  %v14549_v13 = vld [vmem:[#allocation2 + $0xe68] sm:$0xff]  }
 0x205   :  { %v15840_v11 = vadd.f32 %v13544_v3, %v5368_v6  ;;  %v5371_v17 = vadd.f32 %v13525_v12, %v15825_v31  ;;  %13842 = vmatprep.subr.bf16.mxu1 %v14508_v22  ;;  %13822 = vmatprep.subr.bf16.mxu0 %v14511_v25  ;;  %v14517_v31 = vld [vmem:[#allocation2 + $0xd30] sm:$0xff]   ;;  %v14543_v6 = vld [vmem:[#allocation2 + $0xe18] sm:$0xff]   ;;  %v14548_v12 = vld [vmem:[#allocation2 + $0xea0] sm:$0xff]  }
 0x206   :  { %v14555_v19 = vld [vmem:[#allocation2 + $0xe30] sm:$0xff]   ;;  %v14558_v22 = vld [vmem:[#allocation2 + $0xef8] sm:$0xff]  }
 0x207   :  { %v15843_v20 = vadd.f32 %v13547_v15, %v5371_v17  ;;  %v14551_v15 = vld [vmem:[#allocation2 + $0xe28] sm:$0xff]   ;;  %v14553_v17 = vld [vmem:[#allocation2 + $0xe70] sm:$0xff]   ;;  %v14559_v23 = vld [vmem:[#allocation2 + $0xe38] sm:$0xff]  }
 0x208   :  { %13843 = vmatpush3.bf16.msra.mxu1 %v14510_v24  ;;  %13823 = vmatpush3.bf16.msra.mxu0 %v14513_v27  ;;  %v14560_v24 = vld [vmem:[#allocation2 + $0xeb8] sm:$0xff]   ;;  %v14561_v25 = vld [vmem:[%s16334_s0 + $0xe0] ss:$272 sps:$4 sm:$0xff]  }
 0x209   :  { %13844 = vmatprep.subr.bf16.mxu1 %v14512_v26  ;;  %13824 = vmatprep.subr.bf16.mxu0 %v14515_v29  ;;  %v14563_v26 = vld [vmem:[%s16334_s0 + $0xe4] ss:$272 sps:$4 sm:$0xff]   ;;  %v14564_v27 = vld [vmem:[%s16334_s0 + $0xe8] ss:$272 sps:$4 sm:$0xff]  }
 0x20a   :  { %v14567_v29 = vld [vmem:[#allocation2 + $0xf40] sm:$0xff]  }
 0x20c   :  { %13845 = vmatpush3.bf16.msra.mxu1 %v14514_v28  ;;  %13825 = vmatpush3.bf16.msra.mxu0 %v14517_v31  ;;  %v14566_v28 = vld [vmem:[%s16334_s0 + $0xec] ss:$272 sps:$4 sm:$0xff]   ;;  %v14569_v31 = vld [vmem:[#allocation2 + $0xf00] sm:$0xff]  }
 0x20d   :  { %13846 = vmatprep.subr.bf16.mxu1 %v14516_v30  ;;  %13826 = vmatprep.subr.bf16.mxu0 %v14519_v33  ;;  %v14568_v30 = vld [vmem:[#allocation2 + $0xfc0] sm:$0xff]  }
 0x210   :  { %13847 = vmatpush3.bf16.msra.mxu1 %v14518_v32  ;;  %13827 = vmatpush3.bf16.msra.mxu0 %v14521_v35  ;;  %v14570_v32 = vld [vmem:[#allocation2 + $0xf80] sm:$0xff]  }
 0x211   :  { %13848 = vmatprep.subr.bf16.mxu1 %v14520_v34  ;;  %13856 = vmatprep.subr.bf16.mxu0 %v14529_v41  ;;  %v14571_v34 = vld [vmem:[#allocation2 + $0xf48] sm:$0xff]  }
 0x212   :  { %v14574_v41 = vld [vmem:[#allocation2 + $0xf88] sm:$0xff]  }
 0x213   :  { %5940 = vmatmul.mubr.bf16.vlgmr.msra.gmra.mrb[52].mxu0 %v14523_v37 }
 0x214   :  { %13849 = vmatpush3.bf16.msra.mxu1 %v14522_v36  ;;  %13857 = vmatpush3.bf16.msra.mxu0 %v14531_v43  ;;  %v14572_v36 = vld [vmem:[#allocation2 + $0xfc8] sm:$0xff]  }
 0x215   :  { %13878 = vmatprep.subr.bf16.mxu1 %v14530_v42  ;;  %13858 = vmatprep.subr.bf16.mxu0 %v14533_v45  ;;  %v14575_v45 = vld [vmem:[#allocation2 + $0xf50] sm:$0xff]  }
 0x216   :  { %6021 = vmatprep.mubr.bf16.mxu0 %v14563_v26 }
 0x217   :  { %5981 = vmatmul.mubr.bf16.vlgmr.msra.gmra.mrb[52].mxu1 %v14526_v39  ;;  %v14573_v39 = vld [vmem:[#allocation2 + $0xf08] sm:$0xff]  }
 0x218   :  { %13879 = vmatpush3.bf16.msra.mxu1 %v14532_v44  ;;  %13859 = vmatpush3.bf16.msra.mxu0 %v14535_v49 }
 0x219   :  { %13880 = vmatprep.subr.bf16.mxu1 %v14534_v47  ;;  %13860 = vmatprep.subr.bf16.mxu0 %v14537_v54  ;;  %v14576_v47 = vld [vmem:[#allocation2 + $0xfd0] sm:$0xff]  }
 0x21a   :  { %6062 = vmatprep.mubr.bf16.mxu1 %v14566_v28 }
 0x21c   :  { %13881 = vmatpush3.bf16.msra.mxu1 %v14536_v51  ;;  %13861 = vmatpush3.bf16.msra.mxu0 %v14539_v60  ;;  %v14582_v60 = vld [vmem:[#allocation2 + $0xf98] sm:$0xff]  }
 0x21d   :  { %13882 = vmatprep.subr.bf16.mxu1 %v14538_v57  ;;  %13862 = vmatprep.subr.bf16.mxu0 %v14541_v2  ;;  %v14580_v57 = vld [vmem:[#allocation2 + $0xfd8] sm:$0xff]   ;;  %v14588_v2 = vld [vmem:[#allocation2 + $0xfe8] sm:$0xff]  }
 0x21f   :  { %v13564_v46 = vpop.f32.mrb[28].mxu0 }
 0x220   :  { %v13586_v48 = vpop.f32.mrb[28].mxu1  ;;  %v13565_v50 = vpop.f32.mrb[29].mxu0  ;;  %13883 = vmatpush3.bf16.msra.mxu1 %v14540_v62  ;;  %13863 = vmatpush3.bf16.msra.mxu0 %v14543_v6  ;;  %v14584_v62 = vld [vmem:[#allocation2 + $0xfe0] sm:$0xff]   ;;  %v14592_v6 = vld [vmem:[#allocation2 + $0xff0] sm:$0xff]  }
 0x221   :  { %v13566_v52 = vadd.f32 %v13565_v50, %v13564_v46  ;;  %v13587_v53 = vpop.f32.mrb[29].mxu1  ;;  %v13567_v56 = vpop.f32.mrb[30].mxu0  ;;  %13884 = vmatprep.subr.bf16.mxu1 %v14542_v4  ;;  %13864 = vmatprep.subr.bf16.mxu0 %v14545_v9  ;;  %v14577_v50 = vld [vmem:[#allocation2 + $0xf10] sm:$0xff]   ;;  %v14590_v4 = vld [vmem:[#allocation2 + $0xfa8] sm:$0xff]   ;;  %v14595_v9 = vld [vmem:[#allocation2 + $0xf78] sm:$0xff]  }
 0x222   :  { %v13588_v55 = vadd.f32 %v13587_v53, %v13586_v48  ;;  %v13589_v59 = vpop.f32.mrb[30].mxu1  ;;  %v13568_v61 = vpop.f32.mrb[31].mxu0  ;;  %v14578_v53 = vld [vmem:[#allocation2 + $0xf90] sm:$0xff]  }
 0x223   :  { %v5450_v58 = vadd.f32 %v13566_v52, %v15840_v11  ;;  %v13569_v0 = vadd.f32 %v13568_v61, %v13567_v56  ;;  %v13590_v1 = vpop.f32.mrb[31].mxu1  ;;  %v14547_v11 = vld [vmem:[#allocation2 + $0xe20] sm:$0xff]  }
 0x224   :  { %v13591_v3 = vadd.f32 %v13590_v1, %v13589_v59  ;;  %13885 = vmatpush3.bf16.msra.mxu1 %v14544_v7  ;;  %13865 = vmatpush3.bf16.msra.mxu0 %v14547_v11  ;;  %v14583_v61 = vld [vmem:[#allocation2 + $0xf60] sm:$0xff]   ;;  %v14587_v1 = vld [vmem:[#allocation2 + $0xf68] sm:$0xff]   ;;  %v14593_v7 = vld [vmem:[#allocation2 + $0xf30] sm:$0xff]  }
 0x225   :  { %v15858_v63 = vadd.f32 %v13588_v55, %v5450_v58  ;;  %v5453_v5 = vadd.f32 %v13569_v0, %v15843_v20  ;;  %13886 = vmatprep.subr.bf16.mxu1 %v14546_v10  ;;  %13866 = vmatprep.subr.bf16.mxu0 %v14549_v13  ;;  %v14556_v20 = vld [vmem:[#allocation2 + $0xeb0] sm:$0xff]   ;;  %v14579_v55 = vld [vmem:[#allocation2 + $0xf58] sm:$0xff]   ;;  %v14586_v0 = vld [vmem:[#allocation2 + $0xfa0] sm:$0xff]  }
 0x226   :  { %v14581_v58 = vld [vmem:[#allocation2 + $0xf18] sm:$0xff]   ;;  %v14599_v13 = vld [vmem:[%s16334_s0 + $0xf0] ss:$272 sps:$4 sm:$0xff]  }
 0x227   :  { %v15861_v8 = vadd.f32 %v13591_v3, %v5453_v5  ;;  %v14589_v3 = vld [vmem:[#allocation2 + $0xf28] sm:$0xff]   ;;  %v14591_v5 = vld [vmem:[#allocation2 + $0xf70] sm:$0xff]   ;;  %v14596_v10 = vld [vmem:[#allocation2 + $0xff8] sm:$0xff]  }
 0x228   :  { %13887 = vmatpush3.bf16.msra.mxu1 %v14548_v12  ;;  %13867 = vmatpush3.bf16.msra.mxu0 %v14551_v15  ;;  %v14597_v11 = vld [vmem:[#allocation2 + $0xf38] sm:$0xff]  }
 0x229   :  { %13888 = vmatprep.subr.bf16.mxu1 %v14550_v14  ;;  %13868 = vmatprep.subr.bf16.mxu0 %v14553_v17  ;;  %v14598_v12 = vld [vmem:[#allocation2 + $0xfb8] sm:$0xff]   ;;  %v14601_v14 = vld [vmem:[%s16334_s0 + $0xf4] ss:$272 sps:$4 sm:$0xff]  }
 0x22a   :  { %v14602_v15 = vld [vmem:[%s16334_s0 + $0xf8] ss:$272 sps:$4 sm:$0xff]   ;;  %v14605_v17 = vld [vmem:[#allocation2 + $0x1040] sm:$0xff]  }
 0x22c   :  { %13889 = vmatpush3.bf16.msra.mxu1 %v14552_v16  ;;  %13869 = vmatpush3.bf16.msra.mxu0 %v14555_v19  ;;  %v14604_v16 = vld [vmem:[%s16334_s0 + $0xfc] ss:$272 sps:$4 sm:$0xff]   ;;  %v14607_v19 = vld [vmem:[#allocation2 + $0x1000] sm:$0xff]  }
 0x22d   :  { %13890 = vmatprep.subr.bf16.mxu1 %v14554_v18  ;;  %13870 = vmatprep.subr.bf16.mxu0 %v14557_v21  ;;  %v14606_v18 = vld [vmem:[#allocation2 + $0x10c0] sm:$0xff]   ;;  %v14609_v21 = vld [vmem:[#allocation2 + $0x1048] sm:$0xff]  }
 0x230   :  { %13891 = vmatpush3.bf16.msra.mxu1 %v14556_v20  ;;  %13871 = vmatpush3.bf16.msra.mxu0 %v14559_v23  ;;  %v14608_v20 = vld [vmem:[#allocation2 + $0x1080] sm:$0xff]   ;;  %v14610_v23 = vld [vmem:[#allocation2 + $0x10c8] sm:$0xff]  }
 0x231   :  { %13892 = vmatprep.subr.bf16.mxu1 %v14558_v22  ;;  %13900 = vmatprep.subr.bf16.mxu0 %v14567_v29 }
 0x233   :  { %6022 = vmatmul.mubr.bf16.vlgmr.msra.gmra.mrb[56].mxu0 %v14561_v25  ;;  %v14611_v25 = vld [vmem:[#allocation2 + $0x1008] sm:$0xff]  }
 0x234   :  { %13893 = vmatpush3.bf16.msra.mxu1 %v14560_v24  ;;  %13901 = vmatpush3.bf16.msra.mxu0 %v14569_v31 }
 0x235   :  { %13922 = vmatprep.subr.bf16.mxu1 %v14568_v30  ;;  %13902 = vmatprep.subr.bf16.mxu0 %v14571_v34  ;;  %v14613_v30 = vld [vmem:[#allocation2 + $0x1050] sm:$0xff]  }
 0x236   :  { %6103 = vmatprep.mubr.bf16.mxu0 %v14601_v14 }
 0x237   :  { %6063 = vmatmul.mubr.bf16.vlgmr.msra.gmra.mrb[56].mxu1 %v14564_v27  ;;  %v14612_v27 = vld [vmem:[#allocation2 + $0x1088] sm:$0xff]  }
 0x238   :  { %13923 = vmatpush3.bf16.msra.mxu1 %v14570_v32  ;;  %13903 = vmatpush3.bf16.msra.mxu0 %v14573_v39 }
 0x239   :  { %13924 = vmatprep.subr.bf16.mxu1 %v14572_v36  ;;  %13904 = vmatprep.subr.bf16.mxu0 %v14575_v45  ;;  %v14615_v36 = vld [vmem:[#allocation2 + $0x1010] sm:$0xff]  }
 0x23a   :  { %6144 = vmatprep.mubr.bf16.mxu1 %v14604_v16 }
 0x23c   :  { %13925 = vmatpush3.bf16.msra.mxu1 %v14574_v41  ;;  %13905 = vmatpush3.bf16.msra.mxu0 %v14577_v50  ;;  %v14622_v50 = vld [vmem:[#allocation2 + $0x10e0] sm:$0xff]  }
 0x23d   :  { %13926 = vmatprep.subr.bf16.mxu1 %v14576_v47  ;;  %13906 = vmatprep.subr.bf16.mxu0 %v14579_v55  ;;  %v14620_v47 = vld [vmem:[#allocation2 + $0x1098] sm:$0xff]   ;;  %v14627_v55 = vld [vmem:[#allocation2 + $0x1028] sm:$0xff]  }
 0x23f   :  { %v13608_v33 = vpop.f32.mrb[32].mxu0 }
 0x240   :  { %v13609_v35 = vpop.f32.mrb[33].mxu0  ;;  %v13630_v37 = vpop.f32.mrb[32].mxu1  ;;  %13927 = vmatpush3.bf16.msra.mxu1 %v14578_v53  ;;  %13907 = vmatpush3.bf16.msra.mxu0 %v14581_v58  ;;  %v14625_v53 = vld [vmem:[#allocation2 + $0x1068] sm:$0xff]   ;;  %v14630_v58 = vld [vmem:[#allocation2 + $0x10f0] sm:$0xff]  }
 0x241   :  { %v13610_v38 = vadd.f32 %v13609_v35, %v13608_v33  ;;  %v13631_v40 = vpop.f32.mrb[33].mxu1  ;;  %v13611_v44 = vpop.f32.mrb[34].mxu0  ;;  %13928 = vmatprep.subr.bf16.mxu1 %v14580_v57  ;;  %13908 = vmatprep.subr.bf16.mxu0 %v14583_v61  ;;  %v14614_v33 = vld [vmem:[#allocation2 + $0x10d0] sm:$0xff]   ;;  %v14633_v61 = vld [vmem:[#allocation2 + $0x1078] sm:$0xff]  }
 0x242   :  { %v13632_v43 = vadd.f32 %v13631_v40, %v13630_v37  ;;  %v13633_v46 = vpop.f32.mrb[34].mxu1  ;;  %v13612_v49 = vpop.f32.mrb[35].mxu0  ;;  %v14629_v57 = vld [vmem:[#allocation2 + $0x1070] sm:$0xff]  }
 0x243   :  { %v5532_v42 = vadd.f32 %v13610_v38, %v15858_v63  ;;  %v13613_v51 = vadd.f32 %v13612_v49, %v13611_v44  ;;  %v13634_v52 = vpop.f32.mrb[35].mxu1  ;;  %v14585_v63 = vld [vmem:[#allocation2 + $0xf20] sm:$0xff]   ;;  %v14616_v38 = vld [vmem:[#allocation2 + $0x1090] sm:$0xff]   ;;  %v14618_v44 = vld [vmem:[#allocation2 + $0x10d8] sm:$0xff]  }
 0x244   :  { %v13635_v54 = vadd.f32 %v13634_v52, %v13633_v46  ;;  %13929 = vmatpush3.bf16.msra.mxu1 %v14582_v60  ;;  %13909 = vmatpush3.bf16.msra.mxu0 %v14585_v63  ;;  %v14619_v46 = vld [vmem:[#allocation2 + $0x1018] sm:$0xff]   ;;  %v14621_v49 = vld [vmem:[#allocation2 + $0x1060] sm:$0xff]   ;;  %v14632_v60 = vld [vmem:[#allocation2 + $0x10b0] sm:$0xff]  }
 0x245   :  { %v15876_v48 = vadd.f32 %v13632_v43, %v5532_v42  ;;  %v5535_v56 = vadd.f32 %v13613_v51, %v15861_v8  ;;  %13930 = vmatprep.subr.bf16.mxu1 %v14584_v62  ;;  %13910 = vmatprep.subr.bf16.mxu0 %v14587_v1  ;;  %v14594_v8 = vld [vmem:[#allocation2 + $0xfb0] sm:$0xff]   ;;  %v14617_v42 = vld [vmem:[#allocation2 + $0x1058] sm:$0xff]   ;;  %v14623_v51 = vld [vmem:[#allocation2 + $0x1020] sm:$0xff]  }
 0x246   :  { %v14624_v52 = vld [vmem:[#allocation2 + $0x10a0] sm:$0xff]   ;;  %v14634_v62 = vld [vmem:[#allocation2 + $0x10f8] sm:$0xff]  }
 0x247   :  { %v15879_v59 = vadd.f32 %v13635_v54, %v5535_v56  ;;  %v14626_v54 = vld [vmem:[#allocation2 + $0x10e8] sm:$0xff]   ;;  %v14635_v63 = vld [vmem:[#allocation2 + $0x1038] sm:$0xff]   ;;  %v14637_v1 = vld [vmem:[%s16334_s0 + $0x100] ss:$272 sps:$4 sm:$0xff]  }
 0x248   :  { %13931 = vmatpush3.bf16.msra.mxu1 %v14586_v0  ;;  %13911 = vmatpush3.bf16.msra.mxu0 %v14589_v3  ;;  %v14628_v56 = vld [vmem:[#allocation2 + $0x10a8] sm:$0xff]   ;;  %v14636_v0 = vld [vmem:[#allocation2 + $0x10b8] sm:$0xff]  }
 0x249   :  { %13932 = vmatprep.subr.bf16.mxu1 %v14588_v2  ;;  %13912 = vmatprep.subr.bf16.mxu0 %v14591_v5  ;;  %v14639_v2 = vld [vmem:[%s16334_s0 + $0x104] ss:$272 sps:$4 sm:$0xff]   ;;  %v14640_v3 = vld [vmem:[%s16334_s0 + $0x108] ss:$272 sps:$4 sm:$0xff]  }
 0x24c   :  { %13933 = vmatpush3.bf16.msra.mxu1 %v14590_v4  ;;  %13913 = vmatpush3.bf16.msra.mxu0 %v14593_v7  ;;  %v14642_v4 = vld [vmem:[%s16334_s0 + $0x10c] ss:$272 sps:$4 sm:$0xff]  }
 0x24d   :  { %13934 = vmatprep.subr.bf16.mxu1 %v14592_v6  ;;  %13914 = vmatprep.subr.bf16.mxu0 %v14595_v9 }
 0x250   :  { %13935 = vmatpush3.bf16.msra.mxu1 %v14594_v8  ;;  %13915 = vmatpush3.bf16.msra.mxu0 %v14597_v11 }
 0x251   :  { %13936 = vmatprep.subr.bf16.mxu1 %v14596_v10  ;;  %13944 = vmatprep.subr.bf16.mxu0 %v14605_v17 }
 0x253   :  { %6104 = vmatmul.mubr.bf16.vlgmr.msra.gmra.mrb[60].mxu0 %v14599_v13 }
 0x254   :  { %13937 = vmatpush3.bf16.msra.mxu1 %v14598_v12  ;;  %13945 = vmatpush3.bf16.msra.mxu0 %v14607_v19 }
 0x255   :  { %13966 = vmatprep.subr.bf16.mxu1 %v14606_v18  ;;  %13946 = vmatprep.subr.bf16.mxu0 %v14609_v21 }
 0x256   :  { %6185 = vmatprep.mubr.bf16.mxu0 %v14639_v2 }
 0x257   :  { %6145 = vmatmul.mubr.bf16.vlgmr.msra.gmra.mrb[60].mxu1 %v14602_v15 }
 0x258   :  { %13967 = vmatpush3.bf16.msra.mxu1 %v14608_v20  ;;  %13947 = vmatpush3.bf16.msra.mxu0 %v14611_v25 }
 0x259   :  { %13968 = vmatprep.subr.bf16.mxu1 %v14610_v23  ;;  %13948 = vmatprep.subr.bf16.mxu0 %v14613_v30 }
 0x25a   :  { %6226 = vmatprep.mubr.bf16.mxu1 %v14642_v4 }
 0x25c   :  { %13969 = vmatpush3.bf16.msra.mxu1 %v14612_v27  ;;  %13949 = vmatpush3.bf16.msra.mxu0 %v14615_v36 }
 0x25d   :  { %13970 = vmatprep.subr.bf16.mxu1 %v14614_v33  ;;  %13950 = vmatprep.subr.bf16.mxu0 %v14617_v42  ;;  %v14654_v42 = vld [vmem:[#allocation6 + $0x22c] ss:$272 sps:$4 sm:$0xff]  }
 0x260   :  { %v13652_v22 = vpop.f32.mrb[36].mxu0  ;;  %13971 = vmatpush3.bf16.msra.mxu1 %v14616_v38  ;;  %13951 = vmatpush3.bf16.msra.mxu0 %v14619_v46  ;;  %v14645_v38 = vld [vmem:[#allocation6 + $0x4] ss:$272 sps:$4 sm:$0xff]   ;;  %v14655_v46 = vld [vmem:[#allocation6 + $0x440] ss:$272 sps:$4 sm:$0xff]  }
 0x261   :  { %v13653_v26 = vpop.f32.mrb[37].mxu0  ;;  %13972 = vmatprep.subr.bf16.mxu1 %v14618_v44  ;;  %13952 = vmatprep.subr.bf16.mxu0 %v14621_v49  ;;  %v14652_v44 = vld [vmem:[#allocation6 + $0x228] ss:$272 sps:$4 sm:$0xff]   ;;  %v14663_v49 = vld [vmem:[#allocation6 + $0x664] ss:$272 sps:$4 sm:$0xff]  }
 0x262   :  { %v13654_v28 = vadd.f32 %v13653_v26, %v13652_v22  ;;  %v13655_v32 = vpop.f32.mrb[38].mxu0 }
 0x263   :  { %v13656_v37 = vpop.f32.mrb[39].mxu0 }
 0x264   :  { %v5614_v34 = vadd.f32 %v13654_v28, %v15876_v48  ;;  %v13657_v40 = vadd.f32 %v13656_v37, %v13655_v32  ;;  %13973 = vmatpush3.bf16.msra.mxu1 %v14620_v47  ;;  %13953 = vmatpush3.bf16.msra.mxu0 %v14623_v51  ;;  %v14643_v37 = vld [vmem:[#allocation6] ss:$272 sps:$4 sm:$0xff]   ;;  %v14660_v47 = vld [vmem:[#allocation6 + $0x44c] ss:$272 sps:$4 sm:$0xff]  }
 0x265   :  { %13974 = vmatprep.subr.bf16.mxu1 %v14622_v50  ;;  %13954 = vmatprep.subr.bf16.mxu0 %v14625_v53  ;;  %v14666_v50 = vld [vmem:[#allocation6 + $0x66c] ss:$272 sps:$4 sm:$0xff]   ;;  %v14661_v51 = vld [vmem:[#allocation6 + $0x660] ss:$272 sps:$4 sm:$0xff]   ;;  %v14669_v53 = vld [vmem:[#allocation6 + $0x884] ss:$272 sps:$4 sm:$0xff]  }
 0x266   :  { %v5617_v45 = vadd.f32 %v13657_v40, %v15879_v59  ;;  %v14631_v59 = vld [vmem:[#allocation2 + $0x1030] sm:$0xff]  }
 0x267   :  { %v14648_v40 = vld [vmem:[#allocation6 + $0xc] ss:$272 sps:$4 sm:$0xff]  }
 0x268   :  { %13975 = vmatpush3.bf16.msra.mxu1 %v14624_v52  ;;  %13955 = vmatpush3.bf16.msra.mxu0 %v14627_v55  ;;  %v14664_v52 = vld [vmem:[#allocation6 + $0x668] ss:$272 sps:$4 sm:$0xff]   ;;  %v14667_v55 = vld [vmem:[#allocation6 + $0x880] ss:$272 sps:$4 sm:$0xff]  }
 0x269   :  { %13976 = vmatprep.subr.bf16.mxu1 %v14626_v54  ;;  %13956 = vmatprep.subr.bf16.mxu0 %v14629_v57  ;;  %v14672_v54 = vld [vmem:[#allocation6 + $0x88c] ss:$272 sps:$4 sm:$0xff]  }
 0x26a   :  { %v13674_v24 = vpop.f32.mrb[36].mxu1 }
 0x26b   :  { %v13675_v29 = vpop.f32.mrb[37].mxu1 }
 0x26c   :  { %v13676_v31 = vadd.f32 %v13675_v29, %v13674_v24  ;;  %v13677_v35 = vpop.f32.mrb[38].mxu1  ;;  %13977 = vmatpush3.bf16.msra.mxu1 %v14628_v56  ;;  %13957 = vmatpush3.bf16.msra.mxu0 %v14631_v59  ;;  %v14670_v56 = vld [vmem:[#allocation6 + $0x888] ss:$272 sps:$4 sm:$0xff]  }
 0x26d   :  { %v13678_v41 = vpop.f32.mrb[39].mxu1  ;;  %13978 = vmatprep.subr.bf16.mxu1 %v14630_v58  ;;  %13958 = vmatprep.subr.bf16.mxu0 %v14633_v61 }
 0x26e   :  { %v15894_v39 = vadd.f32 %v13676_v31, %v5614_v34  ;;  %v13679_v43 = vadd.f32 %v13678_v41, %v13677_v35  ;;  %v14651_v41 = vld [vmem:[#allocation6 + $0x224] ss:$272 sps:$4 sm:$0xff]  }
 0x270   :  { %v5658_v48 = vadd.f32 %v13679_v43, %v5617_v45  ;;  %13979 = vmatpush3.bf16.msra.mxu1 %v14632_v60  ;;  %13959 = vmatpush3.bf16.msra.mxu0 %v14635_v63  ;;  %v14649_v43 = vld [vmem:[#allocation6 + $0x220] ss:$272 sps:$4 sm:$0xff]   ;;  %v14657_v45 = vld [vmem:[#allocation6 + $0x444] ss:$272 sps:$4 sm:$0xff]  }
 0x271   :  { %13980 = vmatprep.subr.bf16.mxu1 %v14634_v62  ;;  %9862 = vmatprep.subr.bf16.mxu0 %v14645_v38 }
 0x273   :  { %6186 = vmatmul.mubr.bf16.vlgmr.msra.gmra.mrb[64].mxu0 %v14637_v1 }
 0x274   :  { %13981 = vmatpush3.bf16.msra.mxu1 %v14636_v0  ;;  %9863 = vmatpush1.bf16.msra.mxu0 %v14643_v37 }
 0x275   :  { %9905 = vmatprep.subr.bf16.mxu1 %v14648_v40  ;;  %9864 = vmatprep.subr.bf16.mxu0 %v14651_v41 }
 0x277   :  { %6227 = vmatmul.mubr.bf16.vlgmr.msra.gmra.mrb[64].mxu1 %v14640_v3 }
 0x278   :  { %9865 = vmatpush1.bf16.msra.mxu0 %v14649_v43 }
 0x279   :  { %9866 = vmatprep.subr.bf16.mxu0 %v14657_v45 }
 0x27c   :  { %9867 = vmatpush1.bf16.msra.mxu0 %v14655_v46 }
 0x27d   :  { %9868 = vmatprep.subr.bf16.mxu0 %v14663_v49 }
 0x280   :  { %v13696_v5 = vpop.f32.mrb[40].mxu0  ;;  %9869 = vmatpush1.bf16.msra.mxu0 %v14661_v51 }
 0x281   :  { %v13697_v7 = vpop.f32.mrb[41].mxu0  ;;  %9870 = vmatprep.subr.bf16.mxu0 %v14669_v53 }
 0x282   :  { %v13698_v8 = vadd.f32 %v13697_v7, %v13696_v5  ;;  %v13699_v10 = vpop.f32.mrb[42].mxu0 }
 0x283   :  { %v13700_v13 = vpop.f32.mrb[43].mxu0 }
 0x284   :  { %v5696_v14 = vadd.f32 %v13698_v8, %v15894_v39  ;;  %v13701_v15 = vadd.f32 %v13700_v13, %v13699_v10  ;;  %v14646_v39 = vld [vmem:[#allocation6 + $0x8] ss:$272 sps:$4 sm:$0xff]   ;;  %9871 = vmatpush1.bf16.msra.mxu0 %v14667_v55  ;;  %v14678_v10 = vld [vmem:[#allocation6 + $0xaac] ss:$272 sps:$4 sm:$0xff]   ;;  %v14681_v13 = vld [vmem:[#allocation6 + $0xcc4] ss:$272 sps:$4 sm:$0xff]  }
 0x285   :  { %9906 = vmatpush1.bf16.msra.mxu1 %v14646_v39 }
 0x286   :  { %v5699_v19 = vadd.f32 %v13701_v15, %v5658_v48  ;;  %9907 = vmatprep.subr.bf16.mxu1 %v14654_v42  ;;  %v14658_v48 = vld [vmem:[#allocation6 + $0x448] ss:$272 sps:$4 sm:$0xff]   ;;  %v14679_v15 = vld [vmem:[#allocation6 + $0xcc0] ss:$272 sps:$4 sm:$0xff]  }
 0x289   :  { %9908 = vmatpush1.bf16.msra.mxu1 %v14652_v44 }
 0x28a   :  { %v13718_v6 = vpop.f32.mrb[40].mxu1  ;;  %9909 = vmatprep.subr.bf16.mxu1 %v14660_v47 }
 0x28b   :  { %v13719_v9 = vpop.f32.mrb[41].mxu1 }
 0x28c   :  { %v13720_v11 = vadd.f32 %v13719_v9, %v13718_v6  ;;  %v13721_v12 = vpop.f32.mrb[42].mxu1  ;;  %v14675_v9 = vld [vmem:[#allocation6 + $0xaa4] ss:$272 sps:$4 sm:$0xff]  }
 0x28d   :  { %v13722_v16 = vpop.f32.mrb[43].mxu1  ;;  %9910 = vmatpush1.bf16.msra.mxu1 %v14658_v48  ;;  %9872 = vmatprep.subr.bf16.mxu0 %v14675_v9 }
 0x28e   :  { %v13723_v17 = vadd.f32 %v13722_v16, %v13721_v12  ;;  %v5737_v18 = vadd.f32 %v13720_v11, %v5696_v14  ;;  %9911 = vmatprep.subr.bf16.mxu1 %v14666_v50  ;;  %v14673_v11 = vld [vmem:[#allocation6 + $0xaa0] ss:$272 sps:$4 sm:$0xff]   ;;  %v14676_v12 = vld [vmem:[#allocation6 + $0xaa8] ss:$272 sps:$4 sm:$0xff]   ;;  %v14684_v14 = vld [vmem:[#allocation6 + $0xccc] ss:$272 sps:$4 sm:$0xff]  }
 0x28f   :  { %9873 = vmatpush1.bf16.msra.mxu0 %v14673_v11  ;;  %v14682_v16 = vld [vmem:[#allocation6 + $0xcc8] ss:$272 sps:$4 sm:$0xff]  }
 0x290   :  { %v5740_v20 = vadd.f32 %v13723_v17, %v5699_v19  ;;  %9874 = vmatprep.subr.bf16.mxu0 %v14681_v13  ;;  %v14687_v17 = vld [vmem:[#allocation6 + $0xee4] ss:$272 sps:$4 sm:$0xff]   ;;  %v14685_v19 = vld [vmem:[#allocation6 + $0xee0] ss:$272 sps:$4 sm:$0xff]  }
 0x291   :  { %9912 = vmatpush1.bf16.msra.mxu1 %v14664_v52 }
 0x292   :  { %9913 = vmatprep.subr.bf16.mxu1 %v14672_v54 }
 0x293   :  { %9875 = vmatpush1.bf16.msra.mxu0 %v14679_v15 }
 0x294   :  { %9876 = vmatprep.subr.bf16.mxu0 %v14687_v17 }
 0x295   :  { %9914 = vmatpush1.bf16.msra.mxu1 %v14670_v56 }
 0x296   :  { %9915 = vmatprep.subr.bf16.mxu1 %v14678_v10 }
 0x297   :  { %9877 = vmatpush1.bf16.msra.mxu0 %v14685_v19 }
 0x299   :  { %9916 = vmatpush1.bf16.msra.mxu1 %v14676_v12 }
 0x29a   :  { %9917 = vmatprep.subr.bf16.mxu1 %v14684_v14 }
 0x29d   :  { %9918 = vmatpush1.bf16.msra.mxu1 %v14682_v16 }
 0x2a6   :  { %v13740_v21 = vpop.f32.mrb[44].mxu0 }
 0x2a7   :  { %v13741_v22 = vpop.f32.mrb[45].mxu0 }
 0x2a8   :  { %v13742_v24 = vadd.f32 %v13741_v22, %v13740_v21  ;;  %v13743_v25 = vpop.f32.mrb[46].mxu0  ;;  %v14693_v21 = vld [vmem:[#allocation6 + $0x14] ss:$272 sps:$4 sm:$0xff]   ;;  %v15561_v22 = vmov 0  }
 0x2a9   :  { %v13744_v27 = vpop.f32.mrb[47].mxu0  ;;  %9894 = vmatprep.mubr.bf16.mxu0 %v15561_v22  ;;  %9937 = vmatprep.mubr.bf16.mxu1 %v15561_v22 }
 0x2aa   :  { %v13762_v23 = vpop.f32.mrb[44].mxu1  ;;  %v5778_v28 = vadd.f32 %v13742_v24, %v5737_v18  ;;  %v13745_v31 = vadd.f32 %v13744_v27, %v13743_v25  ;;  %v14690_v18 = vld [vmem:[#allocation6 + $0xeec] ss:$272 sps:$4 sm:$0xff]   ;;  %9948 = vmatprep.subr.bf16.mxu0 %v14693_v21 }
 0x2ab   :  { %v13763_v26 = vpop.f32.mrb[45].mxu1  ;;  %9919 = vmatprep.subr.bf16.mxu1 %v14690_v18 }
 0x2ac   :  { %v13764_v29 = vadd.f32 %v13763_v26, %v13762_v23  ;;  %v13765_v30 = vpop.f32.mrb[46].mxu1  ;;  %v5781_v34 = vadd.f32 %v13745_v31, %v5740_v20  ;;  %v14688_v20 = vld [vmem:[#allocation6 + $0xee8] ss:$272 sps:$4 sm:$0xff]   ;;  %v14696_v23 = vld [vmem:[#allocation6 + $0x1c] ss:$272 sps:$4 sm:$0xff]  }
 0x2ad   :  { %v13766_v32 = vpop.f32.mrb[47].mxu1  ;;  %9920 = vmatpush1.bf16.msra.mxu1 %v14688_v20 }
 0x2ae   :  { %v5819_v33 = vadd.f32 %v13764_v29, %v5778_v28  ;;  %v13767_v35 = vadd.f32 %v13766_v32, %v13765_v30  ;;  %9991 = vmatprep.subr.bf16.mxu1 %v14696_v23 }
 0x2b0   :  { %v5822_v36 = vadd.f32 %v13767_v35, %v5781_v34 }
 0x2c6   :  { %v13784_v57 = vpop.f32.mrb[48].mxu0 }
 0x2c7   :  { %v13785_v59 = vpop.f32.mrb[49].mxu0 }
 0x2c8   :  { %v13786_v60 = vadd.f32 %v13785_v59, %v13784_v57  ;;  %v13787_v62 = vpop.f32.mrb[50].mxu0 }
 0x2c9   :  { %v13788_v1 = vpop.f32.mrb[51].mxu0 }
 0x2ca   :  { %v13806_v58 = vpop.f32.mrb[48].mxu1  ;;  %v5860_v2 = vadd.f32 %v13786_v60, %v5819_v33  ;;  %v13789_v3 = vadd.f32 %v13788_v1, %v13787_v62 }
 0x2cb   :  { %v13807_v61 = vpop.f32.mrb[49].mxu1 }
 0x2cc   :  { %v13808_v63 = vadd.f32 %v13807_v61, %v13806_v58  ;;  %v13809_v0 = vpop.f32.mrb[50].mxu1  ;;  %v5863_v7 = vadd.f32 %v13789_v3, %v5822_v36 }
 0x2cd   :  { %v13810_v4 = vpop.f32.mrb[51].mxu1 }
 0x2ce   :  { %v13811_v5 = vadd.f32 %v13810_v4, %v13809_v0  ;;  %v5901_v6 = vadd.f32 %v13808_v63, %v5860_v2 }
 0x2d0   :  { %v5904_v8 = vadd.f32 %v13811_v5, %v5863_v7 }
 0x2e6   :  { %v13828_v24 = vpop.f32.mrb[52].mxu0 }
 0x2e7   :  { %v13829_v26 = vpop.f32.mrb[53].mxu0 }
 0x2e8   :  { %v13830_v27 = vadd.f32 %v13829_v26, %v13828_v24  ;;  %v13831_v29 = vpop.f32.mrb[54].mxu0  ;;  %v14691_v26 = vld [vmem:[#allocation6 + $0x10] ss:$272 sps:$4 sm:$0xff]  }
 0x2e9   :  { %v13832_v32 = vpop.f32.mrb[55].mxu0 }
 0x2ea   :  { %v13850_v25 = vpop.f32.mrb[52].mxu1  ;;  %v5942_v33 = vadd.f32 %v13830_v27, %v5901_v6  ;;  %v13833_v34 = vadd.f32 %v13832_v32, %v13831_v29  ;;  %v14694_v27 = vld [vmem:[#allocation6 + $0x18] ss:$272 sps:$4 sm:$0xff]   ;;  %v14697_v32 = vld [vmem:[#allocation6 + $0x230] ss:$272 sps:$4 sm:$0xff]  }
 0x2eb   :  { %v13851_v28 = vpop.f32.mrb[53].mxu1 }
 0x2ec   :  { %v13852_v30 = vadd.f32 %v13851_v28, %v13850_v25  ;;  %v13853_v31 = vpop.f32.mrb[54].mxu1  ;;  %v5945_v38 = vadd.f32 %v13833_v34, %v5904_v8  ;;  %v14705_v34 = vld [vmem:[#allocation6 + $0x454] ss:$272 sps:$4 sm:$0xff]  }
 0x2ed   :  { %v13854_v35 = vpop.f32.mrb[55].mxu1 }
 0x2ee   :  { %v13855_v36 = vadd.f32 %v13854_v35, %v13853_v31  ;;  %v5983_v37 = vadd.f32 %v13852_v30, %v5942_v33  ;;  %v14699_v30 = vld [vmem:[#allocation6 + $0x234] ss:$272 sps:$4 sm:$0xff]   ;;  %v14702_v31 = vld [vmem:[#allocation6 + $0x23c] ss:$272 sps:$4 sm:$0xff]   ;;  %v14700_v33 = vld [vmem:[#allocation6 + $0x238] ss:$272 sps:$4 sm:$0xff]  }
 0x2ef   :  { %v14708_v35 = vld [vmem:[#allocation6 + $0x45c] ss:$272 sps:$4 sm:$0xff]  }
 0x2f0   :  { %v5986_v39 = vadd.f32 %v13855_v36, %v5945_v38  ;;  %v14703_v36 = vld [vmem:[#allocation6 + $0x450] ss:$272 sps:$4 sm:$0xff]   ;;  %v14711_v38 = vld [vmem:[#allocation6 + $0x674] ss:$272 sps:$4 sm:$0xff]  }
 0x306   :  { %v13872_v40 = vpop.f32.mrb[56].mxu0 }
 0x307   :  { %v13873_v41 = vpop.f32.mrb[57].mxu0 }
 0x308   :  { %v13874_v43 = vadd.f32 %v13873_v41, %v13872_v40  ;;  %v13875_v44 = vpop.f32.mrb[58].mxu0  ;;  %v14709_v40 = vld [vmem:[#allocation6 + $0x670] ss:$272 sps:$4 sm:$0xff]   ;;  %v14712_v41 = vld [vmem:[#allocation6 + $0x678] ss:$272 sps:$4 sm:$0xff]  }
 0x309   :  { %v13876_v46 = vpop.f32.mrb[59].mxu0 }
 0x30a   :  { %v13894_v42 = vpop.f32.mrb[56].mxu1  ;;  %v6024_v47 = vadd.f32 %v13874_v43, %v5983_v37  ;;  %v13877_v50 = vadd.f32 %v13876_v46, %v13875_v44  ;;  %v14706_v37 = vld [vmem:[#allocation6 + $0x458] ss:$272 sps:$4 sm:$0xff]   ;;  %v14720_v43 = vld [vmem:[#allocation6 + $0x89c] ss:$272 sps:$4 sm:$0xff]  }
 0x30b   :  { %v13895_v45 = vpop.f32.mrb[57].mxu1  ;;  %v14715_v44 = vld [vmem:[#allocation6 + $0x890] ss:$272 sps:$4 sm:$0xff]   ;;  %v14723_v46 = vld [vmem:[#allocation6 + $0xab4] ss:$272 sps:$4 sm:$0xff]  }
 0x30c   :  { %v13896_v48 = vadd.f32 %v13895_v45, %v13894_v42  ;;  %v13897_v49 = vpop.f32.mrb[58].mxu1  ;;  %v6027_v53 = vadd.f32 %v13877_v50, %v5986_v39  ;;  %v14714_v39 = vld [vmem:[#allocation6 + $0x67c] ss:$272 sps:$4 sm:$0xff]   ;;  %v14717_v42 = vld [vmem:[#allocation6 + $0x894] ss:$272 sps:$4 sm:$0xff]  }
 0x30d   :  { %v13898_v51 = vpop.f32.mrb[59].mxu1  ;;  %v14718_v45 = vld [vmem:[#allocation6 + $0x898] ss:$272 sps:$4 sm:$0xff]   ;;  %v14729_v50 = vld [vmem:[#allocation6 + $0xcd4] ss:$272 sps:$4 sm:$0xff]  }
 0x30e   :  { %v6065_v52 = vadd.f32 %v13896_v48, %v6024_v47  ;;  %v13899_v54 = vadd.f32 %v13898_v51, %v13897_v49  ;;  %v14726_v47 = vld [vmem:[#allocation6 + $0xabc] ss:$272 sps:$4 sm:$0xff]   ;;  %v14721_v48 = vld [vmem:[#allocation6 + $0xab0] ss:$272 sps:$4 sm:$0xff]   ;;  %v14724_v49 = vld [vmem:[#allocation6 + $0xab8] ss:$272 sps:$4 sm:$0xff]  }
 0x30f   :  { %v14732_v51 = vld [vmem:[#allocation6 + $0xcdc] ss:$272 sps:$4 sm:$0xff]  }
 0x310   :  { %v6068_v55 = vadd.f32 %v13899_v54, %v6027_v53  ;;  %v14730_v53 = vld [vmem:[#allocation6 + $0xcd8] ss:$272 sps:$4 sm:$0xff]   ;;  %v14735_v54 = vld [vmem:[#allocation6 + $0xef4] ss:$272 sps:$4 sm:$0xff]  }
 0x326   :  { %v13916_v56 = vpop.f32.mrb[60].mxu0 }
 0x327   :  { %v13917_v58 = vpop.f32.mrb[61].mxu0 }
 0x328   :  { %v13918_v59 = vadd.f32 %v13917_v58, %v13916_v56  ;;  %v13919_v61 = vpop.f32.mrb[62].mxu0  ;;  %v14733_v56 = vld [vmem:[#allocation6 + $0xef0] ss:$272 sps:$4 sm:$0xff]   ;;  %v14741_v58 = vld [vmem:[#allocation6 + $0x24] ss:$272 sps:$4 sm:$0xff]  }
 0x329   :  { %v13920_v0 = vpop.f32.mrb[63].mxu0 }
 0x32a   :  { %v13938_v57 = vpop.f32.mrb[60].mxu1  ;;  %v6106_v1 = vadd.f32 %v13918_v59, %v6065_v52  ;;  %v13921_v2 = vadd.f32 %v13920_v0, %v13919_v61  ;;  %v14727_v52 = vld [vmem:[#allocation6 + $0xcd0] ss:$272 sps:$4 sm:$0xff]   ;;  %v14744_v59 = vld [vmem:[#allocation6 + $0x2c] ss:$272 sps:$4 sm:$0xff]  }
 0x32b   :  { %v13939_v60 = vpop.f32.mrb[61].mxu1  ;;  %v14742_v61 = vld [vmem:[#allocation6 + $0x28] ss:$272 sps:$4 sm:$0xff]   ;;  %v14745_v0 = vld [vmem:[#allocation6 + $0x240] ss:$272 sps:$4 sm:$0xff]  }
 0x32c   :  { %v13940_v62 = vadd.f32 %v13939_v60, %v13938_v57  ;;  %v13941_v63 = vpop.f32.mrb[62].mxu1  ;;  %v6109_v6 = vadd.f32 %v13921_v2, %v6068_v55  ;;  %v14738_v55 = vld [vmem:[#allocation6 + $0xefc] ss:$272 sps:$4 sm:$0xff]   ;;  %v14736_v57 = vld [vmem:[#allocation6 + $0xef8] ss:$272 sps:$4 sm:$0xff]  }
 0x32d   :  { %v13942_v3 = vpop.f32.mrb[63].mxu1  ;;  %v14739_v60 = vld [vmem:[#allocation6 + $0x20] ss:$272 sps:$4 sm:$0xff]   ;;  %v14753_v2 = vld [vmem:[#allocation6 + $0x464] ss:$272 sps:$4 sm:$0xff]  }
 0x32e   :  { %v13943_v4 = vadd.f32 %v13942_v3, %v13941_v63  ;;  %v6147_v5 = vadd.f32 %v13940_v62, %v6106_v1  ;;  %v14747_v62 = vld [vmem:[#allocation6 + $0x244] ss:$272 sps:$4 sm:$0xff]   ;;  %v14750_v63 = vld [vmem:[#allocation6 + $0x24c] ss:$272 sps:$4 sm:$0xff]   ;;  %v14748_v1 = vld [vmem:[#allocation6 + $0x248] ss:$272 sps:$4 sm:$0xff]  }
 0x32f   :  { %v14756_v3 = vld [vmem:[#allocation6 + $0x46c] ss:$272 sps:$4 sm:$0xff]  }
 0x330   :  { %v6150_v7 = vadd.f32 %v13943_v4, %v6109_v6  ;;  %v14751_v4 = vld [vmem:[#allocation6 + $0x460] ss:$272 sps:$4 sm:$0xff]   ;;  %v14759_v6 = vld [vmem:[#allocation6 + $0x684] ss:$272 sps:$4 sm:$0xff]  }
 0x346   :  { %v13960_v8 = vpop.f32.mrb[64].mxu0 }
 0x347   :  { %v13961_v10 = vpop.f32.mrb[65].mxu0 }
 0x348   :  { %v13962_v11 = vadd.f32 %v13961_v10, %v13960_v8  ;;  %v13963_v13 = vpop.f32.mrb[66].mxu0  ;;  %v14757_v8 = vld [vmem:[#allocation6 + $0x680] ss:$272 sps:$4 sm:$0xff]   ;;  %v14765_v10 = vld [vmem:[#allocation6 + $0x8a4] ss:$272 sps:$4 sm:$0xff]  }
 0x349   :  { %v13964_v16 = vpop.f32.mrb[67].mxu0 }
 0x34a   :  { %v13982_v9 = vpop.f32.mrb[64].mxu1  ;;  %v6188_v17 = vadd.f32 %v13962_v11, %v6147_v5  ;;  %v13965_v18 = vadd.f32 %v13964_v16, %v13963_v13  ;;  %v14754_v5 = vld [vmem:[#allocation6 + $0x468] ss:$272 sps:$4 sm:$0xff]   ;;  %v14768_v11 = vld [vmem:[#allocation6 + $0x8ac] ss:$272 sps:$4 sm:$0xff]  }
 0x34b   :  { %v13983_v12 = vpop.f32.mrb[65].mxu1  ;;  %v14766_v13 = vld [vmem:[#allocation6 + $0x8a8] ss:$272 sps:$4 sm:$0xff]   ;;  %v14769_v16 = vld [vmem:[#allocation6 + $0xac0] ss:$272 sps:$4 sm:$0xff]  }
 0x34c   :  { %v13984_v14 = vadd.f32 %v13983_v12, %v13982_v9  ;;  %v13985_v15 = vpop.f32.mrb[66].mxu1  ;;  %v6191_v23 = vadd.f32 %v13965_v18, %v6150_v7  ;;  %v14762_v7 = vld [vmem:[#allocation6 + $0x68c] ss:$272 sps:$4 sm:$0xff]   ;;  %v14760_v9 = vld [vmem:[#allocation6 + $0x688] ss:$272 sps:$4 sm:$0xff]  }
 0x34d   :  { %v13986_v19 = vpop.f32.mrb[67].mxu1  ;;  %v14763_v12 = vld [vmem:[#allocation6 + $0x8a0] ss:$272 sps:$4 sm:$0xff]   ;;  %v14777_v18 = vld [vmem:[#allocation6 + $0xce4] ss:$272 sps:$4 sm:$0xff]  }
 0x34e   :  { %v13987_v20 = vadd.f32 %v13986_v19, %v13985_v15  ;;  %v6229_v21 = vadd.f32 %v13984_v14, %v6188_v17  ;;  %v14771_v14 = vld [vmem:[#allocation6 + $0xac4] ss:$272 sps:$4 sm:$0xff]   ;;  %v14774_v15 = vld [vmem:[#allocation6 + $0xacc] ss:$272 sps:$4 sm:$0xff]   ;;  %v14772_v17 = vld [vmem:[#allocation6 + $0xac8] ss:$272 sps:$4 sm:$0xff]  }
 0x34f   :  { %v14780_v19 = vld [vmem:[#allocation6 + $0xcec] ss:$272 sps:$4 sm:$0xff]  }
 0x350   :  { %v6235_v24 = vmax.f32 %v6229_v21, 0.0  ;;  %v6232_v25 = vadd.f32 %v13987_v20, %v6191_v23  ;;  %v14775_v20 = vld [vmem:[#allocation6 + $0xce0] ss:$272 sps:$4 sm:$0xff]   ;;  %v14778_v21 = vld [vmem:[#allocation6 + $0xce8] ss:$272 sps:$4 sm:$0xff]  }
 0x351   :  { %v14783_v23 = vld [vmem:[#allocation6 + $0xf04] ss:$272 sps:$4 sm:$0xff]  }
 0x352   :  { %6237 = vst [vmem:[%s16340_s6] sm:$0xff] %v6235_v24  ;;  %v6236_v28 = vmax.f32 %v6232_v25, 0.0  ;;  %v14781_v25 = vld [vmem:[#allocation6 + $0xf00] ss:$272 sps:$4 sm:$0xff]  }
 0x354   :  { %6238 = vst [vmem:[%s16340_s6 + $0x8] sm:$0xff] %v6236_v28  ;;  %v15918_v29 = vpack.c.bf16 %v6236_v28, %v6235_v24  ;;  %v14786_v24 = vld [vmem:[#allocation6 + $0xf0c] ss:$272 sps:$4 sm:$0xff]  }
 0x355   :  { %v14792_v28 = vld [vmem:[#allocation6 + $0x3c] ss:$272 sps:$4 sm:$0xff]  }
 0x356   :  { %9895 = vmatmul.mubr.bf16.vlgmr.msra.gmra.mrb[68].mxu0 %v15918_v29  ;;  %9938 = vmatmul.mubr.bf16.vlgmr.msra.gmra.mrb[68].mxu1 %v15918_v29 }
 0x357   :  { %9949 = vmatpush1.bf16.msra.mxu0 %v14691_v26  ;;  %9992 = vmatpush1.bf16.msra.mxu1 %v14694_v27  ;;  %v14784_v26 = vld [vmem:[#allocation6 + $0xf08] ss:$272 sps:$4 sm:$0xff]   ;;  %v14789_v27 = vld [vmem:[#allocation6 + $0x34] ss:$272 sps:$4 sm:$0xff]  }
 0x358   :  { %9950 = vmatprep.subr.bf16.mxu0 %v14699_v30  ;;  %9993 = vmatprep.subr.bf16.mxu1 %v14702_v31  ;;  %v14787_v30 = vld [vmem:[#allocation6 + $0x30] ss:$272 sps:$4 sm:$0xff]   ;;  %v14790_v31 = vld [vmem:[#allocation6 + $0x38] ss:$272 sps:$4 sm:$0xff]  }
 0x359   :  { %9980 = vmatprep.mubr.bf16.mxu0 %v15561_v22  ;;  %10023 = vmatprep.mubr.bf16.mxu1 %v15561_v22 }
 0x35b   :  { %9951 = vmatpush1.bf16.msra.mxu0 %v14697_v32  ;;  %9994 = vmatpush1.bf16.msra.mxu1 %v14700_v33  ;;  %v14795_v32 = vld [vmem:[#allocation6 + $0x254] ss:$272 sps:$4 sm:$0xff]   ;;  %v14798_v33 = vld [vmem:[#allocation6 + $0x25c] ss:$272 sps:$4 sm:$0xff]  }
 0x35c   :  { %9952 = vmatprep.subr.bf16.mxu0 %v14705_v34  ;;  %9995 = vmatprep.subr.bf16.mxu1 %v14708_v35  ;;  %v14793_v34 = vld [vmem:[#allocation6 + $0x250] ss:$272 sps:$4 sm:$0xff]   ;;  %v14796_v35 = vld [vmem:[#allocation6 + $0x258] ss:$272 sps:$4 sm:$0xff]  }
 0x35f   :  { %9953 = vmatpush1.bf16.msra.mxu0 %v14703_v36  ;;  %9996 = vmatpush1.bf16.msra.mxu1 %v14706_v37  ;;  %v14801_v36 = vld [vmem:[#allocation6 + $0x474] ss:$272 sps:$4 sm:$0xff]   ;;  %v14804_v37 = vld [vmem:[#allocation6 + $0x47c] ss:$272 sps:$4 sm:$0xff]  }
 0x360   :  { %9954 = vmatprep.subr.bf16.mxu0 %v14711_v38  ;;  %9997 = vmatprep.subr.bf16.mxu1 %v14714_v39  ;;  %v14799_v38 = vld [vmem:[#allocation6 + $0x470] ss:$272 sps:$4 sm:$0xff]   ;;  %v14802_v39 = vld [vmem:[#allocation6 + $0x478] ss:$272 sps:$4 sm:$0xff]  }
 0x363   :  { %9955 = vmatpush1.bf16.msra.mxu0 %v14709_v40  ;;  %9998 = vmatpush1.bf16.msra.mxu1 %v14712_v41  ;;  %v14807_v40 = vld [vmem:[#allocation6 + $0x694] ss:$272 sps:$4 sm:$0xff]   ;;  %v14810_v41 = vld [vmem:[#allocation6 + $0x69c] ss:$272 sps:$4 sm:$0xff]  }
 0x364   :  { %9956 = vmatprep.subr.bf16.mxu0 %v14717_v42  ;;  %9999 = vmatprep.subr.bf16.mxu1 %v14720_v43  ;;  %v14805_v42 = vld [vmem:[#allocation6 + $0x690] ss:$272 sps:$4 sm:$0xff]   ;;  %v14808_v43 = vld [vmem:[#allocation6 + $0x698] ss:$272 sps:$4 sm:$0xff]  }
 0x367   :  { %9957 = vmatpush1.bf16.msra.mxu0 %v14715_v44  ;;  %10000 = vmatpush1.bf16.msra.mxu1 %v14718_v45  ;;  %v14813_v44 = vld [vmem:[#allocation6 + $0x8b4] ss:$272 sps:$4 sm:$0xff]   ;;  %v14816_v45 = vld [vmem:[#allocation6 + $0x8bc] ss:$272 sps:$4 sm:$0xff]  }
 0x368   :  { %9958 = vmatprep.subr.bf16.mxu0 %v14723_v46  ;;  %10001 = vmatprep.subr.bf16.mxu1 %v14726_v47  ;;  %v14811_v46 = vld [vmem:[#allocation6 + $0x8b0] ss:$272 sps:$4 sm:$0xff]   ;;  %v14814_v47 = vld [vmem:[#allocation6 + $0x8b8] ss:$272 sps:$4 sm:$0xff]  }
 0x36b   :  { %9959 = vmatpush1.bf16.msra.mxu0 %v14721_v48  ;;  %10002 = vmatpush1.bf16.msra.mxu1 %v14724_v49  ;;  %v14819_v48 = vld [vmem:[#allocation6 + $0xad4] ss:$272 sps:$4 sm:$0xff]   ;;  %v14822_v49 = vld [vmem:[#allocation6 + $0xadc] ss:$272 sps:$4 sm:$0xff]  }
 0x36c   :  { %9960 = vmatprep.subr.bf16.mxu0 %v14729_v50  ;;  %10003 = vmatprep.subr.bf16.mxu1 %v14732_v51  ;;  %v14817_v50 = vld [vmem:[#allocation6 + $0xad0] ss:$272 sps:$4 sm:$0xff]   ;;  %v14820_v51 = vld [vmem:[#allocation6 + $0xad8] ss:$272 sps:$4 sm:$0xff]  }
 0x36f   :  { %9961 = vmatpush1.bf16.msra.mxu0 %v14727_v52  ;;  %10004 = vmatpush1.bf16.msra.mxu1 %v14730_v53  ;;  %v14825_v52 = vld [vmem:[#allocation6 + $0xcf4] ss:$272 sps:$4 sm:$0xff]   ;;  %v14828_v53 = vld [vmem:[#allocation6 + $0xcfc] ss:$272 sps:$4 sm:$0xff]  }
 0x370   :  { %9962 = vmatprep.subr.bf16.mxu0 %v14735_v54  ;;  %10005 = vmatprep.subr.bf16.mxu1 %v14738_v55  ;;  %v14823_v54 = vld [vmem:[#allocation6 + $0xcf0] ss:$272 sps:$4 sm:$0xff]   ;;  %v14826_v55 = vld [vmem:[#allocation6 + $0xcf8] ss:$272 sps:$4 sm:$0xff]  }
 0x373   :  { %9963 = vmatpush1.bf16.msra.mxu0 %v14733_v56  ;;  %10006 = vmatpush1.bf16.msra.mxu1 %v14736_v57  ;;  %v14831_v56 = vld [vmem:[#allocation6 + $0xf14] ss:$272 sps:$4 sm:$0xff]   ;;  %v14834_v57 = vld [vmem:[#allocation6 + $0xf1c] ss:$272 sps:$4 sm:$0xff]  }
 0x374   :  { %10034 = vmatprep.subr.bf16.mxu0 %v14741_v58  ;;  %10077 = vmatprep.subr.bf16.mxu1 %v14744_v59  ;;  %v14829_v58 = vld [vmem:[#allocation6 + $0xf10] ss:$272 sps:$4 sm:$0xff]   ;;  %v14832_v59 = vld [vmem:[#allocation6 + $0xf18] ss:$272 sps:$4 sm:$0xff]  }
 0x376   :  { %9981 = vmatmul.mubr.bf16.vlgmr.msra.gmra.mrb[72].mxu0 %v15918_v29  ;;  %10024 = vmatmul.mubr.bf16.vlgmr.msra.gmra.mrb[72].mxu1 %v15918_v29 }
 0x377   :  { %10035 = vmatpush1.bf16.msra.mxu0 %v14739_v60  ;;  %10078 = vmatpush1.bf16.msra.mxu1 %v14742_v61  ;;  %v14837_v60 = vld [vmem:[#allocation6 + $0x44] ss:$272 sps:$4 sm:$0xff]   ;;  %v14840_v61 = vld [vmem:[#allocation6 + $0x4c] ss:$272 sps:$4 sm:$0xff]  }
 0x378   :  { %10036 = vmatprep.subr.bf16.mxu0 %v14747_v62  ;;  %10079 = vmatprep.subr.bf16.mxu1 %v14750_v63  ;;  %v14835_v62 = vld [vmem:[#allocation6 + $0x40] ss:$272 sps:$4 sm:$0xff]   ;;  %v14838_v63 = vld [vmem:[#allocation6 + $0x48] ss:$272 sps:$4 sm:$0xff]  }
 0x379   :  { %10066 = vmatprep.mubr.bf16.mxu0 %v15561_v22  ;;  %10109 = vmatprep.mubr.bf16.mxu1 %v15561_v22 }
 0x37b   :  { %10037 = vmatpush1.bf16.msra.mxu0 %v14745_v0  ;;  %10080 = vmatpush1.bf16.msra.mxu1 %v14748_v1  ;;  %v14843_v0 = vld [vmem:[#allocation6 + $0x264] ss:$272 sps:$4 sm:$0xff]   ;;  %v14846_v1 = vld [vmem:[#allocation6 + $0x26c] ss:$272 sps:$4 sm:$0xff]  }
 0x37c   :  { %10038 = vmatprep.subr.bf16.mxu0 %v14753_v2  ;;  %10081 = vmatprep.subr.bf16.mxu1 %v14756_v3  ;;  %v14841_v2 = vld [vmem:[#allocation6 + $0x260] ss:$272 sps:$4 sm:$0xff]   ;;  %v14844_v3 = vld [vmem:[#allocation6 + $0x268] ss:$272 sps:$4 sm:$0xff]  }
 0x37f   :  { %10039 = vmatpush1.bf16.msra.mxu0 %v14751_v4  ;;  %10082 = vmatpush1.bf16.msra.mxu1 %v14754_v5  ;;  %v14849_v4 = vld [vmem:[#allocation6 + $0x484] ss:$272 sps:$4 sm:$0xff]   ;;  %v14852_v5 = vld [vmem:[#allocation6 + $0x48c] ss:$272 sps:$4 sm:$0xff]  }
 0x380   :  { %10040 = vmatprep.subr.bf16.mxu0 %v14759_v6  ;;  %10083 = vmatprep.subr.bf16.mxu1 %v14762_v7  ;;  %v14847_v6 = vld [vmem:[#allocation6 + $0x480] ss:$272 sps:$4 sm:$0xff]   ;;  %v14850_v7 = vld [vmem:[#allocation6 + $0x488] ss:$272 sps:$4 sm:$0xff]  }
 0x383   :  { %10041 = vmatpush1.bf16.msra.mxu0 %v14757_v8  ;;  %10084 = vmatpush1.bf16.msra.mxu1 %v14760_v9  ;;  %v14855_v8 = vld [vmem:[#allocation6 + $0x6a4] ss:$272 sps:$4 sm:$0xff]   ;;  %v14858_v9 = vld [vmem:[#allocation6 + $0x6ac] ss:$272 sps:$4 sm:$0xff]  }
 0x384   :  { %10042 = vmatprep.subr.bf16.mxu0 %v14765_v10  ;;  %10085 = vmatprep.subr.bf16.mxu1 %v14768_v11  ;;  %v14853_v10 = vld [vmem:[#allocation6 + $0x6a0] ss:$272 sps:$4 sm:$0xff]   ;;  %v14856_v11 = vld [vmem:[#allocation6 + $0x6a8] ss:$272 sps:$4 sm:$0xff]  }
 0x387   :  { %10043 = vmatpush1.bf16.msra.mxu0 %v14763_v12  ;;  %10086 = vmatpush1.bf16.msra.mxu1 %v14766_v13  ;;  %v14861_v12 = vld [vmem:[#allocation6 + $0x8c4] ss:$272 sps:$4 sm:$0xff]   ;;  %v14864_v13 = vld [vmem:[#allocation6 + $0x8cc] ss:$272 sps:$4 sm:$0xff]  }
 0x388   :  { %10044 = vmatprep.subr.bf16.mxu0 %v14771_v14  ;;  %10087 = vmatprep.subr.bf16.mxu1 %v14774_v15  ;;  %v14859_v14 = vld [vmem:[#allocation6 + $0x8c0] ss:$272 sps:$4 sm:$0xff]   ;;  %v14862_v15 = vld [vmem:[#allocation6 + $0x8c8] ss:$272 sps:$4 sm:$0xff]  }
 0x38b   :  { %10045 = vmatpush1.bf16.msra.mxu0 %v14769_v16  ;;  %10088 = vmatpush1.bf16.msra.mxu1 %v14772_v17  ;;  %v14867_v16 = vld [vmem:[#allocation6 + $0xae4] ss:$272 sps:$4 sm:$0xff]   ;;  %v14870_v17 = vld [vmem:[#allocation6 + $0xaec] ss:$272 sps:$4 sm:$0xff]  }
 0x38c   :  { %10046 = vmatprep.subr.bf16.mxu0 %v14777_v18  ;;  %10089 = vmatprep.subr.bf16.mxu1 %v14780_v19  ;;  %v14865_v18 = vld [vmem:[#allocation6 + $0xae0] ss:$272 sps:$4 sm:$0xff]   ;;  %v14868_v19 = vld [vmem:[#allocation6 + $0xae8] ss:$272 sps:$4 sm:$0xff]  }
 0x38f   :  { %10047 = vmatpush1.bf16.msra.mxu0 %v14775_v20  ;;  %10090 = vmatpush1.bf16.msra.mxu1 %v14778_v21  ;;  %v14873_v20 = vld [vmem:[#allocation6 + $0xd04] ss:$272 sps:$4 sm:$0xff]   ;;  %v14876_v21 = vld [vmem:[#allocation6 + $0xd0c] ss:$272 sps:$4 sm:$0xff]  }
 0x390   :  { %10048 = vmatprep.subr.bf16.mxu0 %v14783_v23  ;;  %10091 = vmatprep.subr.bf16.mxu1 %v14786_v24  ;;  %v14871_v23 = vld [vmem:[#allocation6 + $0xd00] ss:$272 sps:$4 sm:$0xff]   ;;  %v14874_v24 = vld [vmem:[#allocation6 + $0xd08] ss:$272 sps:$4 sm:$0xff]  }
 0x393   :  { %10049 = vmatpush1.bf16.msra.mxu0 %v14781_v25  ;;  %10092 = vmatpush1.bf16.msra.mxu1 %v14784_v26  ;;  %v14879_v25 = vld [vmem:[#allocation6 + $0xf24] ss:$272 sps:$4 sm:$0xff]   ;;  %v14882_v26 = vld [vmem:[#allocation6 + $0xf2c] ss:$272 sps:$4 sm:$0xff]  }
 0x394   :  { %10120 = vmatprep.subr.bf16.mxu0 %v14789_v27  ;;  %10163 = vmatprep.subr.bf16.mxu1 %v14792_v28  ;;  %v14877_v27 = vld [vmem:[#allocation6 + $0xf20] ss:$272 sps:$4 sm:$0xff]   ;;  %v14880_v28 = vld [vmem:[#allocation6 + $0xf28] ss:$272 sps:$4 sm:$0xff]  }
 0x396   :  { %10067 = vmatmul.mubr.bf16.vlgmr.msra.gmra.mrb[76].mxu0 %v15918_v29  ;;  %10110 = vmatmul.mubr.bf16.vlgmr.msra.gmra.mrb[76].mxu1 %v15918_v29 }
 0x397   :  { %10121 = vmatpush1.bf16.msra.mxu0 %v14787_v30  ;;  %10164 = vmatpush1.bf16.msra.mxu1 %v14790_v31  ;;  %v14885_v30 = vld [vmem:[#allocation6 + $0x54] ss:$272 sps:$4 sm:$0xff]   ;;  %v14888_v31 = vld [vmem:[#allocation6 + $0x5c] ss:$272 sps:$4 sm:$0xff]  }
 0x398   :  { %10122 = vmatprep.subr.bf16.mxu0 %v14795_v32  ;;  %10165 = vmatprep.subr.bf16.mxu1 %v14798_v33  ;;  %v14883_v32 = vld [vmem:[#allocation6 + $0x50] ss:$272 sps:$4 sm:$0xff]   ;;  %v14886_v33 = vld [vmem:[#allocation6 + $0x58] ss:$272 sps:$4 sm:$0xff]  }
 0x399   :  { %10152 = vmatprep.mubr.bf16.mxu0 %v15561_v22  ;;  %10195 = vmatprep.mubr.bf16.mxu1 %v15561_v22 }
 0x39b   :  { %10123 = vmatpush1.bf16.msra.mxu0 %v14793_v34  ;;  %10166 = vmatpush1.bf16.msra.mxu1 %v14796_v35  ;;  %v14891_v34 = vld [vmem:[#allocation6 + $0x274] ss:$272 sps:$4 sm:$0xff]   ;;  %v14894_v35 = vld [vmem:[#allocation6 + $0x27c] ss:$272 sps:$4 sm:$0xff]  }
 0x39c   :  { %10124 = vmatprep.subr.bf16.mxu0 %v14801_v36  ;;  %10167 = vmatprep.subr.bf16.mxu1 %v14804_v37  ;;  %v14889_v36 = vld [vmem:[#allocation6 + $0x270] ss:$272 sps:$4 sm:$0xff]   ;;  %v14892_v37 = vld [vmem:[#allocation6 + $0x278] ss:$272 sps:$4 sm:$0xff]  }
 0x39f   :  { %10125 = vmatpush1.bf16.msra.mxu0 %v14799_v38  ;;  %10168 = vmatpush1.bf16.msra.mxu1 %v14802_v39  ;;  %v14897_v38 = vld [vmem:[#allocation6 + $0x494] ss:$272 sps:$4 sm:$0xff]   ;;  %v14900_v39 = vld [vmem:[#allocation6 + $0x49c] ss:$272 sps:$4 sm:$0xff]  }
 0x3a0   :  { %10126 = vmatprep.subr.bf16.mxu0 %v14807_v40  ;;  %10169 = vmatprep.subr.bf16.mxu1 %v14810_v41  ;;  %v14895_v40 = vld [vmem:[#allocation6 + $0x490] ss:$272 sps:$4 sm:$0xff]   ;;  %v14898_v41 = vld [vmem:[#allocation6 + $0x498] ss:$272 sps:$4 sm:$0xff]  }
 0x3a3   :  { %10127 = vmatpush1.bf16.msra.mxu0 %v14805_v42  ;;  %10170 = vmatpush1.bf16.msra.mxu1 %v14808_v43  ;;  %v14903_v42 = vld [vmem:[#allocation6 + $0x6b4] ss:$272 sps:$4 sm:$0xff]   ;;  %v14906_v43 = vld [vmem:[#allocation6 + $0x6bc] ss:$272 sps:$4 sm:$0xff]  }
 0x3a4   :  { %10128 = vmatprep.subr.bf16.mxu0 %v14813_v44  ;;  %10171 = vmatprep.subr.bf16.mxu1 %v14816_v45  ;;  %v14901_v44 = vld [vmem:[#allocation6 + $0x6b0] ss:$272 sps:$4 sm:$0xff]   ;;  %v14904_v45 = vld [vmem:[#allocation6 + $0x6b8] ss:$272 sps:$4 sm:$0xff]  }
 0x3a7   :  { %10129 = vmatpush1.bf16.msra.mxu0 %v14811_v46  ;;  %10172 = vmatpush1.bf16.msra.mxu1 %v14814_v47  ;;  %v14909_v46 = vld [vmem:[#allocation6 + $0x8d4] ss:$272 sps:$4 sm:$0xff]   ;;  %v14912_v47 = vld [vmem:[#allocation6 + $0x8dc] ss:$272 sps:$4 sm:$0xff]  }
 0x3a8   :  { %10130 = vmatprep.subr.bf16.mxu0 %v14819_v48  ;;  %10173 = vmatprep.subr.bf16.mxu1 %v14822_v49  ;;  %v14907_v48 = vld [vmem:[#allocation6 + $0x8d0] ss:$272 sps:$4 sm:$0xff]   ;;  %v14910_v49 = vld [vmem:[#allocation6 + $0x8d8] ss:$272 sps:$4 sm:$0xff]  }
 0x3ab   :  { %10131 = vmatpush1.bf16.msra.mxu0 %v14817_v50  ;;  %10174 = vmatpush1.bf16.msra.mxu1 %v14820_v51  ;;  %v14915_v50 = vld [vmem:[#allocation6 + $0xaf4] ss:$272 sps:$4 sm:$0xff]   ;;  %v14918_v51 = vld [vmem:[#allocation6 + $0xafc] ss:$272 sps:$4 sm:$0xff]  }
 0x3ac   :  { %10132 = vmatprep.subr.bf16.mxu0 %v14825_v52  ;;  %10175 = vmatprep.subr.bf16.mxu1 %v14828_v53  ;;  %v14913_v52 = vld [vmem:[#allocation6 + $0xaf0] ss:$272 sps:$4 sm:$0xff]   ;;  %v14916_v53 = vld [vmem:[#allocation6 + $0xaf8] ss:$272 sps:$4 sm:$0xff]  }
 0x3af   :  { %10133 = vmatpush1.bf16.msra.mxu0 %v14823_v54  ;;  %10176 = vmatpush1.bf16.msra.mxu1 %v14826_v55  ;;  %v14921_v54 = vld [vmem:[#allocation6 + $0xd14] ss:$272 sps:$4 sm:$0xff]   ;;  %v14924_v55 = vld [vmem:[#allocation6 + $0xd1c] ss:$272 sps:$4 sm:$0xff]  }
 0x3b0   :  { %10134 = vmatprep.subr.bf16.mxu0 %v14831_v56  ;;  %10177 = vmatprep.subr.bf16.mxu1 %v14834_v57  ;;  %v14919_v56 = vld [vmem:[#allocation6 + $0xd10] ss:$272 sps:$4 sm:$0xff]   ;;  %v14922_v57 = vld [vmem:[#allocation6 + $0xd18] ss:$272 sps:$4 sm:$0xff]  }
 0x3b3   :  { %10135 = vmatpush1.bf16.msra.mxu0 %v14829_v58  ;;  %10178 = vmatpush1.bf16.msra.mxu1 %v14832_v59  ;;  %v14927_v58 = vld [vmem:[#allocation6 + $0xf34] ss:$272 sps:$4 sm:$0xff]   ;;  %v14930_v59 = vld [vmem:[#allocation6 + $0xf3c] ss:$272 sps:$4 sm:$0xff]  }
 0x3b4   :  { %10206 = vmatprep.subr.bf16.mxu0 %v14837_v60  ;;  %10249 = vmatprep.subr.bf16.mxu1 %v14840_v61  ;;  %v14925_v60 = vld [vmem:[#allocation6 + $0xf30] ss:$272 sps:$4 sm:$0xff]   ;;  %v14928_v61 = vld [vmem:[#allocation6 + $0xf38] ss:$272 sps:$4 sm:$0xff]  }
 0x3b6   :  { %10153 = vmatmul.mubr.bf16.vlgmr.msra.gmra.mrb[80].mxu0 %v15918_v29  ;;  %10196 = vmatmul.mubr.bf16.vlgmr.msra.gmra.mrb[80].mxu1 %v15918_v29 }
 0x3b7   :  { %10207 = vmatpush1.bf16.msra.mxu0 %v14835_v62  ;;  %10250 = vmatpush1.bf16.msra.mxu1 %v14838_v63  ;;  %v14933_v62 = vld [vmem:[#allocation6 + $0x64] ss:$272 sps:$4 sm:$0xff]   ;;  %v14936_v63 = vld [vmem:[#allocation6 + $0x6c] ss:$272 sps:$4 sm:$0xff]  }
 0x3b8   :  { %10208 = vmatprep.subr.bf16.mxu0 %v14843_v0  ;;  %10251 = vmatprep.subr.bf16.mxu1 %v14846_v1  ;;  %v14931_v0 = vld [vmem:[#allocation6 + $0x60] ss:$272 sps:$4 sm:$0xff]   ;;  %v14934_v1 = vld [vmem:[#allocation6 + $0x68] ss:$272 sps:$4 sm:$0xff]  }
 0x3b9   :  { %10238 = vmatprep.mubr.bf16.mxu0 %v15561_v22  ;;  %10281 = vmatprep.mubr.bf16.mxu1 %v15561_v22 }
 0x3bb   :  { %10209 = vmatpush1.bf16.msra.mxu0 %v14841_v2  ;;  %10252 = vmatpush1.bf16.msra.mxu1 %v14844_v3  ;;  %v14939_v2 = vld [vmem:[#allocation6 + $0x284] ss:$272 sps:$4 sm:$0xff]   ;;  %v14942_v3 = vld [vmem:[#allocation6 + $0x28c] ss:$272 sps:$4 sm:$0xff]  }
 0x3bc   :  { %10210 = vmatprep.subr.bf16.mxu0 %v14849_v4  ;;  %10253 = vmatprep.subr.bf16.mxu1 %v14852_v5  ;;  %v14937_v4 = vld [vmem:[#allocation6 + $0x280] ss:$272 sps:$4 sm:$0xff]   ;;  %v14940_v5 = vld [vmem:[#allocation6 + $0x288] ss:$272 sps:$4 sm:$0xff]  }
 0x3bf   :  { %10211 = vmatpush1.bf16.msra.mxu0 %v14847_v6  ;;  %10254 = vmatpush1.bf16.msra.mxu1 %v14850_v7  ;;  %v14945_v6 = vld [vmem:[#allocation6 + $0x4a4] ss:$272 sps:$4 sm:$0xff]   ;;  %v14948_v7 = vld [vmem:[#allocation6 + $0x4ac] ss:$272 sps:$4 sm:$0xff]  }
 0x3c0   :  { %10212 = vmatprep.subr.bf16.mxu0 %v14855_v8  ;;  %10255 = vmatprep.subr.bf16.mxu1 %v14858_v9  ;;  %v14943_v8 = vld [vmem:[#allocation6 + $0x4a0] ss:$272 sps:$4 sm:$0xff]   ;;  %v14946_v9 = vld [vmem:[#allocation6 + $0x4a8] ss:$272 sps:$4 sm:$0xff]  }
 0x3c3   :  { %10213 = vmatpush1.bf16.msra.mxu0 %v14853_v10  ;;  %10256 = vmatpush1.bf16.msra.mxu1 %v14856_v11  ;;  %v14951_v10 = vld [vmem:[#allocation6 + $0x6c4] ss:$272 sps:$4 sm:$0xff]   ;;  %v14954_v11 = vld [vmem:[#allocation6 + $0x6cc] ss:$272 sps:$4 sm:$0xff]  }
 0x3c4   :  { %10214 = vmatprep.subr.bf16.mxu0 %v14861_v12  ;;  %10257 = vmatprep.subr.bf16.mxu1 %v14864_v13  ;;  %v14949_v12 = vld [vmem:[#allocation6 + $0x6c0] ss:$272 sps:$4 sm:$0xff]   ;;  %v14952_v13 = vld [vmem:[#allocation6 + $0x6c8] ss:$272 sps:$4 sm:$0xff]  }
 0x3c7   :  { %10215 = vmatpush1.bf16.msra.mxu0 %v14859_v14  ;;  %10258 = vmatpush1.bf16.msra.mxu1 %v14862_v15  ;;  %v14957_v14 = vld [vmem:[#allocation6 + $0x8e4] ss:$272 sps:$4 sm:$0xff]   ;;  %v14960_v15 = vld [vmem:[#allocation6 + $0x8ec] ss:$272 sps:$4 sm:$0xff]  }
 0x3c8   :  { %10216 = vmatprep.subr.bf16.mxu0 %v14867_v16  ;;  %10259 = vmatprep.subr.bf16.mxu1 %v14870_v17  ;;  %v14955_v16 = vld [vmem:[#allocation6 + $0x8e0] ss:$272 sps:$4 sm:$0xff]   ;;  %v14958_v17 = vld [vmem:[#allocation6 + $0x8e8] ss:$272 sps:$4 sm:$0xff]  }
 0x3cb   :  { %10217 = vmatpush1.bf16.msra.mxu0 %v14865_v18  ;;  %10260 = vmatpush1.bf16.msra.mxu1 %v14868_v19  ;;  %v14963_v18 = vld [vmem:[#allocation6 + $0xb04] ss:$272 sps:$4 sm:$0xff]   ;;  %v14966_v19 = vld [vmem:[#allocation6 + $0xb0c] ss:$272 sps:$4 sm:$0xff]  }
 0x3cc   :  { %10218 = vmatprep.subr.bf16.mxu0 %v14873_v20  ;;  %10261 = vmatprep.subr.bf16.mxu1 %v14876_v21  ;;  %v14961_v20 = vld [vmem:[#allocation6 + $0xb00] ss:$272 sps:$4 sm:$0xff]   ;;  %v14964_v21 = vld [vmem:[#allocation6 + $0xb08] ss:$272 sps:$4 sm:$0xff]  }
 0x3cf   :  { %10219 = vmatpush1.bf16.msra.mxu0 %v14871_v23  ;;  %10262 = vmatpush1.bf16.msra.mxu1 %v14874_v24  ;;  %v14969_v23 = vld [vmem:[#allocation6 + $0xd24] ss:$272 sps:$4 sm:$0xff]   ;;  %v14972_v24 = vld [vmem:[#allocation6 + $0xd2c] ss:$272 sps:$4 sm:$0xff]  }
 0x3d0   :  { %10220 = vmatprep.subr.bf16.mxu0 %v14879_v25  ;;  %10263 = vmatprep.subr.bf16.mxu1 %v14882_v26  ;;  %v14967_v25 = vld [vmem:[#allocation6 + $0xd20] ss:$272 sps:$4 sm:$0xff]   ;;  %v14970_v26 = vld [vmem:[#allocation6 + $0xd28] ss:$272 sps:$4 sm:$0xff]  }
 0x3d3   :  { %10221 = vmatpush1.bf16.msra.mxu0 %v14877_v27  ;;  %10264 = vmatpush1.bf16.msra.mxu1 %v14880_v28  ;;  %v14975_v27 = vld [vmem:[#allocation6 + $0xf44] ss:$272 sps:$4 sm:$0xff]   ;;  %v14978_v28 = vld [vmem:[#allocation6 + $0xf4c] ss:$272 sps:$4 sm:$0xff]  }
 0x3d4   :  { %10292 = vmatprep.subr.bf16.mxu0 %v14885_v30  ;;  %10335 = vmatprep.subr.bf16.mxu1 %v14888_v31  ;;  %v14973_v30 = vld [vmem:[#allocation6 + $0xf40] ss:$272 sps:$4 sm:$0xff]   ;;  %v14976_v31 = vld [vmem:[#allocation6 + $0xf48] ss:$272 sps:$4 sm:$0xff]  }
 0x3d6   :  { %10239 = vmatmul.mubr.bf16.vlgmr.msra.gmra.mrb[84].mxu0 %v15918_v29  ;;  %10282 = vmatmul.mubr.bf16.vlgmr.msra.gmra.mrb[84].mxu1 %v15918_v29 }
 0x3d7   :  { %10293 = vmatpush1.bf16.msra.mxu0 %v14883_v32  ;;  %10336 = vmatpush1.bf16.msra.mxu1 %v14886_v33  ;;  %v14981_v32 = vld [vmem:[#allocation6 + $0x74] ss:$272 sps:$4 sm:$0xff]   ;;  %v14984_v33 = vld [vmem:[#allocation6 + $0x7c] ss:$272 sps:$4 sm:$0xff]  }
 0x3d8   :  { %10294 = vmatprep.subr.bf16.mxu0 %v14891_v34  ;;  %10337 = vmatprep.subr.bf16.mxu1 %v14894_v35  ;;  %v14979_v34 = vld [vmem:[#allocation6 + $0x70] ss:$272 sps:$4 sm:$0xff]   ;;  %v14982_v35 = vld [vmem:[#allocation6 + $0x78] ss:$272 sps:$4 sm:$0xff]  }
 0x3d9   :  { %10324 = vmatprep.mubr.bf16.mxu0 %v15561_v22  ;;  %10367 = vmatprep.mubr.bf16.mxu1 %v15561_v22 }
 0x3db   :  { %10295 = vmatpush1.bf16.msra.mxu0 %v14889_v36  ;;  %10338 = vmatpush1.bf16.msra.mxu1 %v14892_v37  ;;  %v14987_v36 = vld [vmem:[#allocation6 + $0x294] ss:$272 sps:$4 sm:$0xff]   ;;  %v14990_v37 = vld [vmem:[#allocation6 + $0x29c] ss:$272 sps:$4 sm:$0xff]  }
 0x3dc   :  { %10296 = vmatprep.subr.bf16.mxu0 %v14897_v38  ;;  %10339 = vmatprep.subr.bf16.mxu1 %v14900_v39  ;;  %v14985_v38 = vld [vmem:[#allocation6 + $0x290] ss:$272 sps:$4 sm:$0xff]   ;;  %v14988_v39 = vld [vmem:[#allocation6 + $0x298] ss:$272 sps:$4 sm:$0xff]  }
 0x3df   :  { %10297 = vmatpush1.bf16.msra.mxu0 %v14895_v40  ;;  %10340 = vmatpush1.bf16.msra.mxu1 %v14898_v41  ;;  %v14993_v40 = vld [vmem:[#allocation6 + $0x4b4] ss:$272 sps:$4 sm:$0xff]   ;;  %v14996_v41 = vld [vmem:[#allocation6 + $0x4bc] ss:$272 sps:$4 sm:$0xff]  }
 0x3e0   :  { %10298 = vmatprep.subr.bf16.mxu0 %v14903_v42  ;;  %10341 = vmatprep.subr.bf16.mxu1 %v14906_v43  ;;  %v6802_v42 = vlaneseq  ;;  %v14991_v43 = vld [vmem:[#allocation6 + $0x4b0] ss:$272 sps:$4 sm:$0xff]  }
 0x3e3   :  { %10299 = vmatpush1.bf16.msra.mxu0 %v14901_v44  ;;  %10342 = vmatpush1.bf16.msra.mxu1 %v14904_v45  ;;  %v14994_v44 = vld [vmem:[#allocation6 + $0x4b8] ss:$272 sps:$4 sm:$0xff]   ;;  %v14999_v45 = vld [vmem:[#allocation6 + $0x6d4] ss:$272 sps:$4 sm:$0xff]  }
 0x3e4   :  { %10300 = vmatprep.subr.bf16.mxu0 %v14909_v46  ;;  %10343 = vmatprep.subr.bf16.mxu1 %v14912_v47  ;;  %v15002_v46 = vld [vmem:[#allocation6 + $0x6dc] ss:$272 sps:$4 sm:$0xff]   ;;  %v15948_v47 = vshrl.u32 %v6802_v42, 7 }
 0x3e7   :  { %10301 = vmatpush1.bf16.msra.mxu0 %v14907_v48  ;;  %10344 = vmatpush1.bf16.msra.mxu1 %v14910_v49  ;;  %v14997_v48 = vld [vmem:[#allocation6 + $0x6d0] ss:$272 sps:$4 sm:$0xff]   ;;  %v15000_v49 = vld [vmem:[#allocation6 + $0x6d8] ss:$272 sps:$4 sm:$0xff]  }
 0x3e8   :  { %10302 = vmatprep.subr.bf16.mxu0 %v14915_v50  ;;  %10345 = vmatprep.subr.bf16.mxu1 %v14918_v51  ;;  %v15005_v50 = vld [vmem:[#allocation6 + $0x8f4] ss:$272 sps:$4 sm:$0xff]   ;;  %v15008_v51 = vld [vmem:[#allocation6 + $0x8fc] ss:$272 sps:$4 sm:$0xff]  }
 0x3eb   :  { %10303 = vmatpush1.bf16.msra.mxu0 %v14913_v52  ;;  %10346 = vmatpush1.bf16.msra.mxu1 %v14916_v53  ;;  %v15003_v52 = vld [vmem:[#allocation6 + $0x8f0] ss:$272 sps:$4 sm:$0xff]   ;;  %v15951_v53 = vsub.s32 0, %v15948_v47 }
 0x3ec   :  { %10304 = vmatprep.subr.bf16.mxu0 %v14921_v54  ;;  %10347 = vmatprep.subr.bf16.mxu1 %v14924_v55  ;;  %v15954_v54 = vsub.s32 2, %v15948_v47  ;;  %v15006_v55 = vld [vmem:[#allocation6 + $0x8f8] ss:$272 sps:$4 sm:$0xff]  }
 0x3ef   :  { %10305 = vmatpush1.bf16.msra.mxu0 %v14919_v56  ;;  %10348 = vmatpush1.bf16.msra.mxu1 %v14922_v57  ;;  %v15956_v56 = vld [vmem:[#allocation7] sm:$0xff]  ;;  %v15959_v57 = vsub.s32 1, %v15948_v47 }
 0x3f0   :  { %10306 = vmatprep.subr.bf16.mxu0 %v14927_v58  ;;  %10349 = vmatprep.subr.bf16.mxu1 %v14930_v59  ;;  %v15962_v58 = vsub.s32 3, %v15948_v47  ;;  %v15011_v59 = vld [vmem:[#allocation6 + $0xb14] ss:$272 sps:$4 sm:$0xff]  }
 0x3f3   :  { %10307 = vmatpush1.bf16.msra.mxu0 %v14925_v60  ;;  %10350 = vmatpush1.bf16.msra.mxu1 %v14928_v61  ;;  %v15014_v60 = vld [vmem:[#allocation6 + $0xb1c] ss:$272 sps:$4 sm:$0xff]   ;;  %v6805_v61 = vrot.slane %v15956_v56, %v15951_v53 }
 0x3f4   :  { %10378 = vmatprep.subr.bf16.mxu0 %v14933_v62  ;;  %10421 = vmatprep.subr.bf16.mxu1 %v14936_v63  ;;  %v6813_v62 = vrot.slane %v15956_v56, %v15954_v54  ;;  %v15009_v63 = vld [vmem:[#allocation6 + $0xb10] ss:$272 sps:$4 sm:$0xff]  }
 0x3f6   :  { %10325 = vmatmul.mubr.bf16.vlgmr.msra.gmra.mrb[88].mxu0 %v15918_v29  ;;  %10368 = vmatmul.mubr.bf16.vlgmr.msra.gmra.mrb[88].mxu1 %v15918_v29 }
 0x3f7   :  { %10379 = vmatpush1.bf16.msra.mxu0 %v14931_v0  ;;  %10422 = vmatpush1.bf16.msra.mxu1 %v14934_v1  ;;  %v15012_v0 = vld [vmem:[#allocation6 + $0xb18] ss:$272 sps:$4 sm:$0xff]   ;;  %v6809_v1 = vrot.slane %v15956_v56, %v15959_v57 }
 0x3f8   :  { %10380 = vmatprep.subr.bf16.mxu0 %v14939_v2  ;;  %10423 = vmatprep.subr.bf16.mxu1 %v14942_v3  ;;  %v6817_v2 = vrot.slane %v15956_v56, %v15962_v58  ;;  %v15017_v3 = vld [vmem:[#allocation6 + $0xd34] ss:$272 sps:$4 sm:$0xff]  }
 0x3f9   :  { %10410 = vmatprep.mubr.bf16.mxu0 %v15561_v22  ;;  %10453 = vmatprep.mubr.bf16.mxu1 %v15561_v22 }
 0x3fb   :  { %10381 = vmatpush1.bf16.msra.mxu0 %v14937_v4  ;;  %10424 = vmatpush1.bf16.msra.mxu1 %v14940_v5  ;;  %v15020_v4 = vld [vmem:[#allocation6 + $0xd3c] ss:$272 sps:$4 sm:$0xff]  }
 0x3fc   :  { %10382 = vmatprep.subr.bf16.mxu0 %v14945_v6  ;;  %10425 = vmatprep.subr.bf16.mxu1 %v14948_v7 }
 0x3ff   :  { %10383 = vmatpush1.bf16.msra.mxu0 %v14943_v8  ;;  %10426 = vmatpush1.bf16.msra.mxu1 %v14946_v9 }
 0x400   :  { %10384 = vmatprep.subr.bf16.mxu0 %v14951_v10  ;;  %10427 = vmatprep.subr.bf16.mxu1 %v14954_v11  ;;  %v15015_v11 = vld [vmem:[#allocation6 + $0xd30] ss:$272 sps:$4 sm:$0xff]  }
 0x403   :  { %10385 = vmatpush1.bf16.msra.mxu0 %v14949_v12  ;;  %10428 = vmatpush1.bf16.msra.mxu1 %v14952_v13 }
 0x404   :  { %10386 = vmatprep.subr.bf16.mxu0 %v14957_v14  ;;  %10429 = vmatprep.subr.bf16.mxu1 %v14960_v15 }
 0x407   :  { %10387 = vmatpush1.bf16.msra.mxu0 %v14955_v16  ;;  %10430 = vmatpush1.bf16.msra.mxu1 %v14958_v17  ;;  %v15018_v16 = vld [vmem:[#allocation6 + $0xd38] ss:$272 sps:$4 sm:$0xff]   ;;  %v15023_v17 = vld [vmem:[#allocation6 + $0xf54] ss:$272 sps:$4 sm:$0xff]  }
 0x408   :  { %10388 = vmatprep.subr.bf16.mxu0 %v14963_v18  ;;  %10431 = vmatprep.subr.bf16.mxu1 %v14966_v19 }
 0x40b   :  { %10389 = vmatpush1.bf16.msra.mxu0 %v14961_v20  ;;  %10432 = vmatpush1.bf16.msra.mxu1 %v14964_v21 }
 0x40c   :  { %10390 = vmatprep.subr.bf16.mxu0 %v14969_v23  ;;  %10433 = vmatprep.subr.bf16.mxu1 %v14972_v24 }
 0x40f   :  { %10391 = vmatpush1.bf16.msra.mxu0 %v14967_v25  ;;  %10434 = vmatpush1.bf16.msra.mxu1 %v14970_v26  ;;  %v15026_v25 = vld [vmem:[#allocation6 + $0xf5c] ss:$272 sps:$4 sm:$0xff]  }
 0x410   :  { %10392 = vmatprep.subr.bf16.mxu0 %v14975_v27  ;;  %10435 = vmatprep.subr.bf16.mxu1 %v14978_v28 }
 0x413   :  { %10393 = vmatpush1.bf16.msra.mxu0 %v14973_v30  ;;  %10436 = vmatpush1.bf16.msra.mxu1 %v14976_v31 }
 0x414   :  { %10464 = vmatprep.subr.bf16.mxu0 %v14981_v32  ;;  %10507 = vmatprep.subr.bf16.mxu1 %v14984_v33 }
 0x416   :  { %10411 = vmatmul.mubr.bf16.vlgmr.msra.gmra.mrb[92].mxu0 %v15918_v29  ;;  %10454 = vmatmul.mubr.bf16.vlgmr.msra.gmra.mrb[92].mxu1 %v15918_v29 }
 0x417   :  { %10465 = vmatpush1.bf16.msra.mxu0 %v14979_v34  ;;  %10508 = vmatpush1.bf16.msra.mxu1 %v14982_v35 }
 0x418   :  { %10466 = vmatprep.subr.bf16.mxu0 %v14987_v36  ;;  %10509 = vmatprep.subr.bf16.mxu1 %v14990_v37  ;;  %v15021_v37 = vld [vmem:[#allocation6 + $0xf50] ss:$272 sps:$4 sm:$0xff]  }
 0x419   :  { %10496 = vmatprep.mubr.bf16.mxu0 %v15561_v22  ;;  %10539 = vmatprep.mubr.bf16.mxu1 %v15561_v22 }
 0x41b   :  { %10467 = vmatpush1.bf16.msra.mxu0 %v14985_v38  ;;  %10510 = vmatpush1.bf16.msra.mxu1 %v14988_v39  ;;  %v15024_v38 = vld [vmem:[#allocation6 + $0xf58] ss:$272 sps:$4 sm:$0xff]   ;;  %v15029_v39 = vld [vmem:[#allocation6 + $0x84] ss:$272 sps:$4 sm:$0xff]  }
 0x41c   :  { %10468 = vmatprep.subr.bf16.mxu0 %v14993_v40  ;;  %10511 = vmatprep.subr.bf16.mxu1 %v14996_v41  ;;  %v15032_v40 = vld [vmem:[#allocation6 + $0x8c] ss:$272 sps:$4 sm:$0xff]  }
 0x41f   :  { %10469 = vmatpush1.bf16.msra.mxu0 %v14991_v43  ;;  %10512 = vmatpush1.bf16.msra.mxu1 %v14994_v44  ;;  %v15027_v43 = vld [vmem:[#allocation6 + $0x80] ss:$272 sps:$4 sm:$0xff]   ;;  %v15030_v44 = vld [vmem:[#allocation6 + $0x88] ss:$272 sps:$4 sm:$0xff]  }
 0x420   :  { %10470 = vmatprep.subr.bf16.mxu0 %v14999_v45  ;;  %10513 = vmatprep.subr.bf16.mxu1 %v15002_v46  ;;  %v15035_v45 = vld [vmem:[#allocation6 + $0x2a4] ss:$272 sps:$4 sm:$0xff]   ;;  %v15038_v46 = vld [vmem:[#allocation6 + $0x2ac] ss:$272 sps:$4 sm:$0xff]  }
 0x423   :  { %10471 = vmatpush1.bf16.msra.mxu0 %v14997_v48  ;;  %10514 = vmatpush1.bf16.msra.mxu1 %v15000_v49  ;;  %v15033_v48 = vld [vmem:[#allocation6 + $0x2a0] ss:$272 sps:$4 sm:$0xff]   ;;  %v15036_v49 = vld [vmem:[#allocation6 + $0x2a8] ss:$272 sps:$4 sm:$0xff]  }
 0x424   :  { %10472 = vmatprep.subr.bf16.mxu0 %v15005_v50  ;;  %10515 = vmatprep.subr.bf16.mxu1 %v15008_v51  ;;  %v15041_v50 = vld [vmem:[#allocation6 + $0x4c4] ss:$272 sps:$4 sm:$0xff]   ;;  %v15044_v51 = vld [vmem:[#allocation6 + $0x4cc] ss:$272 sps:$4 sm:$0xff]  }
 0x427   :  { %10473 = vmatpush1.bf16.msra.mxu0 %v15003_v52  ;;  %10516 = vmatpush1.bf16.msra.mxu1 %v15006_v55  ;;  %v15039_v52 = vld [vmem:[#allocation6 + $0x4c0] ss:$272 sps:$4 sm:$0xff]   ;;  %v15042_v55 = vld [vmem:[#allocation6 + $0x4c8] ss:$272 sps:$4 sm:$0xff]  }
 0x428   :  { %10474 = vmatprep.subr.bf16.mxu0 %v15011_v59  ;;  %10517 = vmatprep.subr.bf16.mxu1 %v15014_v60  ;;  %v15047_v59 = vld [vmem:[#allocation6 + $0x6e4] ss:$272 sps:$4 sm:$0xff]   ;;  %v15050_v60 = vld [vmem:[#allocation6 + $0x6ec] ss:$272 sps:$4 sm:$0xff]  }
 0x429   :  { %v9896_v5 = vpop.f32.mrb[68].mxu0  ;;  %v9939_v6 = vpop.f32.mrb[68].mxu1 }
 0x42a   :  { %v9897_v7 = vadd.f32 %v9896_v5, %v6805_v61  ;;  %v9940_v8 = vadd.f32 %v9939_v6, %v6813_v62  ;;  %v9898_v9 = vpop.f32.mrb[69].mxu0  ;;  %v9941_v10 = vpop.f32.mrb[69].mxu1  ;;  %v15995_v5 = vsub.s32 5, %v15948_v47  ;;  %v15998_v6 = vsub.s32 7, %v15948_v47 }
 0x42b   :  { %v9899_v12 = vadd.f32 %v9898_v9, %v6809_v1  ;;  %v9942_v13 = vadd.f32 %v9941_v10, %v6817_v2  ;;  %10475 = vmatpush1.bf16.msra.mxu0 %v15009_v63  ;;  %10518 = vmatpush1.bf16.msra.mxu1 %v15012_v0  ;;  %v9900_v14 = vpop.f32.mrb[70].mxu0  ;;  %v9943_v15 = vpop.f32.mrb[70].mxu1  ;;  %v15053_v63 = vld [vmem:[#allocation6 + $0x904] ss:$272 sps:$4 sm:$0xff]   ;;  %v15056_v0 = vld [vmem:[#allocation6 + $0x90c] ss:$272 sps:$4 sm:$0xff]  }
 0x42c   :  { %v11324_v18 = vmax.f32 %v9897_v7, 0.0  ;;  %v11326_v19 = vmax.f32 %v9940_v8, 0.0  ;;  %v9901_v20 = vadd.f32 %v9900_v14, %v6805_v61  ;;  %v9944_v21 = vadd.f32 %v9943_v15, %v6813_v62  ;;  %v9902_v23 = vpop.f32.mrb[71].mxu0  ;;  %v9945_v24 = vpop.f32.mrb[71].mxu1  ;;  %10476 = vmatprep.subr.bf16.mxu0 %v15017_v3  ;;  %10519 = vmatprep.subr.bf16.mxu1 %v15020_v4  ;;  %v15045_v61 = vld [vmem:[#allocation6 + $0x6e0] ss:$272 sps:$4 sm:$0xff]  }
 0x42d   :  { %v11325_v26 = vmax.f32 %v9899_v12, 0.0  ;;  %v11327_v27 = vmax.f32 %v9942_v13, 0.0  ;;  %v9903_v28 = vadd.f32 %v9902_v23, %v6809_v1  ;;  %v9946_v30 = vadd.f32 %v9945_v24, %v6817_v2  ;;  %v15048_v62 = vld [vmem:[#allocation6 + $0x6e8] ss:$272 sps:$4 sm:$0xff]   ;;  %v15051_v3 = vld [vmem:[#allocation6 + $0x900] ss:$272 sps:$4 sm:$0xff]  }
 0x42e   :  { %v11392_v31 = vmax.f32 %v9901_v20, 0.0  ;;  %v11394_v32 = vmax.f32 %v9944_v21, 0.0  ;;  %v15989_v1 = vsub.s32 4, %v15948_v47  ;;  %v15992_v2 = vsub.s32 6, %v15948_v47  ;;  %v15054_v4 = vld [vmem:[#allocation6 + $0x908] ss:$272 sps:$4 sm:$0xff]  }
 0x42f   :  { %v13172_v33 = vpack.c.bf16 %v11325_v26, %v11324_v18  ;;  %v13173_v34 = vpack.c.bf16 %v11327_v27, %v11326_v19  ;;  %v11393_v35 = vmax.f32 %v9903_v28, 0.0  ;;  %v11395_v36 = vmax.f32 %v9946_v30, 0.0  ;;  %10477 = vmatpush1.bf16.msra.mxu0 %v15015_v11  ;;  %10520 = vmatpush1.bf16.msra.mxu1 %v15018_v16  ;;  %v15059_v7 = vld [vmem:[#allocation6 + $0xb24] ss:$272 sps:$4 sm:$0xff]   ;;  %v15062_v8 = vld [vmem:[#allocation6 + $0xb2c] ss:$272 sps:$4 sm:$0xff]  }
 0x430   :  { %10478 = vmatprep.subr.bf16.mxu0 %v15023_v17  ;;  %10521 = vmatprep.subr.bf16.mxu1 %v15026_v25  ;;  %v6821_v9 = vrot.slane %v15956_v56, %v15989_v1  ;;  %v6829_v10 = vrot.slane %v15956_v56, %v15992_v2  ;;  %v6825_v11 = vrot.slane %v15956_v56, %v15995_v5  ;;  %v15057_v47 = vld [vmem:[#allocation6 + $0xb20] ss:$272 sps:$4 sm:$0xff]   ;;  %v15060_v13 = vld [vmem:[#allocation6 + $0xb28] ss:$272 sps:$4 sm:$0xff]   ;;  %v15065_v14 = vld [vmem:[#allocation6 + $0xd44] ss:$272 sps:$4 sm:$0xff]  }
 0x431   :  { %11868 = vst [vmem:[%s16339_s5] sm:$0xff] %v13172_v33  ;;  %11869 = vst [vmem:[%s16339_s5 + $0x8] sm:$0xff] %v13173_v34  ;;  %v13206_v41 = vpack.c.bf16 %v11393_v35, %v11392_v31  ;;  %v13207_v42 = vpack.c.bf16 %v11395_v36, %v11394_v32  ;;  %v6833_v12 = vrot.slane %v15956_v56, %v15998_v6  ;;  %v15068_v15 = vld [vmem:[#allocation6 + $0xd4c] ss:$272 sps:$4 sm:$0xff]   ;;  %v15063_v23 = vld [vmem:[#allocation6 + $0xd40] ss:$272 sps:$4 sm:$0xff]  }
 0x432   :  { %v15066_v56 = vld [vmem:[#allocation6 + $0xd48] ss:$272 sps:$4 sm:$0xff]   ;;  %v15071_v28 = vld [vmem:[#allocation6 + $0xf64] ss:$272 sps:$4 sm:$0xff]   ;;  %v15074_v36 = vld [vmem:[#allocation6 + $0xf6c] ss:$272 sps:$4 sm:$0xff]  }
 0x433   :  { %11902 = vst [vmem:[%s16339_s5 + $0x110] sm:$0xff] %v13206_v41  ;;  %11903 = vst [vmem:[%s16339_s5 + $0x118] sm:$0xff] %v13207_v42  ;;  %10479 = vmatpush1.bf16.msra.mxu0 %v15021_v37  ;;  %10522 = vmatpush1.bf16.msra.mxu1 %v15024_v38 }
 0x434   :  { %10550 = vmatprep.subr.bf16.mxu0 %v15029_v39  ;;  %10593 = vmatprep.subr.bf16.mxu1 %v15032_v40 }
 0x436   :  { %10497 = vmatmul.mubr.bf16.vlgmr.msra.gmra.mrb[96].mxu0 %v15918_v29  ;;  %10540 = vmatmul.mubr.bf16.vlgmr.msra.gmra.mrb[96].mxu1 %v15918_v29 }
 0x437   :  { %10551 = vmatpush1.bf16.msra.mxu0 %v15027_v43  ;;  %10594 = vmatpush1.bf16.msra.mxu1 %v15030_v44 }
 0x438   :  { %10552 = vmatprep.subr.bf16.mxu0 %v15035_v45  ;;  %10595 = vmatprep.subr.bf16.mxu1 %v15038_v46 }
 0x439   :  { %10582 = vmatprep.mubr.bf16.mxu0 %v15561_v22  ;;  %10625 = vmatprep.mubr.bf16.mxu1 %v15561_v22 }
 0x43b   :  { %10553 = vmatpush1.bf16.msra.mxu0 %v15033_v48  ;;  %10596 = vmatpush1.bf16.msra.mxu1 %v15036_v49  ;;  %v15069_v48 = vld [vmem:[#allocation6 + $0xf60] ss:$272 sps:$4 sm:$0xff]   ;;  %v15072_v49 = vld [vmem:[#allocation6 + $0xf68] ss:$272 sps:$4 sm:$0xff]  }
 0x43c   :  { %10554 = vmatprep.subr.bf16.mxu0 %v15041_v50  ;;  %10597 = vmatprep.subr.bf16.mxu1 %v15044_v51  ;;  %v15077_v50 = vld [vmem:[#allocation6 + $0x94] ss:$272 sps:$4 sm:$0xff]   ;;  %v15080_v51 = vld [vmem:[#allocation6 + $0x9c] ss:$272 sps:$4 sm:$0xff]  }
 0x43f   :  { %10555 = vmatpush1.bf16.msra.mxu0 %v15039_v52  ;;  %10598 = vmatpush1.bf16.msra.mxu1 %v15042_v55 }
 0x440   :  { %10556 = vmatprep.subr.bf16.mxu0 %v15047_v59  ;;  %10599 = vmatprep.subr.bf16.mxu1 %v15050_v60  ;;  %v15075_v59 = vld [vmem:[#allocation6 + $0x90] ss:$272 sps:$4 sm:$0xff]   ;;  %v15078_v60 = vld [vmem:[#allocation6 + $0x98] ss:$272 sps:$4 sm:$0xff]  }
 0x443   :  { %10557 = vmatpush1.bf16.msra.mxu0 %v15045_v61  ;;  %10600 = vmatpush1.bf16.msra.mxu1 %v15048_v62  ;;  %v15083_v61 = vld [vmem:[#allocation6 + $0x2b4] ss:$272 sps:$4 sm:$0xff]   ;;  %v15086_v62 = vld [vmem:[#allocation6 + $0x2bc] ss:$272 sps:$4 sm:$0xff]  }
 0x444   :  { %10558 = vmatprep.subr.bf16.mxu0 %v15053_v63  ;;  %10601 = vmatprep.subr.bf16.mxu1 %v15056_v0  ;;  %v15081_v63 = vld [vmem:[#allocation6 + $0x2b0] ss:$272 sps:$4 sm:$0xff]   ;;  %v15084_v0 = vld [vmem:[#allocation6 + $0x2b8] ss:$272 sps:$4 sm:$0xff]  }
 0x447   :  { %10559 = vmatpush1.bf16.msra.mxu0 %v15051_v3  ;;  %10602 = vmatpush1.bf16.msra.mxu1 %v15054_v4  ;;  %v15089_v3 = vld [vmem:[#allocation6 + $0x4d4] ss:$272 sps:$4 sm:$0xff]   ;;  %v15092_v4 = vld [vmem:[#allocation6 + $0x4dc] ss:$272 sps:$4 sm:$0xff]  }
 0x448   :  { %10560 = vmatprep.subr.bf16.mxu0 %v15059_v7  ;;  %10603 = vmatprep.subr.bf16.mxu1 %v15062_v8  ;;  %v15087_v7 = vld [vmem:[#allocation6 + $0x4d0] ss:$272 sps:$4 sm:$0xff]   ;;  %v15090_v8 = vld [vmem:[#allocation6 + $0x4d8] ss:$272 sps:$4 sm:$0xff]  }
 0x449   :  { %v9982_v16 = vpop.f32.mrb[72].mxu0  ;;  %v10025_v17 = vpop.f32.mrb[72].mxu1 }
 0x44a   :  { %v9983_v18 = vadd.f32 %v9982_v16, %v6821_v9  ;;  %v10026_v19 = vadd.f32 %v10025_v17, %v6829_v10  ;;  %v9984_v20 = vpop.f32.mrb[73].mxu0  ;;  %v10027_v21 = vpop.f32.mrb[73].mxu1  ;;  %v16024_v16 = vld [vmem:[#allocation7 + $0x8] sm:$0xff]  ;;  %v15107_v17 = vld [vmem:[#allocation6 + $0xb34] ss:$272 sps:$4 sm:$0xff]  }
 0x44b   :  { %v9985_v24 = vadd.f32 %v9984_v20, %v6825_v11  ;;  %v10028_v25 = vadd.f32 %v10027_v21, %v6833_v12  ;;  %v9986_v26 = vpop.f32.mrb[74].mxu0  ;;  %v10029_v27 = vpop.f32.mrb[74].mxu1  ;;  %10561 = vmatpush1.bf16.msra.mxu0 %v15057_v47  ;;  %10604 = vmatpush1.bf16.msra.mxu1 %v15060_v13  ;;  %v15101_v47 = vld [vmem:[#allocation6 + $0x914] ss:$272 sps:$4 sm:$0xff]   ;;  %v15104_v13 = vld [vmem:[#allocation6 + $0x91c] ss:$272 sps:$4 sm:$0xff]   ;;  %v6845_v20 = vrot.slane %v16024_v16, %v15954_v54 }
 0x44c   :  { %v11328_v30 = vmax.f32 %v9983_v18, 0.0  ;;  %v11330_v31 = vmax.f32 %v10026_v19, 0.0  ;;  %v9987_v32 = vadd.f32 %v9986_v26, %v6821_v9  ;;  %v10030_v33 = vadd.f32 %v10029_v27, %v6829_v10  ;;  %v9988_v34 = vpop.f32.mrb[75].mxu0  ;;  %v10031_v35 = vpop.f32.mrb[75].mxu1  ;;  %10562 = vmatprep.subr.bf16.mxu0 %v15065_v14  ;;  %10605 = vmatprep.subr.bf16.mxu1 %v15068_v15  ;;  %v15095_v9 = vld [vmem:[#allocation6 + $0x6f4] ss:$272 sps:$4 sm:$0xff]  }
 0x44d   :  { %v11329_v37 = vmax.f32 %v9985_v24, 0.0  ;;  %v11331_v38 = vmax.f32 %v10028_v25, 0.0  ;;  %v9989_v39 = vadd.f32 %v9988_v34, %v6825_v11  ;;  %v10032_v40 = vadd.f32 %v10031_v35, %v6833_v12  ;;  %v15098_v10 = vld [vmem:[#allocation6 + $0x6fc] ss:$272 sps:$4 sm:$0xff]   ;;  %v15093_v11 = vld [vmem:[#allocation6 + $0x6f0] ss:$272 sps:$4 sm:$0xff]  }
 0x44e   :  { %v11396_v41 = vmax.f32 %v9987_v32, 0.0  ;;  %v11398_v42 = vmax.f32 %v10030_v33, 0.0  ;;  %v15096_v12 = vld [vmem:[#allocation6 + $0x6f8] ss:$272 sps:$4 sm:$0xff]   ;;  %v15099_v14 = vld [vmem:[#allocation6 + $0x910] ss:$272 sps:$4 sm:$0xff]   ;;  %v6837_v19 = vrot.slane %v16024_v16, %v15951_v53  ;;  %v6841_v21 = vrot.slane %v16024_v16, %v15959_v57 }
 0x44f   :  { %v13174_v43 = vpack.c.bf16 %v11329_v37, %v11328_v30  ;;  %v13175_v44 = vpack.c.bf16 %v11331_v38, %v11330_v31  ;;  %v11397_v45 = vmax.f32 %v9989_v39, 0.0  ;;  %v11399_v46 = vmax.f32 %v10032_v40, 0.0  ;;  %10563 = vmatpush1.bf16.msra.mxu0 %v15063_v23  ;;  %10606 = vmatpush1.bf16.msra.mxu1 %v15066_v56  ;;  %v15102_v15 = vld [vmem:[#allocation6 + $0x918] ss:$272 sps:$4 sm:$0xff]   ;;  %v15110_v18 = vld [vmem:[#allocation6 + $0xb3c] ss:$272 sps:$4 sm:$0xff]  }
 0x450   :  { %10564 = vmatprep.subr.bf16.mxu0 %v15071_v28  ;;  %10607 = vmatprep.subr.bf16.mxu1 %v15074_v36  ;;  %v6849_v23 = vrot.slane %v16024_v16, %v15962_v58  ;;  %v15105_v24 = vld [vmem:[#allocation6 + $0xb30] ss:$272 sps:$4 sm:$0xff]   ;;  %v15108_v25 = vld [vmem:[#allocation6 + $0xb38] ss:$272 sps:$4 sm:$0xff]   ;;  %v15113_v26 = vld [vmem:[#allocation6 + $0xd54] ss:$272 sps:$4 sm:$0xff]  }
 0x451   :  { %11870 = vst [vmem:[%s16339_s5 + $0x10] sm:$0xff] %v13174_v43  ;;  %11871 = vst [vmem:[%s16339_s5 + $0x18] sm:$0xff] %v13175_v44  ;;  %v13208_v52 = vpack.c.bf16 %v11397_v45, %v11396_v41  ;;  %v13209_v55 = vpack.c.bf16 %v11399_v46, %v11398_v42  ;;  %v15116_v27 = vld [vmem:[#allocation6 + $0xd5c] ss:$272 sps:$4 sm:$0xff]   ;;  %v15111_v34 = vld [vmem:[#allocation6 + $0xd50] ss:$272 sps:$4 sm:$0xff]  }
 0x452   :  { %v15114_v39 = vld [vmem:[#allocation6 + $0xd58] ss:$272 sps:$4 sm:$0xff]   ;;  %v15119_v40 = vld [vmem:[#allocation6 + $0xf74] ss:$272 sps:$4 sm:$0xff]  }
 0x453   :  { %11904 = vst [vmem:[%s16339_s5 + $0x120] sm:$0xff] %v13208_v52  ;;  %11905 = vst [vmem:[%s16339_s5 + $0x128] sm:$0xff] %v13209_v55  ;;  %10565 = vmatpush1.bf16.msra.mxu0 %v15069_v48  ;;  %10608 = vmatpush1.bf16.msra.mxu1 %v15072_v49  ;;  %v15122_v48 = vld [vmem:[#allocation6 + $0xf7c] ss:$272 sps:$4 sm:$0xff]  }
 0x454   :  { %10636 = vmatprep.subr.bf16.mxu0 %v15077_v50  ;;  %10679 = vmatprep.subr.bf16.mxu1 %v15080_v51 }
 0x456   :  { %10583 = vmatmul.mubr.bf16.vlgmr.msra.gmra.mrb[100].mxu0 %v15918_v29  ;;  %10626 = vmatmul.mubr.bf16.vlgmr.msra.gmra.mrb[100].mxu1 %v15918_v29 }
 0x457   :  { %10637 = vmatpush1.bf16.msra.mxu0 %v15075_v59  ;;  %10680 = vmatpush1.bf16.msra.mxu1 %v15078_v60 }
 0x458   :  { %10638 = vmatprep.subr.bf16.mxu0 %v15083_v61  ;;  %10681 = vmatprep.subr.bf16.mxu1 %v15086_v62 }
 0x459   :  { %10668 = vmatprep.mubr.bf16.mxu0 %v15561_v22  ;;  %10711 = vmatprep.mubr.bf16.mxu1 %v15561_v22 }
 0x45b   :  { %10639 = vmatpush1.bf16.msra.mxu0 %v15081_v63  ;;  %10682 = vmatpush1.bf16.msra.mxu1 %v15084_v0  ;;  %v15117_v0 = vld [vmem:[#allocation6 + $0xf70] ss:$272 sps:$4 sm:$0xff]  }
 0x45c   :  { %10640 = vmatprep.subr.bf16.mxu0 %v15089_v3  ;;  %10683 = vmatprep.subr.bf16.mxu1 %v15092_v4  ;;  %v15120_v3 = vld [vmem:[#allocation6 + $0xf78] ss:$272 sps:$4 sm:$0xff]   ;;  %v15125_v4 = vld [vmem:[#allocation6 + $0xa4] ss:$272 sps:$4 sm:$0xff]  }
 0x45f   :  { %10641 = vmatpush1.bf16.msra.mxu0 %v15087_v7  ;;  %10684 = vmatpush1.bf16.msra.mxu1 %v15090_v8  ;;  %v15128_v7 = vld [vmem:[#allocation6 + $0xac] ss:$272 sps:$4 sm:$0xff]  }
 0x460   :  { %10642 = vmatprep.subr.bf16.mxu0 %v15095_v9  ;;  %10685 = vmatprep.subr.bf16.mxu1 %v15098_v10  ;;  %v15123_v10 = vld [vmem:[#allocation6 + $0xa0] ss:$272 sps:$4 sm:$0xff]  }
 0x463   :  { %10643 = vmatpush1.bf16.msra.mxu0 %v15093_v11  ;;  %10686 = vmatpush1.bf16.msra.mxu1 %v15096_v12  ;;  %v15126_v11 = vld [vmem:[#allocation6 + $0xa8] ss:$272 sps:$4 sm:$0xff]   ;;  %v15131_v12 = vld [vmem:[#allocation6 + $0x2c4] ss:$272 sps:$4 sm:$0xff]  }
 0x464   :  { %10644 = vmatprep.subr.bf16.mxu0 %v15101_v47  ;;  %10687 = vmatprep.subr.bf16.mxu1 %v15104_v13  ;;  %v15134_v47 = vld [vmem:[#allocation6 + $0x2cc] ss:$272 sps:$4 sm:$0xff]   ;;  %v15129_v13 = vld [vmem:[#allocation6 + $0x2c0] ss:$272 sps:$4 sm:$0xff]  }
 0x467   :  { %10645 = vmatpush1.bf16.msra.mxu0 %v15099_v14  ;;  %10688 = vmatpush1.bf16.msra.mxu1 %v15102_v15  ;;  %v15132_v14 = vld [vmem:[#allocation6 + $0x2c8] ss:$272 sps:$4 sm:$0xff]   ;;  %v15137_v15 = vld [vmem:[#allocation6 + $0x4e4] ss:$272 sps:$4 sm:$0xff]  }
 0x468   :  { %10646 = vmatprep.subr.bf16.mxu0 %v15107_v17  ;;  %10689 = vmatprep.subr.bf16.mxu1 %v15110_v18  ;;  %v15140_v17 = vld [vmem:[#allocation6 + $0x4ec] ss:$272 sps:$4 sm:$0xff]   ;;  %v15135_v18 = vld [vmem:[#allocation6 + $0x4e0] ss:$272 sps:$4 sm:$0xff]  }
 0x469   :  { %v10068_v56 = vpop.f32.mrb[76].mxu0  ;;  %v10111_v28 = vpop.f32.mrb[76].mxu1 }
 0x46a   :  { %v10069_v30 = vadd.f32 %v10068_v56, %v6837_v19  ;;  %v10112_v31 = vadd.f32 %v10111_v28, %v6845_v20  ;;  %v10070_v32 = vpop.f32.mrb[77].mxu0  ;;  %v10113_v33 = vpop.f32.mrb[77].mxu1  ;;  %v15150_v56 = vld [vmem:[#allocation6 + $0x928] ss:$272 sps:$4 sm:$0xff]   ;;  %v15155_v28 = vld [vmem:[#allocation6 + $0xb44] ss:$272 sps:$4 sm:$0xff]  }
 0x46b   :  { %v10071_v35 = vadd.f32 %v10070_v32, %v6841_v21  ;;  %v10114_v36 = vadd.f32 %v10113_v33, %v6849_v23  ;;  %v10072_v37 = vpop.f32.mrb[78].mxu0  ;;  %v10115_v38 = vpop.f32.mrb[78].mxu1  ;;  %10647 = vmatpush1.bf16.msra.mxu0 %v15105_v24  ;;  %10690 = vmatpush1.bf16.msra.mxu1 %v15108_v25  ;;  %v15144_v24 = vld [vmem:[#allocation6 + $0x708] ss:$272 sps:$4 sm:$0xff]   ;;  %v15149_v25 = vld [vmem:[#allocation6 + $0x924] ss:$272 sps:$4 sm:$0xff]   ;;  %v6861_v32 = vrot.slane %v16024_v16, %v15992_v2 }
 0x46c   :  { %v11332_v41 = vmax.f32 %v10069_v30, 0.0  ;;  %v11334_v42 = vmax.f32 %v10112_v31, 0.0  ;;  %v10073_v43 = vadd.f32 %v10072_v37, %v6837_v19  ;;  %v10116_v44 = vadd.f32 %v10115_v38, %v6845_v20  ;;  %v10074_v45 = vpop.f32.mrb[79].mxu0  ;;  %v10117_v46 = vpop.f32.mrb[79].mxu1  ;;  %10648 = vmatprep.subr.bf16.mxu0 %v15113_v26  ;;  %10691 = vmatprep.subr.bf16.mxu1 %v15116_v27  ;;  %v15138_v19 = vld [vmem:[#allocation6 + $0x4e8] ss:$272 sps:$4 sm:$0xff]  }
 0x46d   :  { %v11333_v49 = vmax.f32 %v10071_v35, 0.0  ;;  %v11335_v50 = vmax.f32 %v10114_v36, 0.0  ;;  %v10075_v51 = vadd.f32 %v10074_v45, %v6841_v21  ;;  %v10118_v52 = vadd.f32 %v10117_v46, %v6849_v23  ;;  %v15143_v20 = vld [vmem:[#allocation6 + $0x704] ss:$272 sps:$4 sm:$0xff]   ;;  %v15146_v21 = vld [vmem:[#allocation6 + $0x70c] ss:$272 sps:$4 sm:$0xff]  }
 0x46e   :  { %v11400_v55 = vmax.f32 %v10073_v43, 0.0  ;;  %v11402_v59 = vmax.f32 %v10116_v44, 0.0  ;;  %v15141_v23 = vld [vmem:[#allocation6 + $0x700] ss:$272 sps:$4 sm:$0xff]   ;;  %v15152_v26 = vld [vmem:[#allocation6 + $0x92c] ss:$272 sps:$4 sm:$0xff]   ;;  %v6853_v31 = vrot.slane %v16024_v16, %v15989_v1  ;;  %v6857_v33 = vrot.slane %v16024_v16, %v15995_v5 }
 0x46f   :  { %v13176_v60 = vpack.c.bf16 %v11333_v49, %v11332_v41  ;;  %v13177_v61 = vpack.c.bf16 %v11335_v50, %v11334_v42  ;;  %v11401_v62 = vmax.f32 %v10075_v51, 0.0  ;;  %v11403_v63 = vmax.f32 %v10118_v52, 0.0  ;;  %10649 = vmatpush1.bf16.msra.mxu0 %v15111_v34  ;;  %10692 = vmatpush1.bf16.msra.mxu1 %v15114_v39  ;;  %v15147_v27 = vld [vmem:[#allocation6 + $0x920] ss:$272 sps:$4 sm:$0xff]   ;;  %v15158_v30 = vld [vmem:[#allocation6 + $0xb4c] ss:$272 sps:$4 sm:$0xff]  }
 0x470   :  { %10650 = vmatprep.subr.bf16.mxu0 %v15119_v40  ;;  %10693 = vmatprep.subr.bf16.mxu1 %v15122_v48  ;;  %v6865_v34 = vrot.slane %v16024_v16, %v15998_v6  ;;  %v15153_v35 = vld [vmem:[#allocation6 + $0xb40] ss:$272 sps:$4 sm:$0xff]   ;;  %v15156_v36 = vld [vmem:[#allocation6 + $0xb48] ss:$272 sps:$4 sm:$0xff]   ;;  %v15161_v37 = vld [vmem:[#allocation6 + $0xd64] ss:$272 sps:$4 sm:$0xff]  }
 0x471   :  { %11872 = vst [vmem:[%s16339_s5 + $0x20] sm:$0xff] %v13176_v60  ;;  %11873 = vst [vmem:[%s16339_s5 + $0x28] sm:$0xff] %v13177_v61  ;;  %v13210_v8 = vpack.c.bf16 %v11401_v62, %v11400_v55  ;;  %v13211_v9 = vpack.c.bf16 %v11403_v63, %v11402_v59  ;;  %v15164_v38 = vld [vmem:[#allocation6 + $0xd6c] ss:$272 sps:$4 sm:$0xff]   ;;  %v15159_v45 = vld [vmem:[#allocation6 + $0xd60] ss:$272 sps:$4 sm:$0xff]  }
 0x472   :  { %v15162_v16 = vld [vmem:[#allocation6 + $0xd68] ss:$272 sps:$4 sm:$0xff]   ;;  %v15167_v51 = vld [vmem:[#allocation6 + $0xf84] ss:$272 sps:$4 sm:$0xff]   ;;  %v15170_v63 = vld [vmem:[#allocation6 + $0xf8c] ss:$272 sps:$4 sm:$0xff]  }
 0x473   :  { %11906 = vst [vmem:[%s16339_s5 + $0x130] sm:$0xff] %v13210_v8  ;;  %11907 = vst [vmem:[%s16339_s5 + $0x138] sm:$0xff] %v13211_v9  ;;  %10651 = vmatpush1.bf16.msra.mxu0 %v15117_v0  ;;  %10694 = vmatpush1.bf16.msra.mxu1 %v15120_v3 }
 0x474   :  { %10722 = vmatprep.subr.bf16.mxu0 %v15125_v4  ;;  %10765 = vmatprep.subr.bf16.mxu1 %v15128_v7 }
 0x476   :  { %10669 = vmatmul.mubr.bf16.vlgmr.msra.gmra.mrb[104].mxu0 %v15918_v29  ;;  %10712 = vmatmul.mubr.bf16.vlgmr.msra.gmra.mrb[104].mxu1 %v15918_v29 }
 0x477   :  { %10723 = vmatpush1.bf16.msra.mxu0 %v15123_v10  ;;  %10766 = vmatpush1.bf16.msra.mxu1 %v15126_v11 }
 0x478   :  { %10724 = vmatprep.subr.bf16.mxu0 %v15131_v12  ;;  %10767 = vmatprep.subr.bf16.mxu1 %v15134_v47 }
 0x479   :  { %10754 = vmatprep.mubr.bf16.mxu0 %v15561_v22  ;;  %10797 = vmatprep.mubr.bf16.mxu1 %v15561_v22 }
 0x47b   :  { %10725 = vmatpush1.bf16.msra.mxu0 %v15129_v13  ;;  %10768 = vmatpush1.bf16.msra.mxu1 %v15132_v14  ;;  %v15165_v13 = vld [vmem:[#allocation6 + $0xf80] ss:$272 sps:$4 sm:$0xff]   ;;  %v15168_v14 = vld [vmem:[#allocation6 + $0xf88] ss:$272 sps:$4 sm:$0xff]  }
 0x47c   :  { %10726 = vmatprep.subr.bf16.mxu0 %v15137_v15  ;;  %10769 = vmatprep.subr.bf16.mxu1 %v15140_v17  ;;  %v15173_v15 = vld [vmem:[#allocation6 + $0xb4] ss:$272 sps:$4 sm:$0xff]   ;;  %v15176_v17 = vld [vmem:[#allocation6 + $0xbc] ss:$272 sps:$4 sm:$0xff]  }
 0x47f   :  { %10727 = vmatpush1.bf16.msra.mxu0 %v15135_v18  ;;  %10770 = vmatpush1.bf16.msra.mxu1 %v15138_v19 }
 0x480   :  { %10728 = vmatprep.subr.bf16.mxu0 %v15143_v20  ;;  %10771 = vmatprep.subr.bf16.mxu1 %v15146_v21  ;;  %v15171_v20 = vld [vmem:[#allocation6 + $0xb0] ss:$272 sps:$4 sm:$0xff]   ;;  %v15174_v21 = vld [vmem:[#allocation6 + $0xb8] ss:$272 sps:$4 sm:$0xff]  }
 0x483   :  { %10729 = vmatpush1.bf16.msra.mxu0 %v15141_v23  ;;  %10772 = vmatpush1.bf16.msra.mxu1 %v15144_v24  ;;  %v15179_v23 = vld [vmem:[#allocation6 + $0x2d4] ss:$272 sps:$4 sm:$0xff]   ;;  %v15182_v24 = vld [vmem:[#allocation6 + $0x2dc] ss:$272 sps:$4 sm:$0xff]  }
 0x484   :  { %10730 = vmatprep.subr.bf16.mxu0 %v15149_v25  ;;  %10773 = vmatprep.subr.bf16.mxu1 %v15152_v26  ;;  %v15177_v25 = vld [vmem:[#allocation6 + $0x2d0] ss:$272 sps:$4 sm:$0xff]   ;;  %v15180_v26 = vld [vmem:[#allocation6 + $0x2d8] ss:$272 sps:$4 sm:$0xff]  }
 0x487   :  { %10731 = vmatpush1.bf16.msra.mxu0 %v15147_v27  ;;  %10774 = vmatpush1.bf16.msra.mxu1 %v15150_v56  ;;  %v15185_v27 = vld [vmem:[#allocation6 + $0x4f4] ss:$272 sps:$4 sm:$0xff]   ;;  %v15188_v56 = vld [vmem:[#allocation6 + $0x4fc] ss:$272 sps:$4 sm:$0xff]  }
 0x488   :  { %10732 = vmatprep.subr.bf16.mxu0 %v15155_v28  ;;  %10775 = vmatprep.subr.bf16.mxu1 %v15158_v30  ;;  %v15183_v28 = vld [vmem:[#allocation6 + $0x4f0] ss:$272 sps:$4 sm:$0xff]   ;;  %v15186_v30 = vld [vmem:[#allocation6 + $0x4f8] ss:$272 sps:$4 sm:$0xff]  }
 0x489   :  { %v10154_v39 = vpop.f32.mrb[80].mxu0  ;;  %v10197_v40 = vpop.f32.mrb[80].mxu1 }
 0x48a   :  { %v10155_v41 = vadd.f32 %v10154_v39, %v6853_v31  ;;  %v10198_v42 = vadd.f32 %v10197_v40, %v6861_v32  ;;  %v10156_v43 = vpop.f32.mrb[81].mxu0  ;;  %v10199_v44 = vpop.f32.mrb[81].mxu1  ;;  %v16074_v39 = vld [vmem:[#allocation7 + $0x10] sm:$0xff] }
 0x48b   :  { %v10157_v46 = vadd.f32 %v10156_v43, %v6857_v33  ;;  %v10200_v48 = vadd.f32 %v10199_v44, %v6865_v34  ;;  %v10158_v49 = vpop.f32.mrb[82].mxu0  ;;  %v10201_v50 = vpop.f32.mrb[82].mxu1  ;;  %10733 = vmatpush1.bf16.msra.mxu0 %v15153_v35  ;;  %10776 = vmatpush1.bf16.msra.mxu1 %v15156_v36  ;;  %v15197_v35 = vld [vmem:[#allocation6 + $0x934] ss:$272 sps:$4 sm:$0xff]   ;;  %v15200_v36 = vld [vmem:[#allocation6 + $0x93c] ss:$272 sps:$4 sm:$0xff]   ;;  %v6877_v43 = vrot.slane %v16074_v39, %v15954_v54 }
 0x48c   :  { %v11336_v52 = vmax.f32 %v10155_v41, 0.0  ;;  %v11338_v55 = vmax.f32 %v10198_v42, 0.0  ;;  %v10159_v59 = vadd.f32 %v10158_v49, %v6853_v31  ;;  %v10202_v60 = vadd.f32 %v10201_v50, %v6861_v32  ;;  %v10160_v61 = vpop.f32.mrb[83].mxu0  ;;  %v10203_v62 = vpop.f32.mrb[83].mxu1  ;;  %10734 = vmatprep.subr.bf16.mxu0 %v15161_v37  ;;  %10777 = vmatprep.subr.bf16.mxu1 %v15164_v38  ;;  %v15191_v31 = vld [vmem:[#allocation6 + $0x714] ss:$272 sps:$4 sm:$0xff]  }
 0x48d   :  { %v11337_v0 = vmax.f32 %v10157_v46, 0.0  ;;  %v11339_v3 = vmax.f32 %v10200_v48, 0.0  ;;  %v10161_v4 = vadd.f32 %v10160_v61, %v6857_v33  ;;  %v10204_v7 = vadd.f32 %v10203_v62, %v6865_v34  ;;  %v15194_v32 = vld [vmem:[#allocation6 + $0x71c] ss:$272 sps:$4 sm:$0xff]   ;;  %v15189_v33 = vld [vmem:[#allocation6 + $0x710] ss:$272 sps:$4 sm:$0xff]  }
 0x48e   :  { %v11404_v8 = vmax.f32 %v10159_v59, 0.0  ;;  %v11406_v9 = vmax.f32 %v10202_v60, 0.0  ;;  %v15192_v34 = vld [vmem:[#allocation6 + $0x718] ss:$272 sps:$4 sm:$0xff]   ;;  %v15195_v37 = vld [vmem:[#allocation6 + $0x930] ss:$272 sps:$4 sm:$0xff]   ;;  %v6869_v42 = vrot.slane %v16074_v39, %v15951_v53  ;;  %v6873_v44 = vrot.slane %v16074_v39, %v15959_v57 }
 0x48f   :  { %v13178_v10 = vpack.c.bf16 %v11337_v0, %v11336_v52  ;;  %v13179_v11 = vpack.c.bf16 %v11339_v3, %v11338_v55  ;;  %v11405_v12 = vmax.f32 %v10161_v4, 0.0  ;;  %v11407_v47 = vmax.f32 %v10204_v7, 0.0  ;;  %10735 = vmatpush1.bf16.msra.mxu0 %v15159_v45  ;;  %10778 = vmatpush1.bf16.msra.mxu1 %v15162_v16  ;;  %v15198_v38 = vld [vmem:[#allocation6 + $0x938] ss:$272 sps:$4 sm:$0xff]   ;;  %v15203_v40 = vld [vmem:[#allocation6 + $0xb54] ss:$272 sps:$4 sm:$0xff]  }
 0x490   :  { %10736 = vmatprep.subr.bf16.mxu0 %v15167_v51  ;;  %10779 = vmatprep.subr.bf16.mxu1 %v15170_v63  ;;  %v15206_v41 = vld [vmem:[#allocation6 + $0xb5c] ss:$272 sps:$4 sm:$0xff]   ;;  %v6881_v45 = vrot.slane %v16074_v39, %v15962_v58  ;;  %v15201_v46 = vld [vmem:[#allocation6 + $0xb50] ss:$272 sps:$4 sm:$0xff]   ;;  %v15204_v48 = vld [vmem:[#allocation6 + $0xb58] ss:$272 sps:$4 sm:$0xff]  }
 0x491   :  { %11874 = vst [vmem:[%s16339_s5 + $0x30] sm:$0xff] %v13178_v10  ;;  %11875 = vst [vmem:[%s16339_s5 + $0x38] sm:$0xff] %v13179_v11  ;;  %v13212_v18 = vpack.c.bf16 %v11405_v12, %v11404_v8  ;;  %v13213_v19 = vpack.c.bf16 %v11407_v47, %v11406_v9  ;;  %v15209_v49 = vld [vmem:[#allocation6 + $0xd74] ss:$272 sps:$4 sm:$0xff]   ;;  %v15212_v50 = vld [vmem:[#allocation6 + $0xd7c] ss:$272 sps:$4 sm:$0xff]  }
 0x492   :  { %v15207_v61 = vld [vmem:[#allocation6 + $0xd70] ss:$272 sps:$4 sm:$0xff]   ;;  %v15210_v4 = vld [vmem:[#allocation6 + $0xd78] ss:$272 sps:$4 sm:$0xff]   ;;  %v15215_v7 = vld [vmem:[#allocation6 + $0xf94] ss:$272 sps:$4 sm:$0xff]  }
 0x493   :  { %11908 = vst [vmem:[%s16339_s5 + $0x140] sm:$0xff] %v13212_v18  ;;  %11909 = vst [vmem:[%s16339_s5 + $0x148] sm:$0xff] %v13213_v19  ;;  %10737 = vmatpush1.bf16.msra.mxu0 %v15165_v13  ;;  %10780 = vmatpush1.bf16.msra.mxu1 %v15168_v14  ;;  %v15218_v13 = vld [vmem:[#allocation6 + $0xf9c] ss:$272 sps:$4 sm:$0xff]  }
 0x494   :  { %10808 = vmatprep.subr.bf16.mxu0 %v15173_v15  ;;  %10851 = vmatprep.subr.bf16.mxu1 %v15176_v17 }
 0x496   :  { %10755 = vmatmul.mubr.bf16.vlgmr.msra.gmra.mrb[108].mxu0 %v15918_v29  ;;  %10798 = vmatmul.mubr.bf16.vlgmr.msra.gmra.mrb[108].mxu1 %v15918_v29 }
 0x497   :  { %10809 = vmatpush1.bf16.msra.mxu0 %v15171_v20  ;;  %10852 = vmatpush1.bf16.msra.mxu1 %v15174_v21 }
 0x498   :  { %10810 = vmatprep.subr.bf16.mxu0 %v15179_v23  ;;  %10853 = vmatprep.subr.bf16.mxu1 %v15182_v24 }
 0x499   :  { %10840 = vmatprep.mubr.bf16.mxu0 %v15561_v22  ;;  %10883 = vmatprep.mubr.bf16.mxu1 %v15561_v22 }
 0x49b   :  { %10811 = vmatpush1.bf16.msra.mxu0 %v15177_v25  ;;  %10854 = vmatpush1.bf16.msra.mxu1 %v15180_v26  ;;  %v15213_v26 = vld [vmem:[#allocation6 + $0xf90] ss:$272 sps:$4 sm:$0xff]  }
 0x49c   :  { %10812 = vmatprep.subr.bf16.mxu0 %v15185_v27  ;;  %10855 = vmatprep.subr.bf16.mxu1 %v15188_v56  ;;  %v15216_v27 = vld [vmem:[#allocation6 + $0xf98] ss:$272 sps:$4 sm:$0xff]   ;;  %v15221_v56 = vld [vmem:[#allocation6 + $0xc4] ss:$272 sps:$4 sm:$0xff]  }
 0x49f   :  { %10813 = vmatpush1.bf16.msra.mxu0 %v15183_v28  ;;  %10856 = vmatpush1.bf16.msra.mxu1 %v15186_v30  ;;  %v15224_v28 = vld [vmem:[#allocation6 + $0xcc] ss:$272 sps:$4 sm:$0xff]  }
 0x4a0   :  { %10814 = vmatprep.subr.bf16.mxu0 %v15191_v31  ;;  %10857 = vmatprep.subr.bf16.mxu1 %v15194_v32  ;;  %v15219_v32 = vld [vmem:[#allocation6 + $0xc0] ss:$272 sps:$4 sm:$0xff]  }
 0x4a3   :  { %10815 = vmatpush1.bf16.msra.mxu0 %v15189_v33  ;;  %10858 = vmatpush1.bf16.msra.mxu1 %v15192_v34  ;;  %v15222_v33 = vld [vmem:[#allocation6 + $0xc8] ss:$272 sps:$4 sm:$0xff]   ;;  %v15227_v34 = vld [vmem:[#allocation6 + $0x2e4] ss:$272 sps:$4 sm:$0xff]  }
 0x4a4   :  { %10816 = vmatprep.subr.bf16.mxu0 %v15197_v35  ;;  %10859 = vmatprep.subr.bf16.mxu1 %v15200_v36  ;;  %v15230_v35 = vld [vmem:[#allocation6 + $0x2ec] ss:$272 sps:$4 sm:$0xff]   ;;  %v15225_v36 = vld [vmem:[#allocation6 + $0x2e0] ss:$272 sps:$4 sm:$0xff]  }
 0x4a7   :  { %10817 = vmatpush1.bf16.msra.mxu0 %v15195_v37  ;;  %10860 = vmatpush1.bf16.msra.mxu1 %v15198_v38  ;;  %v15228_v37 = vld [vmem:[#allocation6 + $0x2e8] ss:$272 sps:$4 sm:$0xff]   ;;  %v15233_v38 = vld [vmem:[#allocation6 + $0x504] ss:$272 sps:$4 sm:$0xff]  }
 0x4a8   :  { %10818 = vmatprep.subr.bf16.mxu0 %v15203_v40  ;;  %10861 = vmatprep.subr.bf16.mxu1 %v15206_v41  ;;  %v15236_v40 = vld [vmem:[#allocation6 + $0x50c] ss:$272 sps:$4 sm:$0xff]   ;;  %v15231_v41 = vld [vmem:[#allocation6 + $0x500] ss:$272 sps:$4 sm:$0xff]  }
 0x4a9   :  { %v10240_v16 = vpop.f32.mrb[84].mxu0  ;;  %v10283_v51 = vpop.f32.mrb[84].mxu1 }
 0x4aa   :  { %v10241_v52 = vadd.f32 %v10240_v16, %v6869_v42  ;;  %v10284_v55 = vadd.f32 %v10283_v51, %v6877_v43  ;;  %v10242_v59 = vpop.f32.mrb[85].mxu0  ;;  %v10285_v60 = vpop.f32.mrb[85].mxu1  ;;  %v15246_v16 = vld [vmem:[#allocation6 + $0x948] ss:$272 sps:$4 sm:$0xff]   ;;  %v15251_v51 = vld [vmem:[#allocation6 + $0xb64] ss:$272 sps:$4 sm:$0xff]  }
 0x4ab   :  { %v10243_v62 = vadd.f32 %v10242_v59, %v6873_v44  ;;  %v10286_v63 = vadd.f32 %v10285_v60, %v6881_v45  ;;  %v10244_v0 = vpop.f32.mrb[86].mxu0  ;;  %v10287_v3 = vpop.f32.mrb[86].mxu1  ;;  %10819 = vmatpush1.bf16.msra.mxu0 %v15201_v46  ;;  %10862 = vmatpush1.bf16.msra.mxu1 %v15204_v48  ;;  %v15240_v46 = vld [vmem:[#allocation6 + $0x728] ss:$272 sps:$4 sm:$0xff]   ;;  %v15245_v48 = vld [vmem:[#allocation6 + $0x944] ss:$272 sps:$4 sm:$0xff]   ;;  %v6893_v59 = vrot.slane %v16074_v39, %v15992_v2 }
 0x4ac   :  { %v11340_v8 = vmax.f32 %v10241_v52, 0.0  ;;  %v11342_v9 = vmax.f32 %v10284_v55, 0.0  ;;  %v10245_v10 = vadd.f32 %v10244_v0, %v6869_v42  ;;  %v10288_v11 = vadd.f32 %v10287_v3, %v6877_v43  ;;  %v10246_v12 = vpop.f32.mrb[87].mxu0  ;;  %v10289_v47 = vpop.f32.mrb[87].mxu1  ;;  %10820 = vmatprep.subr.bf16.mxu0 %v15209_v49  ;;  %10863 = vmatprep.subr.bf16.mxu1 %v15212_v50  ;;  %v15234_v42 = vld [vmem:[#allocation6 + $0x508] ss:$272 sps:$4 sm:$0xff]  }
 0x4ad   :  { %v11341_v14 = vmax.f32 %v10243_v62, 0.0  ;;  %v11343_v15 = vmax.f32 %v10286_v63, 0.0  ;;  %v10247_v17 = vadd.f32 %v10246_v12, %v6873_v44  ;;  %v10290_v18 = vadd.f32 %v10289_v47, %v6881_v45  ;;  %v15239_v43 = vld [vmem:[#allocation6 + $0x724] ss:$272 sps:$4 sm:$0xff]   ;;  %v15242_v44 = vld [vmem:[#allocation6 + $0x72c] ss:$272 sps:$4 sm:$0xff]  }
 0x4ae   :  { %v11408_v19 = vmax.f32 %v10245_v10, 0.0  ;;  %v11410_v20 = vmax.f32 %v10288_v11, 0.0  ;;  %v15237_v45 = vld [vmem:[#allocation6 + $0x720] ss:$272 sps:$4 sm:$0xff]   ;;  %v15248_v49 = vld [vmem:[#allocation6 + $0x94c] ss:$272 sps:$4 sm:$0xff]   ;;  %v6885_v55 = vrot.slane %v16074_v39, %v15989_v1  ;;  %v6889_v60 = vrot.slane %v16074_v39, %v15995_v5 }
 0x4af   :  { %v13180_v21 = vpack.c.bf16 %v11341_v14, %v11340_v8  ;;  %v13181_v23 = vpack.c.bf16 %v11343_v15, %v11342_v9  ;;  %v11409_v24 = vmax.f32 %v10247_v17, 0.0  ;;  %v11411_v25 = vmax.f32 %v10290_v18, 0.0  ;;  %10821 = vmatpush1.bf16.msra.mxu0 %v15207_v61  ;;  %10864 = vmatpush1.bf16.msra.mxu1 %v15210_v4  ;;  %v15243_v50 = vld [vmem:[#allocation6 + $0x940] ss:$272 sps:$4 sm:$0xff]   ;;  %v15254_v52 = vld [vmem:[#allocation6 + $0xb6c] ss:$272 sps:$4 sm:$0xff]  }
 0x4b0   :  { %10822 = vmatprep.subr.bf16.mxu0 %v15215_v7  ;;  %10865 = vmatprep.subr.bf16.mxu1 %v15218_v13  ;;  %v6897_v61 = vrot.slane %v16074_v39, %v15998_v6  ;;  %v15249_v62 = vld [vmem:[#allocation6 + $0xb60] ss:$272 sps:$4 sm:$0xff]   ;;  %v15252_v63 = vld [vmem:[#allocation6 + $0xb68] ss:$272 sps:$4 sm:$0xff]   ;;  %v15257_v0 = vld [vmem:[#allocation6 + $0xd84] ss:$272 sps:$4 sm:$0xff]  }
 0x4b1   :  { %11876 = vst [vmem:[%s16339_s5 + $0x40] sm:$0xff] %v13180_v21  ;;  %11877 = vst [vmem:[%s16339_s5 + $0x48] sm:$0xff] %v13181_v23  ;;  %v13214_v30 = vpack.c.bf16 %v11409_v24, %v11408_v19  ;;  %v13215_v31 = vpack.c.bf16 %v11411_v25, %v11410_v20  ;;  %v15260_v3 = vld [vmem:[#allocation6 + $0xd8c] ss:$272 sps:$4 sm:$0xff]   ;;  %v15255_v12 = vld [vmem:[#allocation6 + $0xd80] ss:$272 sps:$4 sm:$0xff]  }
 0x4b2   :  { %v15258_v39 = vld [vmem:[#allocation6 + $0xd88] ss:$272 sps:$4 sm:$0xff]   ;;  %v15263_v17 = vld [vmem:[#allocation6 + $0xfa4] ss:$272 sps:$4 sm:$0xff]   ;;  %v15266_v25 = vld [vmem:[#allocation6 + $0xfac] ss:$272 sps:$4 sm:$0xff]  }
 0x4b3   :  { %11910 = vst [vmem:[%s16339_s5 + $0x150] sm:$0xff] %v13214_v30  ;;  %11911 = vst [vmem:[%s16339_s5 + $0x158] sm:$0xff] %v13215_v31  ;;  %10823 = vmatpush1.bf16.msra.mxu0 %v15213_v26  ;;  %10866 = vmatpush1.bf16.msra.mxu1 %v15216_v27 }
 0x4b4   :  { %10894 = vmatprep.subr.bf16.mxu0 %v15221_v56  ;;  %10937 = vmatprep.subr.bf16.mxu1 %v15224_v28 }
 0x4b6   :  { %10841 = vmatmul.mubr.bf16.vlgmr.msra.gmra.mrb[112].mxu0 %v15918_v29  ;;  %10884 = vmatmul.mubr.bf16.vlgmr.msra.gmra.mrb[112].mxu1 %v15918_v29 }
 0x4b7   :  { %10895 = vmatpush1.bf16.msra.mxu0 %v15219_v32  ;;  %10938 = vmatpush1.bf16.msra.mxu1 %v15222_v33 }
 0x4b8   :  { %10896 = vmatprep.subr.bf16.mxu0 %v15227_v34  ;;  %10939 = vmatprep.subr.bf16.mxu1 %v15230_v35 }
 0x4b9   :  { %10926 = vmatprep.mubr.bf16.mxu0 %v15561_v22  ;;  %10969 = vmatprep.mubr.bf16.mxu1 %v15561_v22 }
 0x4bb   :  { %10897 = vmatpush1.bf16.msra.mxu0 %v15225_v36  ;;  %10940 = vmatpush1.bf16.msra.mxu1 %v15228_v37  ;;  %v15261_v36 = vld [vmem:[#allocation6 + $0xfa0] ss:$272 sps:$4 sm:$0xff]   ;;  %v15264_v37 = vld [vmem:[#allocation6 + $0xfa8] ss:$272 sps:$4 sm:$0xff]  }
 0x4bc   :  { %10898 = vmatprep.subr.bf16.mxu0 %v15233_v38  ;;  %10941 = vmatprep.subr.bf16.mxu1 %v15236_v40  ;;  %v15269_v38 = vld [vmem:[#allocation6 + $0xd4] ss:$272 sps:$4 sm:$0xff]   ;;  %v15272_v40 = vld [vmem:[#allocation6 + $0xdc] ss:$272 sps:$4 sm:$0xff]  }
 0x4bf   :  { %10899 = vmatpush1.bf16.msra.mxu0 %v15231_v41  ;;  %10942 = vmatpush1.bf16.msra.mxu1 %v15234_v42 }
 0x4c0   :  { %10900 = vmatprep.subr.bf16.mxu0 %v15239_v43  ;;  %10943 = vmatprep.subr.bf16.mxu1 %v15242_v44  ;;  %v15267_v43 = vld [vmem:[#allocation6 + $0xd0] ss:$272 sps:$4 sm:$0xff]   ;;  %v15270_v44 = vld [vmem:[#allocation6 + $0xd8] ss:$272 sps:$4 sm:$0xff]  }
 0x4c3   :  { %10901 = vmatpush1.bf16.msra.mxu0 %v15237_v45  ;;  %10944 = vmatpush1.bf16.msra.mxu1 %v15240_v46  ;;  %v15275_v45 = vld [vmem:[#allocation6 + $0x2f4] ss:$272 sps:$4 sm:$0xff]   ;;  %v15278_v46 = vld [vmem:[#allocation6 + $0x2fc] ss:$272 sps:$4 sm:$0xff]  }
 0x4c4   :  { %10902 = vmatprep.subr.bf16.mxu0 %v15245_v48  ;;  %10945 = vmatprep.subr.bf16.mxu1 %v15248_v49  ;;  %v15273_v48 = vld [vmem:[#allocation6 + $0x2f0] ss:$272 sps:$4 sm:$0xff]   ;;  %v15276_v49 = vld [vmem:[#allocation6 + $0x2f8] ss:$272 sps:$4 sm:$0xff]  }
 0x4c7   :  { %10903 = vmatpush1.bf16.msra.mxu0 %v15243_v50  ;;  %10946 = vmatpush1.bf16.msra.mxu1 %v15246_v16  ;;  %v15281_v50 = vld [vmem:[#allocation6 + $0x514] ss:$272 sps:$4 sm:$0xff]   ;;  %v15284_v16 = vld [vmem:[#allocation6 + $0x51c] ss:$272 sps:$4 sm:$0xff]  }
 0x4c8   :  { %10904 = vmatprep.subr.bf16.mxu0 %v15251_v51  ;;  %10947 = vmatprep.subr.bf16.mxu1 %v15254_v52  ;;  %v15279_v51 = vld [vmem:[#allocation6 + $0x510] ss:$272 sps:$4 sm:$0xff]   ;;  %v15282_v52 = vld [vmem:[#allocation6 + $0x518] ss:$272 sps:$4 sm:$0xff]  }
 0x4c9   :  { %v10326_v4 = vpop.f32.mrb[88].mxu0  ;;  %v10369_v7 = vpop.f32.mrb[88].mxu1 }
 0x4ca   :  { %v10327_v8 = vadd.f32 %v10326_v4, %v6885_v55  ;;  %v10370_v9 = vadd.f32 %v10369_v7, %v6893_v59  ;;  %v10328_v10 = vpop.f32.mrb[89].mxu0  ;;  %v10371_v11 = vpop.f32.mrb[89].mxu1  ;;  %v16124_v4 = vld [vmem:[#allocation7 + $0x18] sm:$0xff]  ;;  %v15299_v7 = vld [vmem:[#allocation6 + $0xb74] ss:$272 sps:$4 sm:$0xff]  }
 0x4cb   :  { %v10329_v47 = vadd.f32 %v10328_v10, %v6889_v60  ;;  %v10372_v13 = vadd.f32 %v10371_v11, %v6897_v61  ;;  %v10330_v14 = vpop.f32.mrb[90].mxu0  ;;  %v10373_v15 = vpop.f32.mrb[90].mxu1  ;;  %10905 = vmatpush1.bf16.msra.mxu0 %v15249_v62  ;;  %10948 = vmatpush1.bf16.msra.mxu1 %v15252_v63  ;;  %v15293_v62 = vld [vmem:[#allocation6 + $0x954] ss:$272 sps:$4 sm:$0xff]   ;;  %v15296_v63 = vld [vmem:[#allocation6 + $0x95c] ss:$272 sps:$4 sm:$0xff]   ;;  %v6909_v10 = vrot.slane %v16124_v4, %v15954_v54 }
 0x4cc   :  { %v11344_v18 = vmax.f32 %v10327_v8, 0.0  ;;  %v11346_v19 = vmax.f32 %v10370_v9, 0.0  ;;  %v10331_v20 = vadd.f32 %v10330_v14, %v6885_v55  ;;  %v10374_v21 = vadd.f32 %v10373_v15, %v6893_v59  ;;  %v10332_v23 = vpop.f32.mrb[91].mxu0  ;;  %v10375_v24 = vpop.f32.mrb[91].mxu1  ;;  %10906 = vmatprep.subr.bf16.mxu0 %v15257_v0  ;;  %10949 = vmatprep.subr.bf16.mxu1 %v15260_v3  ;;  %v15287_v55 = vld [vmem:[#allocation6 + $0x734] ss:$272 sps:$4 sm:$0xff]  }
 0x4cd   :  { %v11345_v26 = vmax.f32 %v10329_v47, 0.0  ;;  %v11347_v27 = vmax.f32 %v10372_v13, 0.0  ;;  %v10333_v56 = vadd.f32 %v10332_v23, %v6889_v60  ;;  %v10376_v28 = vadd.f32 %v10375_v24, %v6897_v61  ;;  %v15290_v59 = vld [vmem:[#allocation6 + $0x73c] ss:$272 sps:$4 sm:$0xff]   ;;  %v15285_v60 = vld [vmem:[#allocation6 + $0x730] ss:$272 sps:$4 sm:$0xff]  }
 0x4ce   :  { %v11412_v30 = vmax.f32 %v10331_v20, 0.0  ;;  %v11414_v31 = vmax.f32 %v10374_v21, 0.0  ;;  %v15288_v61 = vld [vmem:[#allocation6 + $0x738] ss:$272 sps:$4 sm:$0xff]   ;;  %v15291_v0 = vld [vmem:[#allocation6 + $0x950] ss:$272 sps:$4 sm:$0xff]   ;;  %v6901_v9 = vrot.slane %v16124_v4, %v15951_v53  ;;  %v6905_v11 = vrot.slane %v16124_v4, %v15959_v57 }
 0x4cf   :  { %v13182_v32 = vpack.c.bf16 %v11345_v26, %v11344_v18  ;;  %v13183_v33 = vpack.c.bf16 %v11347_v27, %v11346_v19  ;;  %v11413_v34 = vmax.f32 %v10333_v56, 0.0  ;;  %v11415_v35 = vmax.f32 %v10376_v28, 0.0  ;;  %10907 = vmatpush1.bf16.msra.mxu0 %v15255_v12  ;;  %10950 = vmatpush1.bf16.msra.mxu1 %v15258_v39  ;;  %v15294_v3 = vld [vmem:[#allocation6 + $0x958] ss:$272 sps:$4 sm:$0xff]   ;;  %v15302_v8 = vld [vmem:[#allocation6 + $0xb7c] ss:$272 sps:$4 sm:$0xff]  }
 0x4d0   :  { %10908 = vmatprep.subr.bf16.mxu0 %v15263_v17  ;;  %10951 = vmatprep.subr.bf16.mxu1 %v15266_v25  ;;  %v6913_v12 = vrot.slane %v16124_v4, %v15962_v58  ;;  %v15297_v47 = vld [vmem:[#allocation6 + $0xb70] ss:$272 sps:$4 sm:$0xff]   ;;  %v15300_v13 = vld [vmem:[#allocation6 + $0xb78] ss:$272 sps:$4 sm:$0xff]   ;;  %v15305_v14 = vld [vmem:[#allocation6 + $0xd94] ss:$272 sps:$4 sm:$0xff]  }
 0x4d1   :  { %11878 = vst [vmem:[%s16339_s5 + $0x50] sm:$0xff] %v13182_v32  ;;  %11879 = vst [vmem:[%s16339_s5 + $0x58] sm:$0xff] %v13183_v33  ;;  %v13216_v41 = vpack.c.bf16 %v11413_v34, %v11412_v30  ;;  %v13217_v42 = vpack.c.bf16 %v11415_v35, %v11414_v31  ;;  %v15308_v15 = vld [vmem:[#allocation6 + $0xd9c] ss:$272 sps:$4 sm:$0xff]   ;;  %v15303_v23 = vld [vmem:[#allocation6 + $0xd90] ss:$272 sps:$4 sm:$0xff]  }
 0x4d2   :  { %v15306_v56 = vld [vmem:[#allocation6 + $0xd98] ss:$272 sps:$4 sm:$0xff]   ;;  %v15311_v28 = vld [vmem:[#allocation6 + $0xfb4] ss:$272 sps:$4 sm:$0xff]  }
 0x4d3   :  { %11912 = vst [vmem:[%s16339_s5 + $0x160] sm:$0xff] %v13216_v41  ;;  %11913 = vst [vmem:[%s16339_s5 + $0x168] sm:$0xff] %v13217_v42  ;;  %10909 = vmatpush1.bf16.msra.mxu0 %v15261_v36  ;;  %10952 = vmatpush1.bf16.msra.mxu1 %v15264_v37  ;;  %v15314_v36 = vld [vmem:[#allocation6 + $0xfbc] ss:$272 sps:$4 sm:$0xff]  }
 0x4d4   :  { %10980 = vmatprep.subr.bf16.mxu0 %v15269_v38  ;;  %11023 = vmatprep.subr.bf16.mxu1 %v15272_v40 }
 0x4d6   :  { %10927 = vmatmul.mubr.bf16.vlgmr.msra.gmra.mrb[116].mxu0 %v15918_v29  ;;  %10970 = vmatmul.mubr.bf16.vlgmr.msra.gmra.mrb[116].mxu1 %v15918_v29 }
 0x4d7   :  { %10981 = vmatpush1.bf16.msra.mxu0 %v15267_v43  ;;  %11024 = vmatpush1.bf16.msra.mxu1 %v15270_v44 }
 0x4d8   :  { %10982 = vmatprep.subr.bf16.mxu0 %v15275_v45  ;;  %11025 = vmatprep.subr.bf16.mxu1 %v15278_v46 }
 0x4d9   :  { %11012 = vmatprep.mubr.bf16.mxu0 %v15561_v22  ;;  %11055 = vmatprep.mubr.bf16.mxu1 %v15561_v22 }
 0x4db   :  { %10983 = vmatpush1.bf16.msra.mxu0 %v15273_v48  ;;  %11026 = vmatpush1.bf16.msra.mxu1 %v15276_v49  ;;  %v15309_v49 = vld [vmem:[#allocation6 + $0xfb0] ss:$272 sps:$4 sm:$0xff]  }
 0x4dc   :  { %10984 = vmatprep.subr.bf16.mxu0 %v15281_v50  ;;  %11027 = vmatprep.subr.bf16.mxu1 %v15284_v16  ;;  %v15312_v50 = vld [vmem:[#allocation6 + $0xfb8] ss:$272 sps:$4 sm:$0xff]   ;;  %v15317_v16 = vld [vmem:[#allocation6 + $0xe4] ss:$272 sps:$4 sm:$0xff]  }
 0x4df   :  { %10985 = vmatpush1.bf16.msra.mxu0 %v15279_v51  ;;  %11028 = vmatpush1.bf16.msra.mxu1 %v15282_v52  ;;  %v15320_v51 = vld [vmem:[#allocation6 + $0xec] ss:$272 sps:$4 sm:$0xff]  }
 0x4e0   :  { %10986 = vmatprep.subr.bf16.mxu0 %v15287_v55  ;;  %11029 = vmatprep.subr.bf16.mxu1 %v15290_v59  ;;  %v15315_v59 = vld [vmem:[#allocation6 + $0xe0] ss:$272 sps:$4 sm:$0xff]  }
 0x4e3   :  { %10987 = vmatpush1.bf16.msra.mxu0 %v15285_v60  ;;  %11030 = vmatpush1.bf16.msra.mxu1 %v15288_v61  ;;  %v15318_v60 = vld [vmem:[#allocation6 + $0xe8] ss:$272 sps:$4 sm:$0xff]   ;;  %v15323_v61 = vld [vmem:[#allocation6 + $0x304] ss:$272 sps:$4 sm:$0xff]  }
 0x4e4   :  { %10988 = vmatprep.subr.bf16.mxu0 %v15293_v62  ;;  %11031 = vmatprep.subr.bf16.mxu1 %v15296_v63  ;;  %v15326_v62 = vld [vmem:[#allocation6 + $0x30c] ss:$272 sps:$4 sm:$0xff]   ;;  %v15321_v63 = vld [vmem:[#allocation6 + $0x300] ss:$272 sps:$4 sm:$0xff]  }
 0x4e7   :  { %10989 = vmatpush1.bf16.msra.mxu0 %v15291_v0  ;;  %11032 = vmatpush1.bf16.msra.mxu1 %v15294_v3  ;;  %v15324_v0 = vld [vmem:[#allocation6 + $0x308] ss:$272 sps:$4 sm:$0xff]   ;;  %v15329_v3 = vld [vmem:[#allocation6 + $0x524] ss:$272 sps:$4 sm:$0xff]  }
 0x4e8   :  { %10990 = vmatprep.subr.bf16.mxu0 %v15299_v7  ;;  %11033 = vmatprep.subr.bf16.mxu1 %v15302_v8  ;;  %v15332_v7 = vld [vmem:[#allocation6 + $0x52c] ss:$272 sps:$4 sm:$0xff]   ;;  %v15327_v8 = vld [vmem:[#allocation6 + $0x520] ss:$272 sps:$4 sm:$0xff]  }
 0x4e9   :  { %v10412_v39 = vpop.f32.mrb[92].mxu0  ;;  %v10455_v17 = vpop.f32.mrb[92].mxu1 }
 0x4ea   :  { %v10413_v18 = vadd.f32 %v10412_v39, %v6901_v9  ;;  %v10456_v19 = vadd.f32 %v10455_v17, %v6909_v10  ;;  %v10414_v20 = vpop.f32.mrb[93].mxu0  ;;  %v10457_v21 = vpop.f32.mrb[93].mxu1  ;;  %v15342_v39 = vld [vmem:[#allocation6 + $0x968] ss:$272 sps:$4 sm:$0xff]   ;;  %v15347_v17 = vld [vmem:[#allocation6 + $0xb84] ss:$272 sps:$4 sm:$0xff]  }
 0x4eb   :  { %v10415_v24 = vadd.f32 %v10414_v20, %v6905_v11  ;;  %v10458_v25 = vadd.f32 %v10457_v21, %v6913_v12  ;;  %v10416_v26 = vpop.f32.mrb[94].mxu0  ;;  %v10459_v27 = vpop.f32.mrb[94].mxu1  ;;  %10991 = vmatpush1.bf16.msra.mxu0 %v15297_v47  ;;  %11034 = vmatpush1.bf16.msra.mxu1 %v15300_v13  ;;  %v15336_v47 = vld [vmem:[#allocation6 + $0x748] ss:$272 sps:$4 sm:$0xff]   ;;  %v15341_v13 = vld [vmem:[#allocation6 + $0x964] ss:$272 sps:$4 sm:$0xff]   ;;  %v6925_v20 = vrot.slane %v16124_v4, %v15992_v2 }
 0x4ec   :  { %v11348_v30 = vmax.f32 %v10413_v18, 0.0  ;;  %v11350_v31 = vmax.f32 %v10456_v19, 0.0  ;;  %v10417_v32 = vadd.f32 %v10416_v26, %v6901_v9  ;;  %v10460_v33 = vadd.f32 %v10459_v27, %v6909_v10  ;;  %v10418_v34 = vpop.f32.mrb[95].mxu0  ;;  %v10461_v35 = vpop.f32.mrb[95].mxu1  ;;  %10992 = vmatprep.subr.bf16.mxu0 %v15305_v14  ;;  %11035 = vmatprep.subr.bf16.mxu1 %v15308_v15  ;;  %v15330_v9 = vld [vmem:[#allocation6 + $0x528] ss:$272 sps:$4 sm:$0xff]  }
 0x4ed   :  { %v11349_v37 = vmax.f32 %v10415_v24, 0.0  ;;  %v11351_v38 = vmax.f32 %v10458_v25, 0.0  ;;  %v10419_v40 = vadd.f32 %v10418_v34, %v6905_v11  ;;  %v10462_v41 = vadd.f32 %v10461_v35, %v6913_v12  ;;  %v15335_v10 = vld [vmem:[#allocation6 + $0x744] ss:$272 sps:$4 sm:$0xff]   ;;  %v15338_v11 = vld [vmem:[#allocation6 + $0x74c] ss:$272 sps:$4 sm:$0xff]  }
 0x4ee   :  { %v11416_v42 = vmax.f32 %v10417_v32, 0.0  ;;  %v11418_v43 = vmax.f32 %v10460_v33, 0.0  ;;  %v15333_v12 = vld [vmem:[#allocation6 + $0x740] ss:$272 sps:$4 sm:$0xff]   ;;  %v15344_v14 = vld [vmem:[#allocation6 + $0x96c] ss:$272 sps:$4 sm:$0xff]   ;;  %v6917_v19 = vrot.slane %v16124_v4, %v15989_v1  ;;  %v6921_v21 = vrot.slane %v16124_v4, %v15995_v5 }
 0x4ef   :  { %v13184_v44 = vpack.c.bf16 %v11349_v37, %v11348_v30  ;;  %v13185_v45 = vpack.c.bf16 %v11351_v38, %v11350_v31  ;;  %v11417_v46 = vmax.f32 %v10419_v40, 0.0  ;;  %v11419_v48 = vmax.f32 %v10462_v41, 0.0  ;;  %10993 = vmatpush1.bf16.msra.mxu0 %v15303_v23  ;;  %11036 = vmatpush1.bf16.msra.mxu1 %v15306_v56  ;;  %v15339_v15 = vld [vmem:[#allocation6 + $0x960] ss:$272 sps:$4 sm:$0xff]   ;;  %v15350_v18 = vld [vmem:[#allocation6 + $0xb8c] ss:$272 sps:$4 sm:$0xff]  }
 0x4f0   :  { %10994 = vmatprep.subr.bf16.mxu0 %v15311_v28  ;;  %11037 = vmatprep.subr.bf16.mxu1 %v15314_v36  ;;  %v6929_v23 = vrot.slane %v16124_v4, %v15998_v6  ;;  %v15345_v24 = vld [vmem:[#allocation6 + $0xb80] ss:$272 sps:$4 sm:$0xff]   ;;  %v15348_v25 = vld [vmem:[#allocation6 + $0xb88] ss:$272 sps:$4 sm:$0xff]   ;;  %v15353_v26 = vld [vmem:[#allocation6 + $0xda4] ss:$272 sps:$4 sm:$0xff]  }
 0x4f1   :  { %11880 = vst [vmem:[%s16339_s5 + $0x60] sm:$0xff] %v13184_v44  ;;  %11881 = vst [vmem:[%s16339_s5 + $0x68] sm:$0xff] %v13185_v45  ;;  %v13218_v52 = vpack.c.bf16 %v11417_v46, %v11416_v42  ;;  %v13219_v55 = vpack.c.bf16 %v11419_v48, %v11418_v43  ;;  %v15356_v27 = vld [vmem:[#allocation6 + $0xdac] ss:$272 sps:$4 sm:$0xff]   ;;  %v15351_v34 = vld [vmem:[#allocation6 + $0xda0] ss:$272 sps:$4 sm:$0xff]  }
 0x4f2   :  { %v15354_v4 = vld [vmem:[#allocation6 + $0xda8] ss:$272 sps:$4 sm:$0xff]   ;;  %v15359_v40 = vld [vmem:[#allocation6 + $0xfc4] ss:$272 sps:$4 sm:$0xff]   ;;  %v15362_v48 = vld [vmem:[#allocation6 + $0xfcc] ss:$272 sps:$4 sm:$0xff]  }
 0x4f3   :  { %11914 = vst [vmem:[%s16339_s5 + $0x170] sm:$0xff] %v13218_v52  ;;  %11915 = vst [vmem:[%s16339_s5 + $0x178] sm:$0xff] %v13219_v55  ;;  %10995 = vmatpush1.bf16.msra.mxu0 %v15309_v49  ;;  %11038 = vmatpush1.bf16.msra.mxu1 %v15312_v50 }
 0x4f4   :  { %11066 = vmatprep.subr.bf16.mxu0 %v15317_v16  ;;  %11109 = vmatprep.subr.bf16.mxu1 %v15320_v51 }
 0x4f6   :  { %11013 = vmatmul.mubr.bf16.vlgmr.msra.gmra.mrb[120].mxu0 %v15918_v29  ;;  %11056 = vmatmul.mubr.bf16.vlgmr.msra.gmra.mrb[120].mxu1 %v15918_v29 }
 0x4f7   :  { %11067 = vmatpush1.bf16.msra.mxu0 %v15315_v59  ;;  %11110 = vmatpush1.bf16.msra.mxu1 %v15318_v60 }
 0x4f8   :  { %11068 = vmatprep.subr.bf16.mxu0 %v15323_v61  ;;  %11111 = vmatprep.subr.bf16.mxu1 %v15326_v62 }
 0x4f9   :  { %11098 = vmatprep.mubr.bf16.mxu0 %v15561_v22  ;;  %11141 = vmatprep.mubr.bf16.mxu1 %v15561_v22 }
 0x4fb   :  { %11069 = vmatpush1.bf16.msra.mxu0 %v15321_v63  ;;  %11112 = vmatpush1.bf16.msra.mxu1 %v15324_v0  ;;  %v15357_v63 = vld [vmem:[#allocation6 + $0xfc0] ss:$272 sps:$4 sm:$0xff]   ;;  %v15360_v0 = vld [vmem:[#allocation6 + $0xfc8] ss:$272 sps:$4 sm:$0xff]  }
 0x4fc   :  { %11070 = vmatprep.subr.bf16.mxu0 %v15329_v3  ;;  %11113 = vmatprep.subr.bf16.mxu1 %v15332_v7  ;;  %v15365_v3 = vld [vmem:[#allocation6 + $0xf4] ss:$272 sps:$4 sm:$0xff]   ;;  %v15368_v7 = vld [vmem:[#allocation6 + $0xfc] ss:$272 sps:$4 sm:$0xff]  }
 0x4ff   :  { %11071 = vmatpush1.bf16.msra.mxu0 %v15327_v8  ;;  %11114 = vmatpush1.bf16.msra.mxu1 %v15330_v9 }
 0x500   :  { %11072 = vmatprep.subr.bf16.mxu0 %v15335_v10  ;;  %11115 = vmatprep.subr.bf16.mxu1 %v15338_v11  ;;  %v15363_v10 = vld [vmem:[#allocation6 + $0xf0] ss:$272 sps:$4 sm:$0xff]   ;;  %v15366_v11 = vld [vmem:[#allocation6 + $0xf8] ss:$272 sps:$4 sm:$0xff]  }
 0x503   :  { %11073 = vmatpush1.bf16.msra.mxu0 %v15333_v12  ;;  %11116 = vmatpush1.bf16.msra.mxu1 %v15336_v47  ;;  %v15371_v12 = vld [vmem:[#allocation6 + $0x314] ss:$272 sps:$4 sm:$0xff]   ;;  %v15374_v47 = vld [vmem:[#allocation6 + $0x31c] ss:$272 sps:$4 sm:$0xff]  }
 0x504   :  { %11074 = vmatprep.subr.bf16.mxu0 %v15341_v13  ;;  %11117 = vmatprep.subr.bf16.mxu1 %v15344_v14  ;;  %v15369_v13 = vld [vmem:[#allocation6 + $0x310] ss:$272 sps:$4 sm:$0xff]   ;;  %v15372_v14 = vld [vmem:[#allocation6 + $0x318] ss:$272 sps:$4 sm:$0xff]  }
 0x507   :  { %11075 = vmatpush1.bf16.msra.mxu0 %v15339_v15  ;;  %11118 = vmatpush1.bf16.msra.mxu1 %v15342_v39  ;;  %v15377_v15 = vld [vmem:[#allocation6 + $0x534] ss:$272 sps:$4 sm:$0xff]   ;;  %v15380_v39 = vld [vmem:[#allocation6 + $0x53c] ss:$272 sps:$4 sm:$0xff]  }
 0x508   :  { %11076 = vmatprep.subr.bf16.mxu0 %v15347_v17  ;;  %11119 = vmatprep.subr.bf16.mxu1 %v15350_v18  ;;  %v15375_v17 = vld [vmem:[#allocation6 + $0x530] ss:$272 sps:$4 sm:$0xff]   ;;  %v15378_v18 = vld [vmem:[#allocation6 + $0x538] ss:$272 sps:$4 sm:$0xff]  }
 0x509   :  { %v10498_v56 = vpop.f32.mrb[96].mxu0  ;;  %v10541_v28 = vpop.f32.mrb[96].mxu1 }
 0x50a   :  { %v10499_v30 = vadd.f32 %v10498_v56, %v6917_v19  ;;  %v10542_v31 = vadd.f32 %v10541_v28, %v6925_v20  ;;  %v10500_v32 = vpop.f32.mrb[97].mxu0  ;;  %v10543_v33 = vpop.f32.mrb[97].mxu1  ;;  %v16174_v56 = vld [vmem:[#allocation7 + $0x20] sm:$0xff] }
 0x50b   :  { %v10501_v35 = vadd.f32 %v10500_v32, %v6921_v21  ;;  %v10544_v36 = vadd.f32 %v10543_v33, %v6929_v23  ;;  %v10502_v37 = vpop.f32.mrb[98].mxu0  ;;  %v10545_v38 = vpop.f32.mrb[98].mxu1  ;;  %11077 = vmatpush1.bf16.msra.mxu0 %v15345_v24  ;;  %11120 = vmatpush1.bf16.msra.mxu1 %v15348_v25  ;;  %v15389_v24 = vld [vmem:[#allocation6 + $0x974] ss:$272 sps:$4 sm:$0xff]   ;;  %v15392_v25 = vld [vmem:[#allocation6 + $0x97c] ss:$272 sps:$4 sm:$0xff]   ;;  %v6941_v32 = vrot.slane %v16174_v56, %v15954_v54 }
 0x50c   :  { %v11352_v41 = vmax.f32 %v10499_v30, 0.0  ;;  %v11354_v42 = vmax.f32 %v10542_v31, 0.0  ;;  %v10503_v43 = vadd.f32 %v10502_v37, %v6917_v19  ;;  %v10546_v44 = vadd.f32 %v10545_v38, %v6925_v20  ;;  %v10504_v45 = vpop.f32.mrb[99].mxu0  ;;  %v10547_v46 = vpop.f32.mrb[99].mxu1  ;;  %11078 = vmatprep.subr.bf16.mxu0 %v15353_v26  ;;  %11121 = vmatprep.subr.bf16.mxu1 %v15356_v27  ;;  %v15383_v19 = vld [vmem:[#allocation6 + $0x754] ss:$272 sps:$4 sm:$0xff]  }
 0x50d   :  { %v11353_v49 = vmax.f32 %v10501_v35, 0.0  ;;  %v11355_v50 = vmax.f32 %v10544_v36, 0.0  ;;  %v10505_v16 = vadd.f32 %v10504_v45, %v6921_v21  ;;  %v10548_v51 = vadd.f32 %v10547_v46, %v6929_v23  ;;  %v15386_v20 = vld [vmem:[#allocation6 + $0x75c] ss:$272 sps:$4 sm:$0xff]   ;;  %v15381_v21 = vld [vmem:[#allocation6 + $0x750] ss:$272 sps:$4 sm:$0xff]  }
 0x50e   :  { %v11420_v52 = vmax.f32 %v10503_v43, 0.0  ;;  %v11422_v55 = vmax.f32 %v10546_v44, 0.0  ;;  %v15384_v23 = vld [vmem:[#allocation6 + $0x758] ss:$272 sps:$4 sm:$0xff]   ;;  %v15387_v26 = vld [vmem:[#allocation6 + $0x970] ss:$272 sps:$4 sm:$0xff]   ;;  %v6933_v31 = vrot.slane %v16174_v56, %v15951_v53  ;;  %v6937_v33 = vrot.slane %v16174_v56, %v15959_v57 }
 0x50f   :  { %v13186_v59 = vpack.c.bf16 %v11353_v49, %v11352_v41  ;;  %v13187_v60 = vpack.c.bf16 %v11355_v50, %v11354_v42  ;;  %v11421_v61 = vmax.f32 %v10505_v16, 0.0  ;;  %v11423_v62 = vmax.f32 %v10548_v51, 0.0  ;;  %11079 = vmatpush1.bf16.msra.mxu0 %v15351_v34  ;;  %11122 = vmatpush1.bf16.msra.mxu1 %v15354_v4  ;;  %v15390_v27 = vld [vmem:[#allocation6 + $0x978] ss:$272 sps:$4 sm:$0xff]   ;;  %v15395_v28 = vld [vmem:[#allocation6 + $0xb94] ss:$272 sps:$4 sm:$0xff]  }
 0x510   :  { %11080 = vmatprep.subr.bf16.mxu0 %v15359_v40  ;;  %11123 = vmatprep.subr.bf16.mxu1 %v15362_v48  ;;  %v15398_v30 = vld [vmem:[#allocation6 + $0xb9c] ss:$272 sps:$4 sm:$0xff]   ;;  %v6945_v34 = vrot.slane %v16174_v56, %v15962_v58  ;;  %v15393_v35 = vld [vmem:[#allocation6 + $0xb90] ss:$272 sps:$4 sm:$0xff]   ;;  %v15396_v36 = vld [vmem:[#allocation6 + $0xb98] ss:$272 sps:$4 sm:$0xff]  }
 0x511   :  { %11882 = vst [vmem:[%s16339_s5 + $0x70] sm:$0xff] %v13186_v59  ;;  %11883 = vst [vmem:[%s16339_s5 + $0x78] sm:$0xff] %v13187_v60  ;;  %v13220_v8 = vpack.c.bf16 %v11421_v61, %v11420_v52  ;;  %v13221_v9 = vpack.c.bf16 %v11423_v62, %v11422_v55  ;;  %v15401_v37 = vld [vmem:[#allocation6 + $0xdb4] ss:$272 sps:$4 sm:$0xff]   ;;  %v15404_v38 = vld [vmem:[#allocation6 + $0xdbc] ss:$272 sps:$4 sm:$0xff]  }
 0x512   :  { %v15399_v45 = vld [vmem:[#allocation6 + $0xdb0] ss:$272 sps:$4 sm:$0xff]   ;;  %v15402_v16 = vld [vmem:[#allocation6 + $0xdb8] ss:$272 sps:$4 sm:$0xff]   ;;  %v15407_v51 = vld [vmem:[#allocation6 + $0xfd4] ss:$272 sps:$4 sm:$0xff]  }
 0x513   :  { %11916 = vst [vmem:[%s16339_s5 + $0x180] sm:$0xff] %v13220_v8  ;;  %11917 = vst [vmem:[%s16339_s5 + $0x188] sm:$0xff] %v13221_v9  ;;  %11081 = vmatpush1.bf16.msra.mxu0 %v15357_v63  ;;  %11124 = vmatpush1.bf16.msra.mxu1 %v15360_v0  ;;  %v15410_v63 = vld [vmem:[#allocation6 + $0xfdc] ss:$272 sps:$4 sm:$0xff]  }
 0x514   :  { %11152 = vmatprep.subr.bf16.mxu0 %v15365_v3  ;;  %11195 = vmatprep.subr.bf16.mxu1 %v15368_v7 }
 0x516   :  { %11099 = vmatmul.mubr.bf16.vlgmr.msra.gmra.mrb[124].mxu0 %v15918_v29  ;;  %11142 = vmatmul.mubr.bf16.vlgmr.msra.gmra.mrb[124].mxu1 %v15918_v29 }
 0x517   :  { %11153 = vmatpush1.bf16.msra.mxu0 %v15363_v10  ;;  %11196 = vmatpush1.bf16.msra.mxu1 %v15366_v11 }
 0x518   :  { %11154 = vmatprep.subr.bf16.mxu0 %v15371_v12  ;;  %11197 = vmatprep.subr.bf16.mxu1 %v15374_v47 }
 0x519   :  { %11184 = vmatprep.mubr.bf16.mxu0 %v15561_v22  ;;  %11227 = vmatprep.mubr.bf16.mxu1 %v15561_v22 }
 0x51b   :  { %11155 = vmatpush1.bf16.msra.mxu0 %v15369_v13  ;;  %11198 = vmatpush1.bf16.msra.mxu1 %v15372_v14  ;;  %v15405_v14 = vld [vmem:[#allocation6 + $0xfd0] ss:$272 sps:$4 sm:$0xff]  }
 0x51c   :  { %11156 = vmatprep.subr.bf16.mxu0 %v15377_v15  ;;  %11199 = vmatprep.subr.bf16.mxu1 %v15380_v39  ;;  %v15408_v15 = vld [vmem:[#allocation6 + $0xfd8] ss:$272 sps:$4 sm:$0xff]   ;;  %v15413_v39 = vld [vmem:[#allocation6 + $0x104] ss:$272 sps:$4 sm:$0xff]  }
 0x51f   :  { %11157 = vmatpush1.bf16.msra.mxu0 %v15375_v17  ;;  %11200 = vmatpush1.bf16.msra.mxu1 %v15378_v18  ;;  %v15416_v17 = vld [vmem:[#allocation6 + $0x10c] ss:$272 sps:$4 sm:$0xff]  }
 0x520   :  { %11158 = vmatprep.subr.bf16.mxu0 %v15383_v19  ;;  %11201 = vmatprep.subr.bf16.mxu1 %v15386_v20  ;;  %v15411_v20 = vld [vmem:[#allocation6 + $0x100] ss:$272 sps:$4 sm:$0xff]  }
 0x523   :  { %11159 = vmatpush1.bf16.msra.mxu0 %v15381_v21  ;;  %11202 = vmatpush1.bf16.msra.mxu1 %v15384_v23  ;;  %v15414_v21 = vld [vmem:[#allocation6 + $0x108] ss:$272 sps:$4 sm:$0xff]   ;;  %v15419_v23 = vld [vmem:[#allocation6 + $0x324] ss:$272 sps:$4 sm:$0xff]  }
 0x524   :  { %11160 = vmatprep.subr.bf16.mxu0 %v15389_v24  ;;  %11203 = vmatprep.subr.bf16.mxu1 %v15392_v25  ;;  %v15422_v24 = vld [vmem:[#allocation6 + $0x32c] ss:$272 sps:$4 sm:$0xff]   ;;  %v15417_v25 = vld [vmem:[#allocation6 + $0x320] ss:$272 sps:$4 sm:$0xff]  }
 0x527   :  { %11161 = vmatpush1.bf16.msra.mxu0 %v15387_v26  ;;  %11204 = vmatpush1.bf16.msra.mxu1 %v15390_v27  ;;  %v15420_v26 = vld [vmem:[#allocation6 + $0x328] ss:$272 sps:$4 sm:$0xff]   ;;  %v15425_v27 = vld [vmem:[#allocation6 + $0x544] ss:$272 sps:$4 sm:$0xff]  }
 0x528   :  { %11162 = vmatprep.subr.bf16.mxu0 %v15395_v28  ;;  %11205 = vmatprep.subr.bf16.mxu1 %v15398_v30  ;;  %v15428_v28 = vld [vmem:[#allocation6 + $0x54c] ss:$272 sps:$4 sm:$0xff]   ;;  %v15423_v30 = vld [vmem:[#allocation6 + $0x540] ss:$272 sps:$4 sm:$0xff]  }
 0x529   :  { %v10584_v4 = vpop.f32.mrb[100].mxu0  ;;  %v10627_v40 = vpop.f32.mrb[100].mxu1 }
 0x52a   :  { %v10585_v41 = vadd.f32 %v10584_v4, %v6933_v31  ;;  %v10628_v42 = vadd.f32 %v10627_v40, %v6941_v32  ;;  %v10586_v43 = vpop.f32.mrb[101].mxu0  ;;  %v10629_v44 = vpop.f32.mrb[101].mxu1  ;;  %v15443_v4 = vld [vmem:[#allocation6 + $0xba4] ss:$272 sps:$4 sm:$0xff]   ;;  %v15446_v40 = vld [vmem:[#allocation6 + $0xbac] ss:$272 sps:$4 sm:$0xff]  }
 0x52b   :  { %v10587_v46 = vadd.f32 %v10586_v43, %v6937_v33  ;;  %v10630_v48 = vadd.f32 %v10629_v44, %v6945_v34  ;;  %v10588_v49 = vpop.f32.mrb[102].mxu0  ;;  %v10631_v50 = vpop.f32.mrb[102].mxu1  ;;  %11163 = vmatpush1.bf16.msra.mxu0 %v15393_v35  ;;  %11206 = vmatpush1.bf16.msra.mxu1 %v15396_v36  ;;  %v15432_v35 = vld [vmem:[#allocation6 + $0x768] ss:$272 sps:$4 sm:$0xff]   ;;  %v15437_v36 = vld [vmem:[#allocation6 + $0x984] ss:$272 sps:$4 sm:$0xff]   ;;  %v6953_v43 = vrot.slane %v16174_v56, %v15995_v5 }
 0x52c   :  { %v11356_v52 = vmax.f32 %v10585_v41, 0.0  ;;  %v11358_v55 = vmax.f32 %v10628_v42, 0.0  ;;  %v10589_v59 = vadd.f32 %v10588_v49, %v6933_v31  ;;  %v10632_v60 = vadd.f32 %v10631_v50, %v6941_v32  ;;  %v10590_v61 = vpop.f32.mrb[103].mxu0  ;;  %v10633_v62 = vpop.f32.mrb[103].mxu1  ;;  %11164 = vmatprep.subr.bf16.mxu0 %v15401_v37  ;;  %11207 = vmatprep.subr.bf16.mxu1 %v15404_v38  ;;  %v15426_v31 = vld [vmem:[#allocation6 + $0x548] ss:$272 sps:$4 sm:$0xff]  }
 0x52d   :  { %v11357_v0 = vmax.f32 %v10587_v46, 0.0  ;;  %v11359_v3 = vmax.f32 %v10630_v48, 0.0  ;;  %v10591_v7 = vadd.f32 %v10590_v61, %v6937_v33  ;;  %v10634_v8 = vadd.f32 %v10633_v62, %v6945_v34  ;;  %v15431_v32 = vld [vmem:[#allocation6 + $0x764] ss:$272 sps:$4 sm:$0xff]   ;;  %v15434_v33 = vld [vmem:[#allocation6 + $0x76c] ss:$272 sps:$4 sm:$0xff]  }
 0x52e   :  { %v11424_v9 = vmax.f32 %v10589_v59, 0.0  ;;  %v11426_v10 = vmax.f32 %v10632_v60, 0.0  ;;  %v15429_v34 = vld [vmem:[#allocation6 + $0x760] ss:$272 sps:$4 sm:$0xff]   ;;  %v15440_v37 = vld [vmem:[#allocation6 + $0x98c] ss:$272 sps:$4 sm:$0xff]   ;;  %v6949_v41 = vrot.slane %v16174_v56, %v15989_v1  ;;  %v6957_v42 = vrot.slane %v16174_v56, %v15992_v2 }
 0x52f   :  { %v13188_v11 = vpack.c.bf16 %v11357_v0, %v11356_v52  ;;  %v13189_v12 = vpack.c.bf16 %v11359_v3, %v11358_v55  ;;  %v11425_v47 = vmax.f32 %v10591_v7, 0.0  ;;  %v11427_v13 = vmax.f32 %v10634_v8, 0.0  ;;  %11165 = vmatpush1.bf16.msra.mxu0 %v15399_v45  ;;  %11208 = vmatpush1.bf16.msra.mxu1 %v15402_v16  ;;  %v15435_v38 = vld [vmem:[#allocation6 + $0x980] ss:$272 sps:$4 sm:$0xff]   ;;  %v15444_v46 = vld [vmem:[#allocation6 + $0xba8] ss:$272 sps:$4 sm:$0xff]  }
 0x530   :  { %11166 = vmatprep.subr.bf16.mxu0 %v15407_v51  ;;  %11209 = vmatprep.subr.bf16.mxu1 %v15410_v63  ;;  %v6961_v44 = vrot.slane %v16174_v56, %v15998_v6  ;;  %v15441_v45 = vld [vmem:[#allocation6 + $0xba0] ss:$272 sps:$4 sm:$0xff]   ;;  %v15449_v48 = vld [vmem:[#allocation6 + $0xdc4] ss:$272 sps:$4 sm:$0xff]   ;;  %v15452_v49 = vld [vmem:[#allocation6 + $0xdcc] ss:$272 sps:$4 sm:$0xff]  }
 0x531   :  { %11884 = vst [vmem:[%s16339_s5 + $0x80] sm:$0xff] %v13188_v11  ;;  %11885 = vst [vmem:[%s16339_s5 + $0x88] sm:$0xff] %v13189_v12  ;;  %v13222_v18 = vpack.c.bf16 %v11425_v47, %v11424_v9  ;;  %v13223_v19 = vpack.c.bf16 %v11427_v13, %v11426_v10  ;;  %v15447_v60 = vld [vmem:[#allocation6 + $0xdc0] ss:$272 sps:$4 sm:$0xff]   ;;  %v15450_v56 = vld [vmem:[#allocation6 + $0xdc8] ss:$272 sps:$4 sm:$0xff]  }
 0x532   :  { %v15455_v3 = vld [vmem:[#allocation6 + $0xfe4] ss:$272 sps:$4 sm:$0xff]   ;;  %v15458_v47 = vld [vmem:[#allocation6 + $0xfec] ss:$272 sps:$4 sm:$0xff]  }
 0x533   :  { %11918 = vst [vmem:[%s16339_s5 + $0x190] sm:$0xff] %v13222_v18  ;;  %11919 = vst [vmem:[%s16339_s5 + $0x198] sm:$0xff] %v13223_v19  ;;  %11167 = vmatpush1.bf16.msra.mxu0 %v15405_v14  ;;  %11210 = vmatpush1.bf16.msra.mxu1 %v15408_v15 }
 0x534   :  { %11238 = vmatprep.subr.bf16.mxu0 %v15413_v39  ;;  %11281 = vmatprep.subr.bf16.mxu1 %v15416_v17 }
 0x536   :  { %11185 = vmatmul.mubr.bf16.vlgmr.msra.gmra.mrb[128].mxu0 %v15918_v29  ;;  %11228 = vmatmul.mubr.bf16.vlgmr.msra.gmra.mrb[128].mxu1 %v15918_v29 }
 0x537   :  { %11239 = vmatpush1.bf16.msra.mxu0 %v15411_v20  ;;  %11282 = vmatpush1.bf16.msra.mxu1 %v15414_v21 }
 0x538   :  { %11240 = vmatprep.subr.bf16.mxu0 %v15419_v23  ;;  %11283 = vmatprep.subr.bf16.mxu1 %v15422_v24  ;;  %v15453_v24 = vld [vmem:[#allocation6 + $0xfe0] ss:$272 sps:$4 sm:$0xff]  }
 0x539   :  { %11270 = vmatprep.mubr.bf16.mxu0 %v15561_v22  ;;  %11313 = vmatprep.mubr.bf16.mxu1 %v15561_v22  ;;  %v15438_v22 = vld [vmem:[#allocation6 + $0x988] ss:$272 sps:$4 sm:$0xff]  }
 0x53b   :  { %11241 = vmatpush1.bf16.msra.mxu0 %v15417_v25  ;;  %11284 = vmatpush1.bf16.msra.mxu1 %v15420_v26  ;;  %v15456_v25 = vld [vmem:[#allocation6 + $0xfe8] ss:$272 sps:$4 sm:$0xff]  }
 0x53c   :  { %11242 = vmatprep.subr.bf16.mxu0 %v15425_v27  ;;  %11285 = vmatprep.subr.bf16.mxu1 %v15428_v28  ;;  %v6789_v28 = vld [vmem:[#allocation7 + $0x28] sm:$0xff] }
 0x53f   :  { %11243 = vmatpush1.bf16.msra.mxu0 %v15423_v30  ;;  %11286 = vmatpush1.bf16.msra.mxu1 %v15426_v31  ;;  %v6965_v30 = vrot.slane %v6789_v28, %v15951_v53  ;;  %v6973_v31 = vrot.slane %v6789_v28, %v15954_v54 }
 0x540   :  { %11244 = vmatprep.subr.bf16.mxu0 %v15431_v32  ;;  %11287 = vmatprep.subr.bf16.mxu1 %v15434_v33  ;;  %v6969_v32 = vrot.slane %v6789_v28, %v15959_v57  ;;  %v6977_v33 = vrot.slane %v6789_v28, %v15962_v58 }
 0x543   :  { %11245 = vmatpush1.bf16.msra.mxu0 %v15429_v34  ;;  %11288 = vmatpush1.bf16.msra.mxu1 %v15432_v35 }
 0x544   :  { %11246 = vmatprep.subr.bf16.mxu0 %v15437_v36  ;;  %11289 = vmatprep.subr.bf16.mxu1 %v15440_v37 }
 0x547   :  { %11247 = vmatpush1.bf16.msra.mxu0 %v15435_v38  ;;  %11290 = vmatpush1.bf16.msra.mxu1 %v15438_v22 }
 0x548   :  { %11248 = vmatprep.subr.bf16.mxu0 %v15443_v4  ;;  %11291 = vmatprep.subr.bf16.mxu1 %v15446_v40 }
 0x549   :  { %v10670_v50 = vpop.f32.mrb[104].mxu0  ;;  %v10713_v16 = vpop.f32.mrb[104].mxu1 }
 0x54a   :  { %v10671_v51 = vadd.f32 %v10670_v50, %v6949_v41  ;;  %v10714_v52 = vadd.f32 %v10713_v16, %v6957_v42  ;;  %v10672_v55 = vpop.f32.mrb[105].mxu0  ;;  %v10715_v59 = vpop.f32.mrb[105].mxu1 }
 0x54b   :  { %v10673_v61 = vadd.f32 %v10672_v55, %v6953_v43  ;;  %v10716_v62 = vadd.f32 %v10715_v59, %v6961_v44  ;;  %v10674_v63 = vpop.f32.mrb[106].mxu0  ;;  %v10717_v0 = vpop.f32.mrb[106].mxu1  ;;  %11249 = vmatpush1.bf16.msra.mxu0 %v15441_v45  ;;  %11292 = vmatpush1.bf16.msra.mxu1 %v15444_v46 }
 0x54c   :  { %v11360_v7 = vmax.f32 %v10671_v51, 0.0  ;;  %v11362_v8 = vmax.f32 %v10714_v52, 0.0  ;;  %v10675_v9 = vadd.f32 %v10674_v63, %v6949_v41  ;;  %v10718_v10 = vadd.f32 %v10717_v0, %v6957_v42  ;;  %v10676_v11 = vpop.f32.mrb[107].mxu0  ;;  %v10719_v12 = vpop.f32.mrb[107].mxu1  ;;  %11250 = vmatprep.subr.bf16.mxu0 %v15449_v48  ;;  %11293 = vmatprep.subr.bf16.mxu1 %v15452_v49 }
 0x54d   :  { %v11361_v13 = vmax.f32 %v10673_v61, 0.0  ;;  %v11363_v14 = vmax.f32 %v10716_v62, 0.0  ;;  %v10677_v15 = vadd.f32 %v10676_v11, %v6953_v43  ;;  %v10720_v39 = vadd.f32 %v10719_v12, %v6961_v44 }
 0x54e   :  { %v11428_v17 = vmax.f32 %v10675_v9, 0.0  ;;  %v11430_v18 = vmax.f32 %v10718_v10, 0.0 }
 0x54f   :  { %v13190_v19 = vpack.c.bf16 %v11361_v13, %v11360_v7  ;;  %v13191_v20 = vpack.c.bf16 %v11363_v14, %v11362_v8  ;;  %v11429_v21 = vmax.f32 %v10677_v15, 0.0  ;;  %v11431_v23 = vmax.f32 %v10720_v39, 0.0  ;;  %11251 = vmatpush1.bf16.msra.mxu0 %v15447_v60  ;;  %11294 = vmatpush1.bf16.msra.mxu1 %v15450_v56 }
 0x550   :  { %11252 = vmatprep.subr.bf16.mxu0 %v15455_v3  ;;  %11295 = vmatprep.subr.bf16.mxu1 %v15458_v47  ;;  %v6981_v56 = vrot.slane %v6789_v28, %v15989_v1  ;;  %v6989_v3 = vrot.slane %v6789_v28, %v15992_v2  ;;  %v6985_v7 = vrot.slane %v6789_v28, %v15995_v5 }
 0x551   :  { %11886 = vst [vmem:[%s16339_s5 + $0x90] sm:$0xff] %v13190_v19  ;;  %11887 = vst [vmem:[%s16339_s5 + $0x98] sm:$0xff] %v13191_v20  ;;  %v13224_v26 = vpack.c.bf16 %v11429_v21, %v11428_v17  ;;  %v13225_v27 = vpack.c.bf16 %v11431_v23, %v11430_v18  ;;  %v6993_v8 = vrot.slane %v6789_v28, %v15998_v6 }
 0x553   :  { %11920 = vst [vmem:[%s16339_s5 + $0x1a0] sm:$0xff] %v13224_v26  ;;  %11921 = vst [vmem:[%s16339_s5 + $0x1a8] sm:$0xff] %v13225_v27  ;;  %11253 = vmatpush1.bf16.msra.mxu0 %v15453_v24  ;;  %11296 = vmatpush1.bf16.msra.mxu1 %v15456_v25 }
 0x556   :  { %11271 = vmatmul.mubr.bf16.vlgmr.msra.gmra.mrb[132].mxu0 %v15918_v29  ;;  %11314 = vmatmul.mubr.bf16.vlgmr.msra.gmra.mrb[132].mxu1 %v15918_v29 }
 0x569   :  { %v10756_v34 = vpop.f32.mrb[108].mxu0  ;;  %v10799_v35 = vpop.f32.mrb[108].mxu1 }
 0x56a   :  { %v10757_v36 = vadd.f32 %v10756_v34, %v6965_v30  ;;  %v10800_v37 = vadd.f32 %v10799_v35, %v6973_v31  ;;  %v10758_v38 = vpop.f32.mrb[109].mxu0  ;;  %v10801_v22 = vpop.f32.mrb[109].mxu1 }
 0x56b   :  { %v10759_v4 = vadd.f32 %v10758_v38, %v6969_v32  ;;  %v10802_v40 = vadd.f32 %v10801_v22, %v6977_v33  ;;  %v10760_v41 = vpop.f32.mrb[110].mxu0  ;;  %v10803_v42 = vpop.f32.mrb[110].mxu1  ;;  %v6790_v38 = vld [vmem:[#allocation7 + $0x30] sm:$0xff] }
 0x56c   :  { %v11364_v29 = vmax.f32 %v10757_v36, 0.0  ;;  %v11366_v43 = vmax.f32 %v10800_v37, 0.0  ;;  %v10761_v44 = vadd.f32 %v10760_v41, %v6965_v30  ;;  %v10804_v45 = vadd.f32 %v10803_v42, %v6973_v31  ;;  %v10762_v46 = vpop.f32.mrb[111].mxu0  ;;  %v10805_v48 = vpop.f32.mrb[111].mxu1 }
 0x56d   :  { %v11365_v49 = vmax.f32 %v10759_v4, 0.0  ;;  %v11367_v50 = vmax.f32 %v10802_v40, 0.0  ;;  %v10763_v16 = vadd.f32 %v10762_v46, %v6969_v32  ;;  %v10806_v51 = vadd.f32 %v10805_v48, %v6977_v33 }
 0x56e   :  { %v11432_v52 = vmax.f32 %v10761_v44, 0.0  ;;  %v11434_v55 = vmax.f32 %v10804_v45, 0.0  ;;  %v6997_v22 = vrot.slane %v6790_v38, %v15951_v53  ;;  %v7005_v4 = vrot.slane %v6790_v38, %v15954_v54 }
 0x56f   :  { %v13192_v59 = vpack.c.bf16 %v11365_v49, %v11364_v29  ;;  %v13193_v60 = vpack.c.bf16 %v11367_v50, %v11366_v43  ;;  %v11433_v61 = vmax.f32 %v10763_v16, 0.0  ;;  %v11435_v62 = vmax.f32 %v10806_v51, 0.0 }
 0x570   :  { %v7001_v40 = vrot.slane %v6790_v38, %v15959_v57  ;;  %v7009_v41 = vrot.slane %v6790_v38, %v15962_v58 }
 0x571   :  { %11888 = vst [vmem:[%s16339_s5 + $0xa0] sm:$0xff] %v13192_v59  ;;  %11889 = vst [vmem:[%s16339_s5 + $0xa8] sm:$0xff] %v13193_v60  ;;  %v13226_v63 = vpack.c.bf16 %v11433_v61, %v11432_v52  ;;  %v13227_v0 = vpack.c.bf16 %v11435_v62, %v11434_v55 }
 0x573   :  { %11922 = vst [vmem:[%s16339_s5 + $0x1b0] sm:$0xff] %v13226_v63  ;;  %11923 = vst [vmem:[%s16339_s5 + $0x1b8] sm:$0xff] %v13227_v0 }
 0x589   :  { %v10842_v9 = vpop.f32.mrb[112].mxu0  ;;  %v10885_v10 = vpop.f32.mrb[112].mxu1 }
 0x58a   :  { %v10843_v11 = vadd.f32 %v10842_v9, %v6981_v56  ;;  %v10886_v12 = vadd.f32 %v10885_v10, %v6989_v3  ;;  %v10844_v47 = vpop.f32.mrb[113].mxu0  ;;  %v10887_v13 = vpop.f32.mrb[113].mxu1 }
 0x58b   :  { %v10845_v14 = vadd.f32 %v10844_v47, %v6985_v7  ;;  %v10888_v15 = vadd.f32 %v10887_v13, %v6993_v8  ;;  %v10846_v39 = vpop.f32.mrb[114].mxu0  ;;  %v10889_v17 = vpop.f32.mrb[114].mxu1  ;;  %v7013_v13 = vrot.slane %v6790_v38, %v15989_v1 }
 0x58c   :  { %v11368_v18 = vmax.f32 %v10843_v11, 0.0  ;;  %v11370_v19 = vmax.f32 %v10886_v12, 0.0  ;;  %v10847_v20 = vadd.f32 %v10846_v39, %v6981_v56  ;;  %v10890_v21 = vadd.f32 %v10889_v17, %v6989_v3  ;;  %v10848_v23 = vpop.f32.mrb[115].mxu0  ;;  %v10891_v24 = vpop.f32.mrb[115].mxu1 }
 0x58d   :  { %v11369_v25 = vmax.f32 %v10845_v14, 0.0  ;;  %v11371_v26 = vmax.f32 %v10888_v15, 0.0  ;;  %v10849_v27 = vadd.f32 %v10848_v23, %v6985_v7  ;;  %v10892_v28 = vadd.f32 %v10891_v24, %v6993_v8 }
 0x58e   :  { %v11436_v30 = vmax.f32 %v10847_v20, 0.0  ;;  %v11438_v31 = vmax.f32 %v10890_v21, 0.0  ;;  %v7021_v14 = vrot.slane %v6790_v38, %v15992_v2  ;;  %v7017_v15 = vrot.slane %v6790_v38, %v15995_v5 }
 0x58f   :  { %v13194_v32 = vpack.c.bf16 %v11369_v25, %v11368_v18  ;;  %v13195_v33 = vpack.c.bf16 %v11371_v26, %v11370_v19  ;;  %v11437_v34 = vmax.f32 %v10849_v27, 0.0  ;;  %v11439_v35 = vmax.f32 %v10892_v28, 0.0 }
 0x590   :  { %v7025_v39 = vrot.slane %v6790_v38, %v15998_v6 }
 0x591   :  { %11890 = vst [vmem:[%s16339_s5 + $0xb0] sm:$0xff] %v13194_v32  ;;  %11891 = vst [vmem:[%s16339_s5 + $0xb8] sm:$0xff] %v13195_v33  ;;  %v13228_v36 = vpack.c.bf16 %v11437_v34, %v11436_v30  ;;  %v13229_v37 = vpack.c.bf16 %v11439_v35, %v11438_v31 }
 0x593   :  { %11924 = vst [vmem:[%s16339_s5 + $0x1c0] sm:$0xff] %v13228_v36  ;;  %11925 = vst [vmem:[%s16339_s5 + $0x1c8] sm:$0xff] %v13229_v37 }
 0x5a9   :  { %v10928_v42 = vpop.f32.mrb[116].mxu0  ;;  %v10971_v29 = vpop.f32.mrb[116].mxu1 }
 0x5aa   :  { %v10929_v43 = vadd.f32 %v10928_v42, %v6997_v22  ;;  %v10972_v44 = vadd.f32 %v10971_v29, %v7005_v4  ;;  %v10930_v45 = vpop.f32.mrb[117].mxu0  ;;  %v10973_v46 = vpop.f32.mrb[117].mxu1 }
 0x5ab   :  { %v10931_v48 = vadd.f32 %v10930_v45, %v7001_v40  ;;  %v10974_v49 = vadd.f32 %v10973_v46, %v7009_v41  ;;  %v10932_v50 = vpop.f32.mrb[118].mxu0  ;;  %v10975_v16 = vpop.f32.mrb[118].mxu1  ;;  %v6791_v45 = vld [vmem:[#allocation7 + $0x38] sm:$0xff] }
 0x5ac   :  { %v11372_v51 = vmax.f32 %v10929_v43, 0.0  ;;  %v11374_v52 = vmax.f32 %v10972_v44, 0.0  ;;  %v10933_v55 = vadd.f32 %v10932_v50, %v6997_v22  ;;  %v10976_v59 = vadd.f32 %v10975_v16, %v7005_v4  ;;  %v10934_v60 = vpop.f32.mrb[119].mxu0  ;;  %v10977_v61 = vpop.f32.mrb[119].mxu1 }
 0x5ad   :  { %v11373_v62 = vmax.f32 %v10931_v48, 0.0  ;;  %v11375_v63 = vmax.f32 %v10974_v49, 0.0  ;;  %v10935_v0 = vadd.f32 %v10934_v60, %v7001_v40  ;;  %v10978_v56 = vadd.f32 %v10977_v61, %v7009_v41 }
 0x5ae   :  { %v11440_v3 = vmax.f32 %v10933_v55, 0.0  ;;  %v11442_v7 = vmax.f32 %v10976_v59, 0.0  ;;  %v7029_v46 = vrot.slane %v6791_v45, %v15951_v53  ;;  %v7037_v48 = vrot.slane %v6791_v45, %v15954_v54 }
 0x5af   :  { %v13196_v8 = vpack.c.bf16 %v11373_v62, %v11372_v51  ;;  %v13197_v9 = vpack.c.bf16 %v11375_v63, %v11374_v52  ;;  %v11441_v10 = vmax.f32 %v10935_v0, 0.0  ;;  %v11443_v11 = vmax.f32 %v10978_v56, 0.0 }
 0x5b0   :  { %v7033_v49 = vrot.slane %v6791_v45, %v15959_v57  ;;  %v7041_v50 = vrot.slane %v6791_v45, %v15962_v58 }
 0x5b1   :  { %11892 = vst [vmem:[%s16339_s5 + $0xc0] sm:$0xff] %v13196_v8  ;;  %11893 = vst [vmem:[%s16339_s5 + $0xc8] sm:$0xff] %v13197_v9  ;;  %v13230_v12 = vpack.c.bf16 %v11441_v10, %v11440_v3  ;;  %v13231_v47 = vpack.c.bf16 %v11443_v11, %v11442_v7 }
 0x5b3   :  { %11926 = vst [vmem:[%s16339_s5 + $0x1d0] sm:$0xff] %v13230_v12  ;;  %11927 = vst [vmem:[%s16339_s5 + $0x1d8] sm:$0xff] %v13231_v47 }
 0x5c9   :  { %v11014_v17 = vpop.f32.mrb[120].mxu0  ;;  %v11057_v18 = vpop.f32.mrb[120].mxu1 }
 0x5ca   :  { %v11015_v19 = vadd.f32 %v11014_v17, %v7013_v13  ;;  %v11058_v20 = vadd.f32 %v11057_v18, %v7021_v14  ;;  %v11016_v21 = vpop.f32.mrb[121].mxu0  ;;  %v11059_v23 = vpop.f32.mrb[121].mxu1 }
 0x5cb   :  { %v11017_v24 = vadd.f32 %v11016_v21, %v7017_v15  ;;  %v11060_v25 = vadd.f32 %v11059_v23, %v7025_v39  ;;  %v11018_v26 = vpop.f32.mrb[122].mxu0  ;;  %v11061_v27 = vpop.f32.mrb[122].mxu1  ;;  %v7045_v23 = vrot.slane %v6791_v45, %v15989_v1 }
 0x5cc   :  { %v11376_v28 = vmax.f32 %v11015_v19, 0.0  ;;  %v11378_v30 = vmax.f32 %v11058_v20, 0.0  ;;  %v11019_v31 = vadd.f32 %v11018_v26, %v7013_v13  ;;  %v11062_v32 = vadd.f32 %v11061_v27, %v7021_v14  ;;  %v11020_v33 = vpop.f32.mrb[123].mxu0  ;;  %v11063_v34 = vpop.f32.mrb[123].mxu1 }
 0x5cd   :  { %v11377_v35 = vmax.f32 %v11017_v24, 0.0  ;;  %v11379_v36 = vmax.f32 %v11060_v25, 0.0  ;;  %v11021_v37 = vadd.f32 %v11020_v33, %v7017_v15  ;;  %v11064_v38 = vadd.f32 %v11063_v34, %v7025_v39 }
 0x5ce   :  { %v11444_v22 = vmax.f32 %v11019_v31, 0.0  ;;  %v11446_v4 = vmax.f32 %v11062_v32, 0.0  ;;  %v7053_v24 = vrot.slane %v6791_v45, %v15992_v2  ;;  %v7049_v25 = vrot.slane %v6791_v45, %v15995_v5 }
 0x5cf   :  { %v13198_v40 = vpack.c.bf16 %v11377_v35, %v11376_v28  ;;  %v13199_v41 = vpack.c.bf16 %v11379_v36, %v11378_v30  ;;  %v11445_v42 = vmax.f32 %v11021_v37, 0.0  ;;  %v11447_v29 = vmax.f32 %v11064_v38, 0.0 }
 0x5d0   :  { %v7057_v26 = vrot.slane %v6791_v45, %v15998_v6 }
 0x5d1   :  { %11894 = vst [vmem:[%s16339_s5 + $0xd0] sm:$0xff] %v13198_v40  ;;  %11895 = vst [vmem:[%s16339_s5 + $0xd8] sm:$0xff] %v13199_v41  ;;  %v13232_v43 = vpack.c.bf16 %v11445_v42, %v11444_v22  ;;  %v13233_v44 = vpack.c.bf16 %v11447_v29, %v11446_v4 }
 0x5d3   :  { %11928 = vst [vmem:[%s16339_s5 + $0x1e0] sm:$0xff] %v13232_v43  ;;  %11929 = vst [vmem:[%s16339_s5 + $0x1e8] sm:$0xff] %v13233_v44 }
 0x5e9   :  { %v11100_v16 = vpop.f32.mrb[124].mxu0  ;;  %v11143_v51 = vpop.f32.mrb[124].mxu1 }
 0x5ea   :  { %v11101_v52 = vadd.f32 %v11100_v16, %v7029_v46  ;;  %v11144_v55 = vadd.f32 %v11143_v51, %v7037_v48  ;;  %v11102_v59 = vpop.f32.mrb[125].mxu0  ;;  %v11145_v60 = vpop.f32.mrb[125].mxu1  ;;  %v6792_v16 = vld [vmem:[#allocation7 + $0x40] sm:$0xf] }
 0x5eb   :  { %v11103_v61 = vadd.f32 %v11102_v59, %v7033_v49  ;;  %v11146_v62 = vadd.f32 %v11145_v60, %v7041_v50  ;;  %v11104_v63 = vpop.f32.mrb[126].mxu0  ;;  %v11147_v0 = vpop.f32.mrb[126].mxu1  ;;  %v7061_v51 = vrot.slane %v6792_v16, %v15951_v53  ;;  %v7073_v59 = vrot.slane %v6792_v16, %v15962_v58 }
 0x5ec   :  { %v11380_v56 = vmax.f32 %v11101_v52, 0.0  ;;  %v11382_v3 = vmax.f32 %v11144_v55, 0.0  ;;  %v11105_v7 = vadd.f32 %v11104_v63, %v7029_v46  ;;  %v11148_v8 = vadd.f32 %v11147_v0, %v7037_v48  ;;  %v11106_v9 = vpop.f32.mrb[127].mxu0  ;;  %v11149_v10 = vpop.f32.mrb[127].mxu1 }
 0x5ed   :  { %v11381_v11 = vmax.f32 %v11103_v61, 0.0  ;;  %v11383_v12 = vmax.f32 %v11146_v62, 0.0  ;;  %v11107_v47 = vadd.f32 %v11106_v9, %v7033_v49  ;;  %v11150_v13 = vadd.f32 %v11149_v10, %v7041_v50 }
 0x5ee   :  { %v11448_v14 = vmax.f32 %v11105_v7, 0.0  ;;  %v11450_v15 = vmax.f32 %v11148_v8, 0.0  ;;  %v7069_v52 = vrot.slane %v6792_v16, %v15954_v54  ;;  %v7065_v55 = vrot.slane %v6792_v16, %v15959_v57 }
 0x5ef   :  { %v13200_v39 = vpack.c.bf16 %v11381_v11, %v11380_v56  ;;  %v13201_v17 = vpack.c.bf16 %v11383_v12, %v11382_v3  ;;  %v11449_v18 = vmax.f32 %v11107_v47, 0.0  ;;  %v11451_v19 = vmax.f32 %v11150_v13, 0.0 }
 0x5f1   :  { %11896 = vst [vmem:[%s16339_s5 + $0xe0] sm:$0xff] %v13200_v39  ;;  %11897 = vst [vmem:[%s16339_s5 + $0xe8] sm:$0xff] %v13201_v17  ;;  %v13234_v20 = vpack.c.bf16 %v11449_v18, %v11448_v14  ;;  %v13235_v21 = vpack.c.bf16 %v11451_v19, %v11450_v15 }
 0x5f3   :  { %11930 = vst [vmem:[%s16339_s5 + $0x1f0] sm:$0xff] %v13234_v20  ;;  %11931 = vst [vmem:[%s16339_s5 + $0x1f8] sm:$0xff] %v13235_v21 }
 0x609   :  { %v11186_v27 = vpop.f32.mrb[128].mxu0  ;;  %v11229_v28 = vpop.f32.mrb[128].mxu1 }
 0x60a   :  { %v11187_v30 = vadd.f32 %v11186_v27, %v7045_v23  ;;  %v11230_v31 = vadd.f32 %v11229_v28, %v7053_v24  ;;  %v11188_v32 = vpop.f32.mrb[129].mxu0  ;;  %v11231_v33 = vpop.f32.mrb[129].mxu1 }
 0x60b   :  { %v11189_v34 = vadd.f32 %v11188_v32, %v7049_v25  ;;  %v11232_v35 = vadd.f32 %v11231_v33, %v7057_v26  ;;  %v11190_v36 = vpop.f32.mrb[130].mxu0  ;;  %v11233_v37 = vpop.f32.mrb[130].mxu1 }
 0x60c   :  { %v11384_v38 = vmax.f32 %v11187_v30, 0.0  ;;  %v11386_v22 = vmax.f32 %v11230_v31, 0.0  ;;  %v11191_v4 = vadd.f32 %v11190_v36, %v7045_v23  ;;  %v11234_v1 = vadd.f32 %v11233_v37, %v7053_v24  ;;  %v11192_v40 = vpop.f32.mrb[131].mxu0  ;;  %v11235_v2 = vpop.f32.mrb[131].mxu1 }
 0x60d   :  { %v11385_v41 = vmax.f32 %v11189_v34, 0.0  ;;  %v11387_v5 = vmax.f32 %v11232_v35, 0.0  ;;  %v11193_v42 = vadd.f32 %v11192_v40, %v7049_v25  ;;  %v11236_v6 = vadd.f32 %v11235_v2, %v7057_v26 }
 0x60e   :  { %v11452_v29 = vmax.f32 %v11191_v4, 0.0  ;;  %v11454_v43 = vmax.f32 %v11234_v1, 0.0 }
 0x60f   :  { %v13202_v44 = vpack.c.bf16 %v11385_v41, %v11384_v38  ;;  %v13203_v45 = vpack.c.bf16 %v11387_v5, %v11386_v22  ;;  %v11453_v46 = vmax.f32 %v11193_v42, 0.0  ;;  %v11455_v48 = vmax.f32 %v11236_v6, 0.0 }
 0x611   :  { %11898 = vst [vmem:[%s16339_s5 + $0xf0] sm:$0xff] %v13202_v44  ;;  %11899 = vst [vmem:[%s16339_s5 + $0xf8] sm:$0xff] %v13203_v45  ;;  %v13236_v49 = vpack.c.bf16 %v11453_v46, %v11452_v29  ;;  %v13237_v50 = vpack.c.bf16 %v11455_v48, %v11454_v43 }
 0x613   :  { %11932 = vst [vmem:[%s16339_s5 + $0x200] sm:$0xff] %v13236_v49  ;;  %11933 = vst [vmem:[%s16339_s5 + $0x208] sm:$0xff] %v13237_v50 }
 0x629   :  { %v11272_v60 = vpop.f32.mrb[132].mxu0  ;;  %v11315_v61 = vpop.f32.mrb[132].mxu1 }
 0x62a   :  { %v11273_v62 = vadd.f32 %v11272_v60, %v7061_v51  ;;  %v11316_v63 = vadd.f32 %v11315_v61, %v7069_v52  ;;  %v11274_v0 = vpop.f32.mrb[133].mxu0  ;;  %v11317_v56 = vpop.f32.mrb[133].mxu1 }
 0x62b   :  { %v11275_v3 = vadd.f32 %v11274_v0, %v7065_v55  ;;  %v11318_v7 = vadd.f32 %v11317_v56, %v7073_v59  ;;  %v11276_v8 = vpop.f32.mrb[134].mxu0  ;;  %v11319_v9 = vpop.f32.mrb[134].mxu1 }
 0x62c   :  { %v11388_v10 = vmax.f32 %v11273_v62, 0.0  ;;  %v11390_v11 = vmax.f32 %v11316_v63, 0.0  ;;  %v11277_v12 = vadd.f32 %v11276_v8, %v7061_v51  ;;  %v11320_v53 = vadd.f32 %v11319_v9, %v7069_v52  ;;  %v11278_v47 = vpop.f32.mrb[135].mxu0  ;;  %v11321_v54 = vpop.f32.mrb[135].mxu1 }
 0x62d   :  { %v11389_v13 = vmax.f32 %v11275_v3, 0.0  ;;  %v11391_v57 = vmax.f32 %v11318_v7, 0.0  ;;  %v11279_v14 = vadd.f32 %v11278_v47, %v7065_v55  ;;  %v11322_v58 = vadd.f32 %v11321_v54, %v7073_v59 }
 0x62e   :  { %v11456_v15 = vmax.f32 %v11277_v12, 0.0  ;;  %v11458_v39 = vmax.f32 %v11320_v53, 0.0 }
 0x62f   :  { %v13204_v17 = vpack.c.bf16 %v11389_v13, %v11388_v10  ;;  %v13205_v18 = vpack.c.bf16 %v11391_v57, %v11390_v11  ;;  %v11457_v19 = vmax.f32 %v11279_v14, 0.0  ;;  %v11459_v20 = vmax.f32 %v11322_v58, 0.0 }
 0x631   :  { %11900 = vst [vmem:[%s16339_s5 + $0x100] sm:$0xff] %v13204_v17  ;;  %11901 = vst [vmem:[%s16339_s5 + $0x108] sm:$0xff] %v13205_v18  ;;  %v13238_v21 = vpack.c.bf16 %v11457_v19, %v11456_v15  ;;  %v13239_v23 = vpack.c.bf16 %v11459_v20, %v11458_v39 }
 0x633   :  { %11934 = vst [vmem:[%s16339_s5 + $0x210] sm:$0xff] %v13238_v21  ;;  %11935 = vst [vmem:[%s16339_s5 + $0x218] sm:$0xff] %v13239_v23 }
 0x634   :  { %11944 = vsyncpa [#allocation3], 1 }
 0x635   :  { %11945 = vsyncpa [#allocation5], 1 }
 0x636   :  { %11946 = vsyncpa [#allocation8], 1 }

</bundles_post_ra>
